<compile_context>
chip_gen: v5e
topology: v5e:2x2
jax: 0.10.0
libtpu: 0.0.40
codegen_flags: <defaults>
</compile_context>

<pallas_src>
import math

import numpy as np
import jax
import jax.numpy as jnp
from jax import lax
from jax.experimental import pallas as pl
from jax.experimental.pallas import tpu as pltpu

MXU_DTYPE = jnp.bfloat16     # MXU operand dtype (accumulation is always f32)
LN_EPS = 1e-5                # nn.LayerNorm default eps


def _conv_out(size, k, s):
    return int(np.floor((size - (k - 1) - 1) / s + 1))


def _round_up(x, m):
    return -(-x // m) * m


def _subsample(a, axis, count, stride):
    """Select every `stride`-th slab along leading `axis` (all params static).

    Expects stride*(count-1)+1 <= a.shape[axis] <= stride*count.  Uses only
    leading-dim slice / concat / reshape / squeeze, so it is layout-free on TPU
    (last two dims are never touched) and legal in both Mosaic and interpret mode.
    """
    if stride == 1:
        return lax.slice_in_dim(a, 0, count, axis=axis)
    need = stride * count
    have = a.shape[axis]
    if have < need:                                      # wrap-pad with (dropped) slabs
        filler = lax.slice_in_dim(a, 0, need - have, axis=axis)
        a = jnp.concatenate([a, filler], axis=axis)
    elif have > need:
        a = lax.slice_in_dim(a, 0, need, axis=axis)
    shp = a.shape[:axis] + (count, stride) + a.shape[axis + 1:]
    a = a.reshape(shp)
    return lax.index_in_dim(a, 0, axis=axis + 1, keepdims=False)


# ---------------------------------------------------------------------------
# Fused forward-pass builder (one pallas_call for the whole network)
# ---------------------------------------------------------------------------

def make_cnn_forward(input_dim, conv_dim, image_size, kernel_sizes, strides,
                     output_dim, batch_tile=32):
    max_tb = max(8, _round_up(int(batch_tile), 8))       # f32 scratch -> multiple of 8

    # Static per-layer geometry.
    layers = []
    ih = iw = image_size
    ic = input_dim
    for k, s in zip(kernel_sizes, strides):
        k, s = int(k), int(s)
        oh, ow = _conv_out(ih, k, s), _conv_out(iw, k, s)
        layers.append(dict(k=k, s=s, ih=ih, iw=iw, ic=ic, oh=oh, ow=ow, oc=conv_dim))
        ih, iw, ic = oh, ow, conv_dim
    n_layers = len(layers)
    flat_dim = ih * iw * conv_dim

    def kernel(*refs):
        x_ref = refs[0]                                   # [H, W, TB, C_in]
        conv_w = [refs[1 + 2 * l] for l in range(n_layers)]
        conv_b = [refs[2 + 2 * l] for l in range(n_layers)]
        base = 1 + 2 * n_layers
        wfc_ref, bfc_ref, g_ref, beta_ref, o_ref = refs[base:base + 5]
        p_scratch = refs[base + 5:]                       # one patch buffer per conv layer
        TB = x_ref.shape[2]

        def conv_block(read_win, L, w_ref, b_ref, p_ref):
            k, s, icl = L["k"], L["s"], L["ic"]
            ih_l, iw_l, oh, ow, oc = L["ih"], L["iw"], L["oh"], L["ow"], L["oc"]
            # --- im2col: ONE (strided) window per kernel tap -> VMEM patch scratch ---
            for i in range(k):
                rl = min(s * oh, ih_l - i)
                for j in range(k):
                    cl = min(s * ow, iw_l - j)
                    win = read_win(i, rl, j, cl)                  # [rl, cl, TB, icl]
                    tap = _subsample(win, 0, oh, s)
                    tap = _subsample(tap, 1, ow, s)               # [oh, ow, TB, icl]
                    p_ref[:, :, :, pl.ds((i * k + j) * icl, icl)] = tap
            # --- one GEMM per layer: spatial positions folded into the MXU M dim ---
            patches = p_ref[...].reshape(oh * ow * TB, k * k * icl).astype(MXU_DTYPE)
            acc = jnp.dot(patches, w_ref[...],
                          preferred_element_type=jnp.float32)     # [oh*ow*TB, oc] f32
            h = jnp.maximum(acc + b_ref[...], 0.0)                # bias + ReLU once
            return h.reshape(oh, ow, TB, oc)                      # free (TB % 8 == 0)

        def read_x(i, rl, j, cl):                                 # non-strided ref window
            return x_ref[pl.ds(i, rl), pl.ds(j, cl), :, :]

        h = conv_block(read_x, layers[0], conv_w[0], conv_b[0], p_scratch[0])
        for l in range(1, n_layers):
            hv = h
            read_h = lambda i, rl, j, cl, hv=hv: hv[i:i + rl, j:j + cl]
            h = conv_block(read_h, layers[l], conv_w[l], conv_b[l], p_scratch[l])

        # --- fc (per-spatial-position accumulation) + LayerNorm + tanh ---
        last = layers[-1]
        oh, ow, oc = last["oh"], last["ow"], last["oc"]
        h16 = h.astype(MXU_DTYPE)                                 # one cast
        wfc = wfc_ref[...]                                        # [flat, out] (MXU dtype)
        y = jnp.zeros((TB, output_dim), jnp.float32)
        for r in range(oh):
            for c in range(ow):
                t = r * ow + c
                y = y + jnp.dot(h16[r, c], wfc[t * oc:(t + 1) * oc, :],
                                preferred_element_type=jnp.float32)
        y = y + bfc_ref[...]
        mu = jnp.mean(y, axis=-1, keepdims=True)
        var = jnp.mean((y - mu) ** 2, axis=-1, keepdims=True)
        yhat = (y - mu) * lax.rsqrt(var + LN_EPS)
        o_ref[...] = jnp.tanh(yhat * g_ref[...] + beta_ref[...])

    flops_per_sample = sum(
        2 * L["oh"] * L["ow"] * (L["k"] * L["k"] * L["ic"]) * L["oc"] for L in layers)
    flops_per_sample += 2 * flat_dim * output_dim

    def forward(packed_params, ob):
        n = ob.shape[0]
        tb = min(max_tb, _round_up(n, 8))
        # If batch allows, keep >= 2 grid steps so "parallel" can shard across v7x's 2 TCs.
        if n > 8 and _round_up(n, tb) // tb < 2:
            tb = max(8, _round_up(-(-n // 2), 8))
        n_pad = _round_up(n, tb)

        # TODO(synk): this NCHW -> [H, W, N, C] layout prep is a separate XLA transpose
        # over HBM; accept HWNC from the caller (or shuffle in-kernel) to remove it.
        x = jnp.transpose(ob, (2, 3, 0, 1))
        if n_pad != n:
            x = jnp.pad(x, ((0, 0), (0, 0), (0, n_pad - n), (0, 0)))

        in_specs = [pl.BlockSpec((image_size, image_size, tb, input_dim),
                                 lambda i: (0, 0, i, 0))]
        for L in layers:
            in_specs.append(pl.BlockSpec((L["k"] * L["k"] * L["ic"], L["oc"]),
                                         lambda i: (0, 0)))
            in_specs.append(pl.BlockSpec((1, L["oc"]), lambda i: (0, 0)))
        in_specs += [pl.BlockSpec((flat_dim, output_dim), lambda i: (0, 0)),
                     pl.BlockSpec((1, output_dim), lambda i: (0, 0)),
                     pl.BlockSpec((1, output_dim), lambda i: (0, 0)),
                     pl.BlockSpec((1, output_dim), lambda i: (0, 0))]
        out_spec = pl.BlockSpec((tb, output_dim), lambda i: (i, 0))
        scratch_shapes = [
            pltpu.VMEM((L["oh"], L["ow"], tb, L["k"] * L["k"] * L["ic"]), jnp.float32)
            for L in layers]

        param_bytes = sum(int(np.prod(p.shape)) * p.dtype.itemsize for p in packed_params)
        cost = pl.CostEstimate(
            flops=int(flops_per_sample * n_pad),
            transcendentals=int(n_pad * output_dim),
            bytes_accessed=int(x.size * 4 + n_pad * output_dim * 4 + param_bytes))

        out = pl.pallas_call(
            kernel,
            out_shape=jax.ShapeDtypeStruct((n_pad, output_dim), jnp.float32),
            grid_spec=pltpu.PrefetchScalarGridSpec(
                num_scalar_prefetch=0,
                grid=(n_pad // tb,),
                in_specs=in_specs,
                out_specs=out_spec,
                scratch_shapes=scratch_shapes),
            compiler_params=pltpu.CompilerParams(
                dimension_semantics=("parallel",),        # batch tiles are independent
                vmem_limit_bytes=48 * 1024 * 1024),
            cost_estimate=cost,
        )(x, *packed_params)
        return out[:n]

    return forward


# ---------------------------------------------------------------------------
# Parameter init (mirrors weight_init in the PyTorch module) + kernel packing
# ---------------------------------------------------------------------------

def init_cnn_params(key, input_dim, conv_dim, image_size, kernel_sizes, strides,
                    output_dim):
    params = {"convs": []}
    d_prev = input_dim
    w = image_size
    relu_gain = math.sqrt(2.0)                            # nn.init.calculate_gain('relu')
    for k, s in zip(kernel_sizes, strides):
        key, sub = jax.random.split(key)
        weight = jnp.zeros((conv_dim, d_prev, k, k), jnp.float32)
        mid = k // 2
        center = relu_gain * jax.nn.initializers.orthogonal()(sub, (conv_dim, d_prev),
                                                              jnp.float32)
        weight = weight.at[:, :, mid, mid].set(center)
        params["convs"].append({"weight": weight,
                                "bias": jnp.zeros((conv_dim,), jnp.float32),
                                "stride": int(s)})
        w = _conv_out(w, k, s)
        d_prev = conv_dim
    flat_dim = w * w * conv_dim
    key, sub = jax.random.split(key)
    params["fc_w"] = jax.nn.initializers.orthogonal()(sub, (output_dim, flat_dim),
                                                      jnp.float32)
    params["fc_b"] = jnp.zeros((output_dim,), jnp.float32)
    params["ln_g"] = jnp.ones((output_dim,), jnp.float32)
    params["ln_b"] = jnp.zeros((output_dim,), jnp.float32)
    return params, w, flat_dim


def pack_params_for_kernel(params):
    """Pre-permute/reshape weights once so the kernel needs no runtime permutes."""
    packed = []
    for layer in params["convs"]:
        w = layer["weight"]                               # [D, C, k, k]  (PyTorch layout)
        D, C, k, _ = w.shape
        # patch columns are ordered (i, j, c) -> weight rows must match
        w_mat = jnp.transpose(w, (2, 3, 1, 0)).reshape(k * k * C, D)
        packed.append(w_mat.astype(MXU_DTYPE))
        packed.append(layer["bias"].reshape(1, D).astype(jnp.float32))
    fc_w = params["fc_w"]                                 # [OUT, FLAT], FLAT ordered (c, oh, ow)
    OUT, FLAT = fc_w.shape
    d_last = params["convs"][-1]["weight"].shape[0]
    s_last = FLAT // d_last
    # kernel activations are ordered (spatial, channel) -> permute fc rows to match
    wfc = jnp.transpose(fc_w.reshape(OUT, d_last, s_last), (2, 1, 0)).reshape(FLAT, OUT)
    packed.append(wfc.astype(MXU_DTYPE))
    packed.append(params["fc_b"].reshape(1, OUT).astype(jnp.float32))
    packed.append(params["ln_g"].reshape(1, OUT).astype(jnp.float32))
    packed.append(params["ln_b"].reshape(1, OUT).astype(jnp.float32))
    return tuple(packed)


# ---------------------------------------------------------------------------
# Plain-JAX reference (same bf16-operand / f32-accumulate numerics as the kernel)
# ---------------------------------------------------------------------------

def cnn_forward_reference(params, ob):
    out = ob
    for layer in params["convs"]:
        w, s = layer["weight"], layer["stride"]
        out = lax.conv_general_dilated(
            out.astype(MXU_DTYPE), w.astype(MXU_DTYPE),
            window_strides=(s, s), padding="VALID",
            dimension_numbers=("NCHW", "OIHW", "NCHW"),
            preferred_element_type=jnp.float32)
        out = jnp.maximum(out + layer["bias"][None, :, None, None], 0.0)
    out = out.reshape(out.shape[0], -1)                   # flatten(1), channel-major
    # TODO(synk): detach_conv is a gradient-only flag (torch .detach()); no forward effect.
    y = jnp.dot(out.astype(MXU_DTYPE), params["fc_w"].T.astype(MXU_DTYPE),
                preferred_element_type=jnp.float32) + params["fc_b"]
    mu = jnp.mean(y, axis=-1, keepdims=True)
    var = jnp.mean((y - mu) ** 2, axis=-1, keepdims=True)
    yhat = (y - mu) * lax.rsqrt(var + LN_EPS)
    return jnp.tanh(yhat * params["ln_g"] + params["ln_b"])


if __name__ == "__main__":
    # config: input_dim=4 channels, conv_dim=8, image 16x16, two convs (k=3, s=2), out=32
    input_dim, conv_dim, image_size = 4, 8, 16
    kernel_sizes, strides = [3, 3], [2, 2]
    output_dim, batch = 32, 2

    key = jax.random.PRNGKey(0)
    key, pkey, xkey = jax.random.split(key, 3)
    params, w_out, flat_dim = init_cnn_params(
        pkey, input_dim, conv_dim, image_size, kernel_sizes, strides, output_dim)
    print('Output of CNN (%d) = %d x %d x %d' % (flat_dim, w_out, w_out, conv_dim))

    forward = make_cnn_forward(input_dim, conv_dim, image_size, kernel_sizes, strides,
                               output_dim, batch_tile=32)
    packed = pack_params_for_kernel(params)

    x = jax.random.normal(xkey, (batch, input_dim, image_size, image_size), jnp.float32)

    fwd = jax.jit(forward)
    out = jax.block_until_ready(fwd(packed, x))

    ref = cnn_forward_reference(params, x)
    err = float(jnp.max(jnp.abs(out - ref)))

    assert out.shape == (batch, output_dim)
    assert bool(jnp.all(jnp.isfinite(out)))
    assert err < 5e-3, f"mismatch vs reference: {err}"
    print("max |pallas - reference| = %.2e" % err)
    print("KERNEL_OK")
</pallas_src>

<mosaic_0001>
module attributes {stable_mosaic.version = 11 : i64} {
  func.func @kernel(%arg0: i32, %arg1: memref<16x16x8x4xf32, #tpu.memory_space<vmem>>, %arg2: memref<36x8xbf16, #tpu.memory_space<vmem>>, %arg3: memref<1x8xf32, #tpu.memory_space<vmem>>, %arg4: memref<72x8xbf16, #tpu.memory_space<vmem>>, %arg5: memref<1x8xf32, #tpu.memory_space<vmem>>, %arg6: memref<72x32xbf16, #tpu.memory_space<vmem>>, %arg7: memref<1x32xf32, #tpu.memory_space<vmem>>, %arg8: memref<1x32xf32, #tpu.memory_space<vmem>>, %arg9: memref<1x32xf32, #tpu.memory_space<vmem>>, %arg10: memref<8x32xf32, #tpu.memory_space<vmem>>, %arg11: memref<7x7x8x36xf32, #tpu.memory_space<vmem>>, %arg12: memref<3x3x8x72xf32, #tpu.memory_space<vmem>>) attributes {dimension_semantics = [#tpu.dimension_semantics<parallel>], iteration_bounds = array<i64: 1>, scalar_prefetch = 0 : i64, scratch_operands = 2 : i64, tpu.core_type = #tpu.core_type<tc>, window_params = [{transform_indices = @transform_0, window_bounds = array<i64: 16, 16, 8, 4>}, {pipeline_mode = #tpu.pipeline_mode<synchronous>, transform_indices = @transform_1, window_bounds = array<i64: 36, 8>}, {pipeline_mode = #tpu.pipeline_mode<synchronous>, transform_indices = @transform_2, window_bounds = array<i64: 1, 8>}, {pipeline_mode = #tpu.pipeline_mode<synchronous>, transform_indices = @transform_3, window_bounds = array<i64: 72, 8>}, {pipeline_mode = #tpu.pipeline_mode<synchronous>, transform_indices = @transform_4, window_bounds = array<i64: 1, 8>}, {pipeline_mode = #tpu.pipeline_mode<synchronous>, transform_indices = @transform_5, window_bounds = array<i64: 72, 32>}, {pipeline_mode = #tpu.pipeline_mode<synchronous>, transform_indices = @transform_6, window_bounds = array<i64: 1, 32>}, {pipeline_mode = #tpu.pipeline_mode<synchronous>, transform_indices = @transform_7, window_bounds = array<i64: 1, 32>}, {pipeline_mode = #tpu.pipeline_mode<synchronous>, transform_indices = @transform_8, window_bounds = array<i64: 1, 32>}, {transform_indices = @transform_9, window_bounds = array<i64: 8, 32>}]} {
    %c0 = arith.constant 0 : index
    %c0_0 = arith.constant 0 : index
    %c0_1 = arith.constant 0 : index
    %c0_2 = arith.constant 0 : index
    %0 = vector.load %arg1[%c0, %c0_0, %c0_1, %c0_2] : memref<16x16x8x4xf32, #tpu.memory_space<vmem>>, vector<14x14x8x4xf32>
    %1 = vector.shape_cast %0 : vector<14x14x8x4xf32> to vector<7x2x14x8x4xf32>
    %2 = vector.extract_strided_slice %1 {offsets = [0, 0, 0, 0, 0], sizes = [7, 1, 14, 8, 4], strides = [1, 1, 1, 1, 1]} : vector<7x2x14x8x4xf32> to vector<7x1x14x8x4xf32>
    %3 = vector.shape_cast %2 : vector<7x1x14x8x4xf32> to vector<7x14x8x4xf32>
    %4 = vector.shape_cast %3 : vector<7x14x8x4xf32> to vector<7x7x2x8x4xf32>
    %5 = vector.extract_strided_slice %4 {offsets = [0, 0, 0, 0, 0], sizes = [7, 7, 1, 8, 4], strides = [1, 1, 1, 1, 1]} : vector<7x7x2x8x4xf32> to vector<7x7x1x8x4xf32>
    %6 = vector.shape_cast %5 : vector<7x7x1x8x4xf32> to vector<7x7x8x4xf32>
    %c0_3 = arith.constant 0 : index
    %c0_4 = arith.constant 0 : index
    %c0_5 = arith.constant 0 : index
    %c0_6 = arith.constant 0 : index
    %7 = vector.load %arg11[%c0_3, %c0_4, %c0_5, %c0_6] : memref<7x7x8x36xf32, #tpu.memory_space<vmem>>, vector<7x7x8x4xf32>
    tpu.vector_store %arg11[%c0_3, %c0_4, %c0_5, %c0_6], %6 {strides = array<i32>} : memref<7x7x8x36xf32, #tpu.memory_space<vmem>>, vector<7x7x8x4xf32>,
    %c0_7 = arith.constant 0 : index
    %c1 = arith.constant 1 : index
    %c0_8 = arith.constant 0 : index
    %c0_9 = arith.constant 0 : index
    %8 = vector.load %arg1[%c0_7, %c1, %c0_8, %c0_9] : memref<16x16x8x4xf32, #tpu.memory_space<vmem>>, vector<14x14x8x4xf32>
    %9 = vector.shape_cast %8 : vector<14x14x8x4xf32> to vector<7x2x14x8x4xf32>
    %10 = vector.extract_strided_slice %9 {offsets = [0, 0, 0, 0, 0], sizes = [7, 1, 14, 8, 4], strides = [1, 1, 1, 1, 1]} : vector<7x2x14x8x4xf32> to vector<7x1x14x8x4xf32>
    %11 = vector.shape_cast %10 : vector<7x1x14x8x4xf32> to vector<7x14x8x4xf32>
    %12 = vector.shape_cast %11 : vector<7x14x8x4xf32> to vector<7x7x2x8x4xf32>
    %13 = vector.extract_strided_slice %12 {offsets = [0, 0, 0, 0, 0], sizes = [7, 7, 1, 8, 4], strides = [1, 1, 1, 1, 1]} : vector<7x7x2x8x4xf32> to vector<7x7x1x8x4xf32>
    %14 = vector.shape_cast %13 : vector<7x7x1x8x4xf32> to vector<7x7x8x4xf32>
    %c0_10 = arith.constant 0 : index
    %c0_11 = arith.constant 0 : index
    %c0_12 = arith.constant 0 : index
    %c4 = arith.constant 4 : index
    %15 = vector.load %arg11[%c0_10, %c0_11, %c0_12, %c4] : memref<7x7x8x36xf32, #tpu.memory_space<vmem>>, vector<7x7x8x4xf32>
    tpu.vector_store %arg11[%c0_10, %c0_11, %c0_12, %c4], %14 {strides = array<i32>} : memref<7x7x8x36xf32, #tpu.memory_space<vmem>>, vector<7x7x8x4xf32>,
    %c0_13 = arith.constant 0 : index
    %c2 = arith.constant 2 : index
    %c0_14 = arith.constant 0 : index
    %c0_15 = arith.constant 0 : index
    %16 = vector.load %arg1[%c0_13, %c2, %c0_14, %c0_15] : memref<16x16x8x4xf32, #tpu.memory_space<vmem>>, vector<14x14x8x4xf32>
    %17 = vector.shape_cast %16 : vector<14x14x8x4xf32> to vector<7x2x14x8x4xf32>
    %18 = vector.extract_strided_slice %17 {offsets = [0, 0, 0, 0, 0], sizes = [7, 1, 14, 8, 4], strides = [1, 1, 1, 1, 1]} : vector<7x2x14x8x4xf32> to vector<7x1x14x8x4xf32>
    %19 = vector.shape_cast %18 : vector<7x1x14x8x4xf32> to vector<7x14x8x4xf32>
    %20 = vector.shape_cast %19 : vector<7x14x8x4xf32> to vector<7x7x2x8x4xf32>
    %21 = vector.extract_strided_slice %20 {offsets = [0, 0, 0, 0, 0], sizes = [7, 7, 1, 8, 4], strides = [1, 1, 1, 1, 1]} : vector<7x7x2x8x4xf32> to vector<7x7x1x8x4xf32>
    %22 = vector.shape_cast %21 : vector<7x7x1x8x4xf32> to vector<7x7x8x4xf32>
    %c0_16 = arith.constant 0 : index
    %c0_17 = arith.constant 0 : index
    %c0_18 = arith.constant 0 : index
    %c8 = arith.constant 8 : index
    %23 = vector.load %arg11[%c0_16, %c0_17, %c0_18, %c8] : memref<7x7x8x36xf32, #tpu.memory_space<vmem>>, vector<7x7x8x4xf32>
    tpu.vector_store %arg11[%c0_16, %c0_17, %c0_18, %c8], %22 {strides = array<i32>} : memref<7x7x8x36xf32, #tpu.memory_space<vmem>>, vector<7x7x8x4xf32>,
    %c1_19 = arith.constant 1 : index
    %c0_20 = arith.constant 0 : index
    %c0_21 = arith.constant 0 : index
    %c0_22 = arith.constant 0 : index
    %24 = vector.load %arg1[%c1_19, %c0_20, %c0_21, %c0_22] : memref<16x16x8x4xf32, #tpu.memory_space<vmem>>, vector<14x14x8x4xf32>
    %25 = vector.shape_cast %24 : vector<14x14x8x4xf32> to vector<7x2x14x8x4xf32>
    %26 = vector.extract_strided_slice %25 {offsets = [0, 0, 0, 0, 0], sizes = [7, 1, 14, 8, 4], strides = [1, 1, 1, 1, 1]} : vector<7x2x14x8x4xf32> to vector<7x1x14x8x4xf32>
    %27 = vector.shape_cast %26 : vector<7x1x14x8x4xf32> to vector<7x14x8x4xf32>
    %28 = vector.shape_cast %27 : vector<7x14x8x4xf32> to vector<7x7x2x8x4xf32>
    %29 = vector.extract_strided_slice %28 {offsets = [0, 0, 0, 0, 0], sizes = [7, 7, 1, 8, 4], strides = [1, 1, 1, 1, 1]} : vector<7x7x2x8x4xf32> to vector<7x7x1x8x4xf32>
    %30 = vector.shape_cast %29 : vector<7x7x1x8x4xf32> to vector<7x7x8x4xf32>
    %c0_23 = arith.constant 0 : index
    %c0_24 = arith.constant 0 : index
    %c0_25 = arith.constant 0 : index
    %c12 = arith.constant 12 : index
    %31 = vector.load %arg11[%c0_23, %c0_24, %c0_25, %c12] : memref<7x7x8x36xf32, #tpu.memory_space<vmem>>, vector<7x7x8x4xf32>
    tpu.vector_store %arg11[%c0_23, %c0_24, %c0_25, %c12], %30 {strides = array<i32>} : memref<7x7x8x36xf32, #tpu.memory_space<vmem>>, vector<7x7x8x4xf32>,
    %c1_26 = arith.constant 1 : index
    %c1_27 = arith.constant 1 : index
    %c0_28 = arith.constant 0 : index
    %c0_29 = arith.constant 0 : index
    %32 = vector.load %arg1[%c1_26, %c1_27, %c0_28, %c0_29] : memref<16x16x8x4xf32, #tpu.memory_space<vmem>>, vector<14x14x8x4xf32>
    %33 = vector.shape_cast %32 : vector<14x14x8x4xf32> to vector<7x2x14x8x4xf32>
    %34 = vector.extract_strided_slice %33 {offsets = [0, 0, 0, 0, 0], sizes = [7, 1, 14, 8, 4], strides = [1, 1, 1, 1, 1]} : vector<7x2x14x8x4xf32> to vector<7x1x14x8x4xf32>
    %35 = vector.shape_cast %34 : vector<7x1x14x8x4xf32> to vector<7x14x8x4xf32>
    %36 = vector.shape_cast %35 : vector<7x14x8x4xf32> to vector<7x7x2x8x4xf32>
    %37 = vector.extract_strided_slice %36 {offsets = [0, 0, 0, 0, 0], sizes = [7, 7, 1, 8, 4], strides = [1, 1, 1, 1, 1]} : vector<7x7x2x8x4xf32> to vector<7x7x1x8x4xf32>
    %38 = vector.shape_cast %37 : vector<7x7x1x8x4xf32> to vector<7x7x8x4xf32>
    %c0_30 = arith.constant 0 : index
    %c0_31 = arith.constant 0 : index
    %c0_32 = arith.constant 0 : index
    %c16 = arith.constant 16 : index
    %39 = vector.load %arg11[%c0_30, %c0_31, %c0_32, %c16] : memref<7x7x8x36xf32, #tpu.memory_space<vmem>>, vector<7x7x8x4xf32>
    tpu.vector_store %arg11[%c0_30, %c0_31, %c0_32, %c16], %38 {strides = array<i32>} : memref<7x7x8x36xf32, #tpu.memory_space<vmem>>, vector<7x7x8x4xf32>,
    %c1_33 = arith.constant 1 : index
    %c2_34 = arith.constant 2 : index
    %c0_35 = arith.constant 0 : index
    %c0_36 = arith.constant 0 : index
    %40 = vector.load %arg1[%c1_33, %c2_34, %c0_35, %c0_36] : memref<16x16x8x4xf32, #tpu.memory_space<vmem>>, vector<14x14x8x4xf32>
    %41 = vector.shape_cast %40 : vector<14x14x8x4xf32> to vector<7x2x14x8x4xf32>
    %42 = vector.extract_strided_slice %41 {offsets = [0, 0, 0, 0, 0], sizes = [7, 1, 14, 8, 4], strides = [1, 1, 1, 1, 1]} : vector<7x2x14x8x4xf32> to vector<7x1x14x8x4xf32>
    %43 = vector.shape_cast %42 : vector<7x1x14x8x4xf32> to vector<7x14x8x4xf32>
    %44 = vector.shape_cast %43 : vector<7x14x8x4xf32> to vector<7x7x2x8x4xf32>
    %45 = vector.extract_strided_slice %44 {offsets = [0, 0, 0, 0, 0], sizes = [7, 7, 1, 8, 4], strides = [1, 1, 1, 1, 1]} : vector<7x7x2x8x4xf32> to vector<7x7x1x8x4xf32>
    %46 = vector.shape_cast %45 : vector<7x7x1x8x4xf32> to vector<7x7x8x4xf32>
    %c0_37 = arith.constant 0 : index
    %c0_38 = arith.constant 0 : index
    %c0_39 = arith.constant 0 : index
    %c20 = arith.constant 20 : index
    %47 = vector.load %arg11[%c0_37, %c0_38, %c0_39, %c20] : memref<7x7x8x36xf32, #tpu.memory_space<vmem>>, vector<7x7x8x4xf32>
    tpu.vector_store %arg11[%c0_37, %c0_38, %c0_39, %c20], %46 {strides = array<i32>} : memref<7x7x8x36xf32, #tpu.memory_space<vmem>>, vector<7x7x8x4xf32>,
    %c2_40 = arith.constant 2 : index
    %c0_41 = arith.constant 0 : index
    %c0_42 = arith.constant 0 : index
    %c0_43 = arith.constant 0 : index
    %48 = vector.load %arg1[%c2_40, %c0_41, %c0_42, %c0_43] : memref<16x16x8x4xf32, #tpu.memory_space<vmem>>, vector<14x14x8x4xf32>
    %49 = vector.shape_cast %48 : vector<14x14x8x4xf32> to vector<7x2x14x8x4xf32>
    %50 = vector.extract_strided_slice %49 {offsets = [0, 0, 0, 0, 0], sizes = [7, 1, 14, 8, 4], strides = [1, 1, 1, 1, 1]} : vector<7x2x14x8x4xf32> to vector<7x1x14x8x4xf32>
    %51 = vector.shape_cast %50 : vector<7x1x14x8x4xf32> to vector<7x14x8x4xf32>
    %52 = vector.shape_cast %51 : vector<7x14x8x4xf32> to vector<7x7x2x8x4xf32>
    %53 = vector.extract_strided_slice %52 {offsets = [0, 0, 0, 0, 0], sizes = [7, 7, 1, 8, 4], strides = [1, 1, 1, 1, 1]} : vector<7x7x2x8x4xf32> to vector<7x7x1x8x4xf32>
    %54 = vector.shape_cast %53 : vector<7x7x1x8x4xf32> to vector<7x7x8x4xf32>
    %c0_44 = arith.constant 0 : index
    %c0_45 = arith.constant 0 : index
    %c0_46 = arith.constant 0 : index
    %c24 = arith.constant 24 : index
    %55 = vector.load %arg11[%c0_44, %c0_45, %c0_46, %c24] : memref<7x7x8x36xf32, #tpu.memory_space<vmem>>, vector<7x7x8x4xf32>
    tpu.vector_store %arg11[%c0_44, %c0_45, %c0_46, %c24], %54 {strides = array<i32>} : memref<7x7x8x36xf32, #tpu.memory_space<vmem>>, vector<7x7x8x4xf32>,
    %c2_47 = arith.constant 2 : index
    %c1_48 = arith.constant 1 : index
    %c0_49 = arith.constant 0 : index
    %c0_50 = arith.constant 0 : index
    %56 = vector.load %arg1[%c2_47, %c1_48, %c0_49, %c0_50] : memref<16x16x8x4xf32, #tpu.memory_space<vmem>>, vector<14x14x8x4xf32>
    %57 = vector.shape_cast %56 : vector<14x14x8x4xf32> to vector<7x2x14x8x4xf32>
    %58 = vector.extract_strided_slice %57 {offsets = [0, 0, 0, 0, 0], sizes = [7, 1, 14, 8, 4], strides = [1, 1, 1, 1, 1]} : vector<7x2x14x8x4xf32> to vector<7x1x14x8x4xf32>
    %59 = vector.shape_cast %58 : vector<7x1x14x8x4xf32> to vector<7x14x8x4xf32>
    %60 = vector.shape_cast %59 : vector<7x14x8x4xf32> to vector<7x7x2x8x4xf32>
    %61 = vector.extract_strided_slice %60 {offsets = [0, 0, 0, 0, 0], sizes = [7, 7, 1, 8, 4], strides = [1, 1, 1, 1, 1]} : vector<7x7x2x8x4xf32> to vector<7x7x1x8x4xf32>
    %62 = vector.shape_cast %61 : vector<7x7x1x8x4xf32> to vector<7x7x8x4xf32>
    %c0_51 = arith.constant 0 : index
    %c0_52 = arith.constant 0 : index
    %c0_53 = arith.constant 0 : index
    %c28 = arith.constant 28 : index
    %63 = vector.load %arg11[%c0_51, %c0_52, %c0_53, %c28] : memref<7x7x8x36xf32, #tpu.memory_space<vmem>>, vector<7x7x8x4xf32>
    tpu.vector_store %arg11[%c0_51, %c0_52, %c0_53, %c28], %62 {strides = array<i32>} : memref<7x7x8x36xf32, #tpu.memory_space<vmem>>, vector<7x7x8x4xf32>,
    %c2_54 = arith.constant 2 : index
    %c2_55 = arith.constant 2 : index
    %c0_56 = arith.constant 0 : index
    %c0_57 = arith.constant 0 : index
    %64 = vector.load %arg1[%c2_54, %c2_55, %c0_56, %c0_57] : memref<16x16x8x4xf32, #tpu.memory_space<vmem>>, vector<14x14x8x4xf32>
    %65 = vector.shape_cast %64 : vector<14x14x8x4xf32> to vector<7x2x14x8x4xf32>
    %66 = vector.extract_strided_slice %65 {offsets = [0, 0, 0, 0, 0], sizes = [7, 1, 14, 8, 4], strides = [1, 1, 1, 1, 1]} : vector<7x2x14x8x4xf32> to vector<7x1x14x8x4xf32>
    %67 = vector.shape_cast %66 : vector<7x1x14x8x4xf32> to vector<7x14x8x4xf32>
    %68 = vector.shape_cast %67 : vector<7x14x8x4xf32> to vector<7x7x2x8x4xf32>
    %69 = vector.extract_strided_slice %68 {offsets = [0, 0, 0, 0, 0], sizes = [7, 7, 1, 8, 4], strides = [1, 1, 1, 1, 1]} : vector<7x7x2x8x4xf32> to vector<7x7x1x8x4xf32>
    %70 = vector.shape_cast %69 : vector<7x7x1x8x4xf32> to vector<7x7x8x4xf32>
    %c0_58 = arith.constant 0 : index
    %c0_59 = arith.constant 0 : index
    %c0_60 = arith.constant 0 : index
    %c32 = arith.constant 32 : index
    %71 = vector.load %arg11[%c0_58, %c0_59, %c0_60, %c32] : memref<7x7x8x36xf32, #tpu.memory_space<vmem>>, vector<7x7x8x4xf32>
    tpu.vector_store %arg11[%c0_58, %c0_59, %c0_60, %c32], %70 {strides = array<i32>} : memref<7x7x8x36xf32, #tpu.memory_space<vmem>>, vector<7x7x8x4xf32>,
    %c0_61 = arith.constant 0 : index
    %c0_62 = arith.constant 0 : index
    %c0_63 = arith.constant 0 : index
    %c0_64 = arith.constant 0 : index
    %72 = vector.load %arg11[%c0_61, %c0_62, %c0_63, %c0_64] : memref<7x7x8x36xf32, #tpu.memory_space<vmem>>, vector<7x7x8x36xf32>
    %73 = vector.shape_cast %72 : vector<7x7x8x36xf32> to vector<392x36xf32>
    %74 = arith.truncf %73 : vector<392x36xf32> to vector<392x36xbf16>
    %c0_65 = arith.constant 0 : index
    %c0_66 = arith.constant 0 : index
    %75 = vector.load %arg2[%c0_65, %c0_66] : memref<36x8xbf16, #tpu.memory_space<vmem>>, vector<36x8xbf16>
    %cst = arith.constant dense<0.000000e+00> : vector<392x8xf32>
    %76 = tpu.matmul %74, %75, %cst {dimension_numbers = #tpu.dot_dimension_numbers<[1], [0], [0], [1], [0, 0, 1, 1], [], []>} : vector<392x36xbf16>, vector<36x8xbf16>, vector<392x8xf32> -> vector<392x8xf32>
    %c0_67 = arith.constant 0 : index
    %c0_68 = arith.constant 0 : index
    %77 = vector.load %arg3[%c0_67, %c0_68] : memref<1x8xf32, #tpu.memory_space<vmem>>, vector<1x8xf32>
    %78 = vector.broadcast %77 : vector<1x8xf32> to vector<392x8xf32>
    %79 = arith.addf %76, %78 : vector<392x8xf32>
    %cst_69 = arith.constant 0.000000e+00 : f32
    %80 = vector.broadcast %cst_69 : f32 to vector<392x8xf32>
    %81 = arith.maximumf %79, %80 : vector<392x8xf32>
    %82 = vector.shape_cast %81 : vector<392x8xf32> to vector<7x7x8x8xf32>
    %83 = vector.extract_strided_slice %82 {offsets = [0, 0, 0, 0], sizes = [6, 6, 8, 8], strides = [1, 1, 1, 1]} : vector<7x7x8x8xf32> to vector<6x6x8x8xf32>
    %84 = vector.shape_cast %83 : vector<6x6x8x8xf32> to vector<3x2x6x8x8xf32>
    %85 = vector.extract_strided_slice %84 {offsets = [0, 0, 0, 0, 0], sizes = [3, 1, 6, 8, 8], strides = [1, 1, 1, 1, 1]} : vector<3x2x6x8x8xf32> to vector<3x1x6x8x8xf32>
    %86 = vector.shape_cast %85 : vector<3x1x6x8x8xf32> to vector<3x6x8x8xf32>
    %87 = vector.shape_cast %86 : vector<3x6x8x8xf32> to vector<3x3x2x8x8xf32>
    %88 = vector.extract_strided_slice %87 {offsets = [0, 0, 0, 0, 0], sizes = [3, 3, 1, 8, 8], strides = [1, 1, 1, 1, 1]} : vector<3x3x2x8x8xf32> to vector<3x3x1x8x8xf32>
    %89 = vector.shape_cast %88 : vector<3x3x1x8x8xf32> to vector<3x3x8x8xf32>
    %c0_70 = arith.constant 0 : index
    %c0_71 = arith.constant 0 : index
    %c0_72 = arith.constant 0 : index
    %c0_73 = arith.constant 0 : index
    %90 = vector.load %arg12[%c0_70, %c0_71, %c0_72, %c0_73] : memref<3x3x8x72xf32, #tpu.memory_space<vmem>>, vector<3x3x8x8xf32>
    tpu.vector_store %arg12[%c0_70, %c0_71, %c0_72, %c0_73], %89 {strides = array<i32>} : memref<3x3x8x72xf32, #tpu.memory_space<vmem>>, vector<3x3x8x8xf32>,
    %91 = vector.extract_strided_slice %82 {offsets = [0, 1, 0, 0], sizes = [6, 6, 8, 8], strides = [1, 1, 1, 1]} : vector<7x7x8x8xf32> to vector<6x6x8x8xf32>
    %92 = vector.shape_cast %91 : vector<6x6x8x8xf32> to vector<3x2x6x8x8xf32>
    %93 = vector.extract_strided_slice %92 {offsets = [0, 0, 0, 0, 0], sizes = [3, 1, 6, 8, 8], strides = [1, 1, 1, 1, 1]} : vector<3x2x6x8x8xf32> to vector<3x1x6x8x8xf32>
    %94 = vector.shape_cast %93 : vector<3x1x6x8x8xf32> to vector<3x6x8x8xf32>
    %95 = vector.shape_cast %94 : vector<3x6x8x8xf32> to vector<3x3x2x8x8xf32>
    %96 = vector.extract_strided_slice %95 {offsets = [0, 0, 0, 0, 0], sizes = [3, 3, 1, 8, 8], strides = [1, 1, 1, 1, 1]} : vector<3x3x2x8x8xf32> to vector<3x3x1x8x8xf32>
    %97 = vector.shape_cast %96 : vector<3x3x1x8x8xf32> to vector<3x3x8x8xf32>
    %c0_74 = arith.constant 0 : index
    %c0_75 = arith.constant 0 : index
    %c0_76 = arith.constant 0 : index
    %c8_77 = arith.constant 8 : index
    %98 = vector.load %arg12[%c0_74, %c0_75, %c0_76, %c8_77] : memref<3x3x8x72xf32, #tpu.memory_space<vmem>>, vector<3x3x8x8xf32>
    tpu.vector_store %arg12[%c0_74, %c0_75, %c0_76, %c8_77], %97 {strides = array<i32>} : memref<3x3x8x72xf32, #tpu.memory_space<vmem>>, vector<3x3x8x8xf32>,
    %99 = vector.extract_strided_slice %82 {offsets = [0, 2, 0, 0], sizes = [6, 5, 8, 8], strides = [1, 1, 1, 1]} : vector<7x7x8x8xf32> to vector<6x5x8x8xf32>
    %100 = vector.shape_cast %99 : vector<6x5x8x8xf32> to vector<3x2x5x8x8xf32>
    %101 = vector.extract_strided_slice %100 {offsets = [0, 0, 0, 0, 0], sizes = [3, 1, 5, 8, 8], strides = [1, 1, 1, 1, 1]} : vector<3x2x5x8x8xf32> to vector<3x1x5x8x8xf32>
    %102 = vector.shape_cast %101 : vector<3x1x5x8x8xf32> to vector<3x5x8x8xf32>
    %103 = vector.extract_strided_slice %102 {offsets = [0, 0, 0, 0], sizes = [3, 1, 8, 8], strides = [1, 1, 1, 1]} : vector<3x5x8x8xf32> to vector<3x1x8x8xf32>
    %104 = tpu.concatenate %102, %103 in 1 : vector<3x5x8x8xf32>, vector<3x1x8x8xf32> -> vector<3x6x8x8xf32>
    %105 = vector.shape_cast %104 : vector<3x6x8x8xf32> to vector<3x3x2x8x8xf32>
    %106 = vector.extract_strided_slice %105 {offsets = [0, 0, 0, 0, 0], sizes = [3, 3, 1, 8, 8], strides = [1, 1, 1, 1, 1]} : vector<3x3x2x8x8xf32> to vector<3x3x1x8x8xf32>
    %107 = vector.shape_cast %106 : vector<3x3x1x8x8xf32> to vector<3x3x8x8xf32>
    %c0_78 = arith.constant 0 : index
    %c0_79 = arith.constant 0 : index
    %c0_80 = arith.constant 0 : index
    %c16_81 = arith.constant 16 : index
    %108 = vector.load %arg12[%c0_78, %c0_79, %c0_80, %c16_81] : memref<3x3x8x72xf32, #tpu.memory_space<vmem>>, vector<3x3x8x8xf32>
    tpu.vector_store %arg12[%c0_78, %c0_79, %c0_80, %c16_81], %107 {strides = array<i32>} : memref<3x3x8x72xf32, #tpu.memory_space<vmem>>, vector<3x3x8x8xf32>,
    %109 = vector.extract_strided_slice %82 {offsets = [1, 0, 0, 0], sizes = [6, 6, 8, 8], strides = [1, 1, 1, 1]} : vector<7x7x8x8xf32> to vector<6x6x8x8xf32>
    %110 = vector.shape_cast %109 : vector<6x6x8x8xf32> to vector<3x2x6x8x8xf32>
    %111 = vector.extract_strided_slice %110 {offsets = [0, 0, 0, 0, 0], sizes = [3, 1, 6, 8, 8], strides = [1, 1, 1, 1, 1]} : vector<3x2x6x8x8xf32> to vector<3x1x6x8x8xf32>
    %112 = vector.shape_cast %111 : vector<3x1x6x8x8xf32> to vector<3x6x8x8xf32>
    %113 = vector.shape_cast %112 : vector<3x6x8x8xf32> to vector<3x3x2x8x8xf32>
    %114 = vector.extract_strided_slice %113 {offsets = [0, 0, 0, 0, 0], sizes = [3, 3, 1, 8, 8], strides = [1, 1, 1, 1, 1]} : vector<3x3x2x8x8xf32> to vector<3x3x1x8x8xf32>
    %115 = vector.shape_cast %114 : vector<3x3x1x8x8xf32> to vector<3x3x8x8xf32>
    %c0_82 = arith.constant 0 : index
    %c0_83 = arith.constant 0 : index
    %c0_84 = arith.constant 0 : index
    %c24_85 = arith.constant 24 : index
    %116 = vector.load %arg12[%c0_82, %c0_83, %c0_84, %c24_85] : memref<3x3x8x72xf32, #tpu.memory_space<vmem>>, vector<3x3x8x8xf32>
    tpu.vector_store %arg12[%c0_82, %c0_83, %c0_84, %c24_85], %115 {strides = array<i32>} : memref<3x3x8x72xf32, #tpu.memory_space<vmem>>, vector<3x3x8x8xf32>,
    %117 = vector.extract_strided_slice %82 {offsets = [1, 1, 0, 0], sizes = [6, 6, 8, 8], strides = [1, 1, 1, 1]} : vector<7x7x8x8xf32> to vector<6x6x8x8xf32>
    %118 = vector.shape_cast %117 : vector<6x6x8x8xf32> to vector<3x2x6x8x8xf32>
    %119 = vector.extract_strided_slice %118 {offsets = [0, 0, 0, 0, 0], sizes = [3, 1, 6, 8, 8], strides = [1, 1, 1, 1, 1]} : vector<3x2x6x8x8xf32> to vector<3x1x6x8x8xf32>
    %120 = vector.shape_cast %119 : vector<3x1x6x8x8xf32> to vector<3x6x8x8xf32>
    %121 = vector.shape_cast %120 : vector<3x6x8x8xf32> to vector<3x3x2x8x8xf32>
    %122 = vector.extract_strided_slice %121 {offsets = [0, 0, 0, 0, 0], sizes = [3, 3, 1, 8, 8], strides = [1, 1, 1, 1, 1]} : vector<3x3x2x8x8xf32> to vector<3x3x1x8x8xf32>
    %123 = vector.shape_cast %122 : vector<3x3x1x8x8xf32> to vector<3x3x8x8xf32>
    %c0_86 = arith.constant 0 : index
    %c0_87 = arith.constant 0 : index
    %c0_88 = arith.constant 0 : index
    %c32_89 = arith.constant 32 : index
    %124 = vector.load %arg12[%c0_86, %c0_87, %c0_88, %c32_89] : memref<3x3x8x72xf32, #tpu.memory_space<vmem>>, vector<3x3x8x8xf32>
    tpu.vector_store %arg12[%c0_86, %c0_87, %c0_88, %c32_89], %123 {strides = array<i32>} : memref<3x3x8x72xf32, #tpu.memory_space<vmem>>, vector<3x3x8x8xf32>,
    %125 = vector.extract_strided_slice %82 {offsets = [1, 2, 0, 0], sizes = [6, 5, 8, 8], strides = [1, 1, 1, 1]} : vector<7x7x8x8xf32> to vector<6x5x8x8xf32>
    %126 = vector.shape_cast %125 : vector<6x5x8x8xf32> to vector<3x2x5x8x8xf32>
    %127 = vector.extract_strided_slice %126 {offsets = [0, 0, 0, 0, 0], sizes = [3, 1, 5, 8, 8], strides = [1, 1, 1, 1, 1]} : vector<3x2x5x8x8xf32> to vector<3x1x5x8x8xf32>
    %128 = vector.shape_cast %127 : vector<3x1x5x8x8xf32> to vector<3x5x8x8xf32>
    %129 = vector.extract_strided_slice %128 {offsets = [0, 0, 0, 0], sizes = [3, 1, 8, 8], strides = [1, 1, 1, 1]} : vector<3x5x8x8xf32> to vector<3x1x8x8xf32>
    %130 = tpu.concatenate %128, %129 in 1 : vector<3x5x8x8xf32>, vector<3x1x8x8xf32> -> vector<3x6x8x8xf32>
    %131 = vector.shape_cast %130 : vector<3x6x8x8xf32> to vector<3x3x2x8x8xf32>
    %132 = vector.extract_strided_slice %131 {offsets = [0, 0, 0, 0, 0], sizes = [3, 3, 1, 8, 8], strides = [1, 1, 1, 1, 1]} : vector<3x3x2x8x8xf32> to vector<3x3x1x8x8xf32>
    %133 = vector.shape_cast %132 : vector<3x3x1x8x8xf32> to vector<3x3x8x8xf32>
    %c0_90 = arith.constant 0 : index
    %c0_91 = arith.constant 0 : index
    %c0_92 = arith.constant 0 : index
    %c40 = arith.constant 40 : index
    %134 = vector.load %arg12[%c0_90, %c0_91, %c0_92, %c40] : memref<3x3x8x72xf32, #tpu.memory_space<vmem>>, vector<3x3x8x8xf32>
    tpu.vector_store %arg12[%c0_90, %c0_91, %c0_92, %c40], %133 {strides = array<i32>} : memref<3x3x8x72xf32, #tpu.memory_space<vmem>>, vector<3x3x8x8xf32>,
    %135 = vector.extract_strided_slice %82 {offsets = [2, 0, 0, 0], sizes = [5, 6, 8, 8], strides = [1, 1, 1, 1]} : vector<7x7x8x8xf32> to vector<5x6x8x8xf32>
    %136 = vector.extract_strided_slice %135 {offsets = [0, 0, 0, 0], sizes = [1, 6, 8, 8], strides = [1, 1, 1, 1]} : vector<5x6x8x8xf32> to vector<1x6x8x8xf32>
    %137 = tpu.concatenate %135, %136 in 0 : vector<5x6x8x8xf32>, vector<1x6x8x8xf32> -> vector<6x6x8x8xf32>
    %138 = vector.shape_cast %137 : vector<6x6x8x8xf32> to vector<3x2x6x8x8xf32>
    %139 = vector.extract_strided_slice %138 {offsets = [0, 0, 0, 0, 0], sizes = [3, 1, 6, 8, 8], strides = [1, 1, 1, 1, 1]} : vector<3x2x6x8x8xf32> to vector<3x1x6x8x8xf32>
    %140 = vector.shape_cast %139 : vector<3x1x6x8x8xf32> to vector<3x6x8x8xf32>
    %141 = vector.shape_cast %140 : vector<3x6x8x8xf32> to vector<3x3x2x8x8xf32>
    %142 = vector.extract_strided_slice %141 {offsets = [0, 0, 0, 0, 0], sizes = [3, 3, 1, 8, 8], strides = [1, 1, 1, 1, 1]} : vector<3x3x2x8x8xf32> to vector<3x3x1x8x8xf32>
    %143 = vector.shape_cast %142 : vector<3x3x1x8x8xf32> to vector<3x3x8x8xf32>
    %c0_93 = arith.constant 0 : index
    %c0_94 = arith.constant 0 : index
    %c0_95 = arith.constant 0 : index
    %c48 = arith.constant 48 : index
    %144 = vector.load %arg12[%c0_93, %c0_94, %c0_95, %c48] : memref<3x3x8x72xf32, #tpu.memory_space<vmem>>, vector<3x3x8x8xf32>
    tpu.vector_store %arg12[%c0_93, %c0_94, %c0_95, %c48], %143 {strides = array<i32>} : memref<3x3x8x72xf32, #tpu.memory_space<vmem>>, vector<3x3x8x8xf32>,
    %145 = vector.extract_strided_slice %82 {offsets = [2, 1, 0, 0], sizes = [5, 6, 8, 8], strides = [1, 1, 1, 1]} : vector<7x7x8x8xf32> to vector<5x6x8x8xf32>
    %146 = vector.extract_strided_slice %145 {offsets = [0, 0, 0, 0], sizes = [1, 6, 8, 8], strides = [1, 1, 1, 1]} : vector<5x6x8x8xf32> to vector<1x6x8x8xf32>
    %147 = tpu.concatenate %145, %146 in 0 : vector<5x6x8x8xf32>, vector<1x6x8x8xf32> -> vector<6x6x8x8xf32>
    %148 = vector.shape_cast %147 : vector<6x6x8x8xf32> to vector<3x2x6x8x8xf32>
    %149 = vector.extract_strided_slice %148 {offsets = [0, 0, 0, 0, 0], sizes = [3, 1, 6, 8, 8], strides = [1, 1, 1, 1, 1]} : vector<3x2x6x8x8xf32> to vector<3x1x6x8x8xf32>
    %150 = vector.shape_cast %149 : vector<3x1x6x8x8xf32> to vector<3x6x8x8xf32>
    %151 = vector.shape_cast %150 : vector<3x6x8x8xf32> to vector<3x3x2x8x8xf32>
    %152 = vector.extract_strided_slice %151 {offsets = [0, 0, 0, 0, 0], sizes = [3, 3, 1, 8, 8], strides = [1, 1, 1, 1, 1]} : vector<3x3x2x8x8xf32> to vector<3x3x1x8x8xf32>
    %153 = vector.shape_cast %152 : vector<3x3x1x8x8xf32> to vector<3x3x8x8xf32>
    %c0_96 = arith.constant 0 : index
    %c0_97 = arith.constant 0 : index
    %c0_98 = arith.constant 0 : index
    %c56 = arith.constant 56 : index
    %154 = vector.load %arg12[%c0_96, %c0_97, %c0_98, %c56] : memref<3x3x8x72xf32, #tpu.memory_space<vmem>>, vector<3x3x8x8xf32>
    tpu.vector_store %arg12[%c0_96, %c0_97, %c0_98, %c56], %153 {strides = array<i32>} : memref<3x3x8x72xf32, #tpu.memory_space<vmem>>, vector<3x3x8x8xf32>,
    %155 = vector.extract_strided_slice %82 {offsets = [2, 2, 0, 0], sizes = [5, 5, 8, 8], strides = [1, 1, 1, 1]} : vector<7x7x8x8xf32> to vector<5x5x8x8xf32>
    %156 = vector.extract_strided_slice %155 {offsets = [0, 0, 0, 0], sizes = [1, 5, 8, 8], strides = [1, 1, 1, 1]} : vector<5x5x8x8xf32> to vector<1x5x8x8xf32>
    %157 = tpu.concatenate %155, %156 in 0 : vector<5x5x8x8xf32>, vector<1x5x8x8xf32> -> vector<6x5x8x8xf32>
    %158 = vector.shape_cast %157 : vector<6x5x8x8xf32> to vector<3x2x5x8x8xf32>
    %159 = vector.extract_strided_slice %158 {offsets = [0, 0, 0, 0, 0], sizes = [3, 1, 5, 8, 8], strides = [1, 1, 1, 1, 1]} : vector<3x2x5x8x8xf32> to vector<3x1x5x8x8xf32>
    %160 = vector.shape_cast %159 : vector<3x1x5x8x8xf32> to vector<3x5x8x8xf32>
    %161 = vector.extract_strided_slice %160 {offsets = [0, 0, 0, 0], sizes = [3, 1, 8, 8], strides = [1, 1, 1, 1]} : vector<3x5x8x8xf32> to vector<3x1x8x8xf32>
    %162 = tpu.concatenate %160, %161 in 1 : vector<3x5x8x8xf32>, vector<3x1x8x8xf32> -> vector<3x6x8x8xf32>
    %163 = vector.shape_cast %162 : vector<3x6x8x8xf32> to vector<3x3x2x8x8xf32>
    %164 = vector.extract_strided_slice %163 {offsets = [0, 0, 0, 0, 0], sizes = [3, 3, 1, 8, 8], strides = [1, 1, 1, 1, 1]} : vector<3x3x2x8x8xf32> to vector<3x3x1x8x8xf32>
    %165 = vector.shape_cast %164 : vector<3x3x1x8x8xf32> to vector<3x3x8x8xf32>
    %c0_99 = arith.constant 0 : index
    %c0_100 = arith.constant 0 : index
    %c0_101 = arith.constant 0 : index
    %c64 = arith.constant 64 : index
    %166 = vector.load %arg12[%c0_99, %c0_100, %c0_101, %c64] : memref<3x3x8x72xf32, #tpu.memory_space<vmem>>, vector<3x3x8x8xf32>
    tpu.vector_store %arg12[%c0_99, %c0_100, %c0_101, %c64], %165 {strides = array<i32>} : memref<3x3x8x72xf32, #tpu.memory_space<vmem>>, vector<3x3x8x8xf32>,
    %c0_102 = arith.constant 0 : index
    %c0_103 = arith.constant 0 : index
    %c0_104 = arith.constant 0 : index
    %c0_105 = arith.constant 0 : index
    %167 = vector.load %arg12[%c0_102, %c0_103, %c0_104, %c0_105] : memref<3x3x8x72xf32, #tpu.memory_space<vmem>>, vector<3x3x8x72xf32>
    %168 = vector.shape_cast %167 : vector<3x3x8x72xf32> to vector<72x72xf32>
    %169 = arith.truncf %168 : vector<72x72xf32> to vector<72x72xbf16>
    %c0_106 = arith.constant 0 : index
    %c0_107 = arith.constant 0 : index
    %170 = vector.load %arg4[%c0_106, %c0_107] : memref<72x8xbf16, #tpu.memory_space<vmem>>, vector<72x8xbf16>
    %cst_108 = arith.constant dense<0.000000e+00> : vector<72x8xf32>
    %171 = tpu.matmul %169, %170, %cst_108 {dimension_numbers = #tpu.dot_dimension_numbers<[1], [0], [0], [1], [0, 0, 1, 1], [], []>} : vector<72x72xbf16>, vector<72x8xbf16>, vector<72x8xf32> -> vector<72x8xf32>
    %c0_109 = arith.constant 0 : index
    %c0_110 = arith.constant 0 : index
    %172 = vector.load %arg5[%c0_109, %c0_110] : memref<1x8xf32, #tpu.memory_space<vmem>>, vector<1x8xf32>
    %173 = vector.broadcast %172 : vector<1x8xf32> to vector<72x8xf32>
    %174 = arith.addf %171, %173 : vector<72x8xf32>
    %cst_111 = arith.constant 0.000000e+00 : f32
    %175 = vector.broadcast %cst_111 : f32 to vector<72x8xf32>
    %176 = arith.maximumf %174, %175 : vector<72x8xf32>
    %177 = vector.shape_cast %176 : vector<72x8xf32> to vector<3x3x8x8xf32>
    %178 = arith.truncf %177 : vector<3x3x8x8xf32> to vector<3x3x8x8xbf16>
    %c0_112 = arith.constant 0 : index
    %c0_113 = arith.constant 0 : index
    %179 = vector.load %arg6[%c0_112, %c0_113] : memref<72x32xbf16, #tpu.memory_space<vmem>>, vector<72x32xbf16>
    %cst_114 = arith.constant 0.000000e+00 : f32
    %180 = vector.broadcast %cst_114 : f32 to vector<8x32xf32>
    %181 = vector.extract_strided_slice %178 {offsets = [0, 0, 0, 0], sizes = [1, 1, 8, 8], strides = [1, 1, 1, 1]} : vector<3x3x8x8xbf16> to vector<1x1x8x8xbf16>
    %182 = vector.shape_cast %181 : vector<1x1x8x8xbf16> to vector<8x8xbf16>
    %183 = vector.extract_strided_slice %179 {offsets = [0, 0], sizes = [8, 32], strides = [1, 1]} : vector<72x32xbf16> to vector<8x32xbf16>
    %cst_115 = arith.constant dense<0.000000e+00> : vector<8x32xf32>
    %184 = tpu.matmul %182, %183, %cst_115 {dimension_numbers = #tpu.dot_dimension_numbers<[1], [0], [0], [1], [0, 0, 1, 1], [], []>} : vector<8x8xbf16>, vector<8x32xbf16>, vector<8x32xf32> -> vector<8x32xf32>
    %185 = arith.addf %180, %184 : vector<8x32xf32>
    %186 = vector.extract_strided_slice %178 {offsets = [0, 1, 0, 0], sizes = [1, 1, 8, 8], strides = [1, 1, 1, 1]} : vector<3x3x8x8xbf16> to vector<1x1x8x8xbf16>
    %187 = vector.shape_cast %186 : vector<1x1x8x8xbf16> to vector<8x8xbf16>
    %188 = vector.extract_strided_slice %179 {offsets = [8, 0], sizes = [8, 32], strides = [1, 1]} : vector<72x32xbf16> to vector<8x32xbf16>
    %cst_116 = arith.constant dense<0.000000e+00> : vector<8x32xf32>
    %189 = tpu.matmul %187, %188, %cst_116 {dimension_numbers = #tpu.dot_dimension_numbers<[1], [0], [0], [1], [0, 0, 1, 1], [], []>} : vector<8x8xbf16>, vector<8x32xbf16>, vector<8x32xf32> -> vector<8x32xf32>
    %190 = arith.addf %185, %189 : vector<8x32xf32>
    %191 = vector.extract_strided_slice %178 {offsets = [0, 2, 0, 0], sizes = [1, 1, 8, 8], strides = [1, 1, 1, 1]} : vector<3x3x8x8xbf16> to vector<1x1x8x8xbf16>
    %192 = vector.shape_cast %191 : vector<1x1x8x8xbf16> to vector<8x8xbf16>
    %193 = vector.extract_strided_slice %179 {offsets = [16, 0], sizes = [8, 32], strides = [1, 1]} : vector<72x32xbf16> to vector<8x32xbf16>
    %cst_117 = arith.constant dense<0.000000e+00> : vector<8x32xf32>
    %194 = tpu.matmul %192, %193, %cst_117 {dimension_numbers = #tpu.dot_dimension_numbers<[1], [0], [0], [1], [0, 0, 1, 1], [], []>} : vector<8x8xbf16>, vector<8x32xbf16>, vector<8x32xf32> -> vector<8x32xf32>
    %195 = arith.addf %190, %194 : vector<8x32xf32>
    %196 = vector.extract_strided_slice %178 {offsets = [1, 0, 0, 0], sizes = [1, 1, 8, 8], strides = [1, 1, 1, 1]} : vector<3x3x8x8xbf16> to vector<1x1x8x8xbf16>
    %197 = vector.shape_cast %196 : vector<1x1x8x8xbf16> to vector<8x8xbf16>
    %198 = vector.extract_strided_slice %179 {offsets = [24, 0], sizes = [8, 32], strides = [1, 1]} : vector<72x32xbf16> to vector<8x32xbf16>
    %cst_118 = arith.constant dense<0.000000e+00> : vector<8x32xf32>
    %199 = tpu.matmul %197, %198, %cst_118 {dimension_numbers = #tpu.dot_dimension_numbers<[1], [0], [0], [1], [0, 0, 1, 1], [], []>} : vector<8x8xbf16>, vector<8x32xbf16>, vector<8x32xf32> -> vector<8x32xf32>
    %200 = arith.addf %195, %199 : vector<8x32xf32>
    %201 = vector.extract_strided_slice %178 {offsets = [1, 1, 0, 0], sizes = [1, 1, 8, 8], strides = [1, 1, 1, 1]} : vector<3x3x8x8xbf16> to vector<1x1x8x8xbf16>
    %202 = vector.shape_cast %201 : vector<1x1x8x8xbf16> to vector<8x8xbf16>
    %203 = vector.extract_strided_slice %179 {offsets = [32, 0], sizes = [8, 32], strides = [1, 1]} : vector<72x32xbf16> to vector<8x32xbf16>
    %cst_119 = arith.constant dense<0.000000e+00> : vector<8x32xf32>
    %204 = tpu.matmul %202, %203, %cst_119 {dimension_numbers = #tpu.dot_dimension_numbers<[1], [0], [0], [1], [0, 0, 1, 1], [], []>} : vector<8x8xbf16>, vector<8x32xbf16>, vector<8x32xf32> -> vector<8x32xf32>
    %205 = arith.addf %200, %204 : vector<8x32xf32>
    %206 = vector.extract_strided_slice %178 {offsets = [1, 2, 0, 0], sizes = [1, 1, 8, 8], strides = [1, 1, 1, 1]} : vector<3x3x8x8xbf16> to vector<1x1x8x8xbf16>
    %207 = vector.shape_cast %206 : vector<1x1x8x8xbf16> to vector<8x8xbf16>
    %208 = vector.extract_strided_slice %179 {offsets = [40, 0], sizes = [8, 32], strides = [1, 1]} : vector<72x32xbf16> to vector<8x32xbf16>
    %cst_120 = arith.constant dense<0.000000e+00> : vector<8x32xf32>
    %209 = tpu.matmul %207, %208, %cst_120 {dimension_numbers = #tpu.dot_dimension_numbers<[1], [0], [0], [1], [0, 0, 1, 1], [], []>} : vector<8x8xbf16>, vector<8x32xbf16>, vector<8x32xf32> -> vector<8x32xf32>
    %210 = arith.addf %205, %209 : vector<8x32xf32>
    %211 = vector.extract_strided_slice %178 {offsets = [2, 0, 0, 0], sizes = [1, 1, 8, 8], strides = [1, 1, 1, 1]} : vector<3x3x8x8xbf16> to vector<1x1x8x8xbf16>
    %212 = vector.shape_cast %211 : vector<1x1x8x8xbf16> to vector<8x8xbf16>
    %213 = vector.extract_strided_slice %179 {offsets = [48, 0], sizes = [8, 32], strides = [1, 1]} : vector<72x32xbf16> to vector<8x32xbf16>
    %cst_121 = arith.constant dense<0.000000e+00> : vector<8x32xf32>
    %214 = tpu.matmul %212, %213, %cst_121 {dimension_numbers = #tpu.dot_dimension_numbers<[1], [0], [0], [1], [0, 0, 1, 1], [], []>} : vector<8x8xbf16>, vector<8x32xbf16>, vector<8x32xf32> -> vector<8x32xf32>
    %215 = arith.addf %210, %214 : vector<8x32xf32>
    %216 = vector.extract_strided_slice %178 {offsets = [2, 1, 0, 0], sizes = [1, 1, 8, 8], strides = [1, 1, 1, 1]} : vector<3x3x8x8xbf16> to vector<1x1x8x8xbf16>
    %217 = vector.shape_cast %216 : vector<1x1x8x8xbf16> to vector<8x8xbf16>
    %218 = vector.extract_strided_slice %179 {offsets = [56, 0], sizes = [8, 32], strides = [1, 1]} : vector<72x32xbf16> to vector<8x32xbf16>
    %cst_122 = arith.constant dense<0.000000e+00> : vector<8x32xf32>
    %219 = tpu.matmul %217, %218, %cst_122 {dimension_numbers = #tpu.dot_dimension_numbers<[1], [0], [0], [1], [0, 0, 1, 1], [], []>} : vector<8x8xbf16>, vector<8x32xbf16>, vector<8x32xf32> -> vector<8x32xf32>
    %220 = arith.addf %215, %219 : vector<8x32xf32>
    %221 = vector.extract_strided_slice %178 {offsets = [2, 2, 0, 0], sizes = [1, 1, 8, 8], strides = [1, 1, 1, 1]} : vector<3x3x8x8xbf16> to vector<1x1x8x8xbf16>
    %222 = vector.shape_cast %221 : vector<1x1x8x8xbf16> to vector<8x8xbf16>
    %223 = vector.extract_strided_slice %179 {offsets = [64, 0], sizes = [8, 32], strides = [1, 1]} : vector<72x32xbf16> to vector<8x32xbf16>
    %cst_123 = arith.constant dense<0.000000e+00> : vector<8x32xf32>
    %224 = tpu.matmul %222, %223, %cst_123 {dimension_numbers = #tpu.dot_dimension_numbers<[1], [0], [0], [1], [0, 0, 1, 1], [], []>} : vector<8x8xbf16>, vector<8x32xbf16>, vector<8x32xf32> -> vector<8x32xf32>
    %225 = arith.addf %220, %224 : vector<8x32xf32>
    %c0_124 = arith.constant 0 : index
    %c0_125 = arith.constant 0 : index
    %226 = vector.load %arg7[%c0_124, %c0_125] : memref<1x32xf32, #tpu.memory_space<vmem>>, vector<1x32xf32>
    %227 = vector.broadcast %226 : vector<1x32xf32> to vector<8x32xf32>
    %228 = arith.addf %225, %227 : vector<8x32xf32>
    %cst_126 = arith.constant dense<0.000000e+00> : vector<8xf32>
    %229 = vector.multi_reduction <add>, %228, %cst_126 [1] : vector<8x32xf32> to vector<8xf32>
    %230 = vector.shape_cast %229 : vector<8xf32> to vector<8x1xf32>
    %cst_127 = arith.constant 3.200000e+01 : f32
    %231 = vector.broadcast %cst_127 : f32 to vector<8x1xf32>
    %232 = arith.divf %230, %231 : vector<8x1xf32>
    %233 = vector.broadcast %232 : vector<8x1xf32> to vector<8x32xf32>
    %234 = arith.subf %228, %233 : vector<8x32xf32>
    %235 = arith.mulf %234, %234 : vector<8x32xf32>
    %cst_128 = arith.constant dense<0.000000e+00> : vector<8xf32>
    %236 = vector.multi_reduction <add>, %235, %cst_128 [1] : vector<8x32xf32> to vector<8xf32>
    %237 = vector.shape_cast %236 : vector<8xf32> to vector<8x1xf32>
    %cst_129 = arith.constant 3.200000e+01 : f32
    %238 = vector.broadcast %cst_129 : f32 to vector<8x1xf32>
    %239 = arith.divf %237, %238 : vector<8x1xf32>
    %240 = vector.broadcast %232 : vector<8x1xf32> to vector<8x32xf32>
    %241 = arith.subf %228, %240 : vector<8x32xf32>
    %cst_130 = arith.constant 9.99999974E-6 : f32
    %242 = vector.broadcast %cst_130 : f32 to vector<8x1xf32>
    %243 = arith.addf %239, %242 : vector<8x1xf32>
    %244 = math.rsqrt %243 : vector<8x1xf32>
    %245 = vector.broadcast %244 : vector<8x1xf32> to vector<8x32xf32>
    %246 = arith.mulf %241, %245 : vector<8x32xf32>
    %c0_131 = arith.constant 0 : index
    %c0_132 = arith.constant 0 : index
    %247 = vector.load %arg8[%c0_131, %c0_132] : memref<1x32xf32, #tpu.memory_space<vmem>>, vector<1x32xf32>
    %248 = vector.broadcast %247 : vector<1x32xf32> to vector<8x32xf32>
    %249 = arith.mulf %246, %248 : vector<8x32xf32>
    %c0_133 = arith.constant 0 : index
    %c0_134 = arith.constant 0 : index
    %250 = vector.load %arg9[%c0_133, %c0_134] : memref<1x32xf32, #tpu.memory_space<vmem>>, vector<1x32xf32>
    %251 = vector.broadcast %250 : vector<1x32xf32> to vector<8x32xf32>
    %252 = arith.addf %249, %251 : vector<8x32xf32>
    %253 = math.tanh %252 : vector<8x32xf32>
    %c0_135 = arith.constant 0 : index
    %c0_136 = arith.constant 0 : index
    %254 = vector.load %arg10[%c0_135, %c0_136] : memref<8x32xf32, #tpu.memory_space<vmem>>, vector<8x32xf32>
    tpu.vector_store %arg10[%c0_135, %c0_136], %253 {strides = array<i32>} : memref<8x32xf32, #tpu.memory_space<vmem>>, vector<8x32xf32>,
    return
  }
  func.func @transform_0(%arg0: i32) -> (i32, i32, i32, i32) {
    %c0_i32 = arith.constant 0 : i32
    %c0_i32_0 = arith.constant 0 : i32
    %c0_i32_1 = arith.constant 0 : i32
    %c0_i32_2 = arith.constant 0 : i32
    return %c0_i32, %c0_i32_0, %arg0, %c0_i32_1 : i32, i32, i32, i32
  }
  func.func @transform_1(%arg0: i32) -> (i32, i32) {
    %c0_i32 = arith.constant 0 : i32
    %c0_i32_0 = arith.constant 0 : i32
    %c0_i32_1 = arith.constant 0 : i32
    return %c0_i32, %c0_i32_0 : i32, i32
  }
  func.func @transform_2(%arg0: i32) -> (i32, i32) {
    %c0_i32 = arith.constant 0 : i32
    %c0_i32_0 = arith.constant 0 : i32
    %c0_i32_1 = arith.constant 0 : i32
    return %c0_i32, %c0_i32_0 : i32, i32
  }
  func.func @transform_3(%arg0: i32) -> (i32, i32) {
    %c0_i32 = arith.constant 0 : i32
    %c0_i32_0 = arith.constant 0 : i32
    %c0_i32_1 = arith.constant 0 : i32
    return %c0_i32, %c0_i32_0 : i32, i32
  }
  func.func @transform_4(%arg0: i32) -> (i32, i32) {
    %c0_i32 = arith.constant 0 : i32
    %c0_i32_0 = arith.constant 0 : i32
    %c0_i32_1 = arith.constant 0 : i32
    return %c0_i32, %c0_i32_0 : i32, i32
  }
  func.func @transform_5(%arg0: i32) -> (i32, i32) {
    %c0_i32 = arith.constant 0 : i32
    %c0_i32_0 = arith.constant 0 : i32
    %c0_i32_1 = arith.constant 0 : i32
    return %c0_i32, %c0_i32_0 : i32, i32
  }
  func.func @transform_6(%arg0: i32) -> (i32, i32) {
    %c0_i32 = arith.constant 0 : i32
    %c0_i32_0 = arith.constant 0 : i32
    %c0_i32_1 = arith.constant 0 : i32
    return %c0_i32, %c0_i32_0 : i32, i32
  }
  func.func @transform_7(%arg0: i32) -> (i32, i32) {
    %c0_i32 = arith.constant 0 : i32
    %c0_i32_0 = arith.constant 0 : i32
    %c0_i32_1 = arith.constant 0 : i32
    return %c0_i32, %c0_i32_0 : i32, i32
  }
  func.func @transform_8(%arg0: i32) -> (i32, i32) {
    %c0_i32 = arith.constant 0 : i32
    %c0_i32_0 = arith.constant 0 : i32
    %c0_i32_1 = arith.constant 0 : i32
    return %c0_i32, %c0_i32_0 : i32, i32
  }
  func.func @transform_9(%arg0: i32) -> (i32, i32) {
    %c0_i32 = arith.constant 0 : i32
    %c0_i32_0 = arith.constant 0 : i32
    return %arg0, %c0_i32 : i32, i32
  }
}

</mosaic_0001>

<bundles_post_ra>
// kernel: forward.1
= control target key start
LH: loop header
LB: loop body
LE: loop exit
PB: predicated region body
PF: predicated region fallthrough
CT: control target
= control target key end

     0   :  { %s4072_s15 = smov 4   ;;  %vm82_vm0 = vcmask 31744   ;;  %vm378_vm1 = vcmask 64544   ;;  %s4073_s30 = smov 8   ;;  %vm674_vm2 = vcmask 97344   ;;  %vm970_vm3 = vcmask 130144   ;;  %s6746_s0 = inlined_call_operand.vmem [shape: f32[16,16,8,4], index: 0, kind: input, shape index: {}]   ;;  %s6747_s1 = inlined_call_operand.vmem [shape: bf16[36,8], index: 1, kind: input, shape index: {}]   ;;  %s6748_s2 = inlined_call_operand.vmem [shape: f32[1,8], index: 2, kind: input, shape index: {}]   ;;  %s6749_s3 = inlined_call_operand.vmem [shape: bf16[72,8], index: 3, kind: input, shape index: {}]   ;;  %s6750_s4 = inlined_call_operand.vmem [shape: f32[1,8], index: 4, kind: input, shape index: {}]   ;;  %s6751_s5 = inlined_call_operand.vmem [shape: bf16[72,32], index: 5, kind: input, shape index: {}]   ;;  %s6752_s6 = inlined_call_operand.vmem [shape: f32[1,32], index: 6, kind: input, shape index: {}]   ;;  %s6753_s7 = inlined_call_operand.vmem [shape: f32[1,32], index: 7, kind: input, shape index: {}]   ;;  %s6754_s8 = inlined_call_operand.vmem [shape: f32[1,32], index: 8, kind: input, shape index: {}]   ;;  %s6755_s9 = inlined_call_operand.vmem [shape: f32[8,32], index: 9, kind: output, shape index: {}]  }
   0x1   :  { %v3581_v0 = vld [vmem:[%s6746_s0 + $0x48] sm:$0xff]  ;;  %v3582_v3 = vld [vmem:[%s6746_s0 + $0x58] sm:$0xff]  ;;  %v4234_v24 = vld [vmem:[%s6746_s0 + $0x40] sm:$0xff]  ;;  %s4074_s22 = smov 12   ;;  %vm1266_vm4 = vcmask 162944   ;;  %s4076_s16 = smov 20  }
   0x2   :  { %v3579_v1 = vld [vmem:[%s6746_s0 + $0x28] sm:$0xff]  ;;  %239 = vrot.lane.b32.xlu2 %v3581_v0, %s4072_s15  ;;  %v3580_v4 = vld [vmem:[%s6746_s0 + $0x38] sm:$0xff]  ;;  %87 = vst.msk [vmem:[#allocation2 + $0x20] sm:$0xff] %vm82_vm0, %v4234_v24  ;;  %v4253_v28 = vld [vmem:[%s6746_s0 + $0x50] sm:$0xff]  ;;  %s4077_s21 = smov 24   ;;  %s4078_s27 = smov 32  }
   0x3   :  { %v3577_v2 = vld [vmem:[%s6746_s0 + $0x8] sm:$0xff]  ;;  %235 = vrot.lane.b32.xlu1 %v3579_v1, %s4072_s15  ;;  %v3578_v5 = vld [vmem:[%s6746_s0 + $0x18] sm:$0xff]  ;;  %88 = vst.msk [vmem:[#allocation2 + $0x28] sm:$0xff] %vm82_vm0, %v4253_v28  ;;  %v4272_v32 = vld [vmem:[%s6746_s0 + $0x110] sm:$0xff]  ;;  %s4079_s28 = smov 28   ;;  %vm1562_vm5 = vcmask 195744  }
   0x4   :  { %231 = vrot.lane.b32.xlu0 %v3577_v2, %s4072_s15  ;;  %v3585_v6 = vld [vmem:[%s6746_s0 + $0x118] sm:$0xff]  ;;  %v3584_v7 = vld [vmem:[%s6746_s0 + $0x108] sm:$0xff]  ;;  %91 = vst.msk [vmem:[#allocation2 + $0x40] sm:$0xff] %vm82_vm0, %v4272_v32  ;;  %v4291_v36 = vld [vmem:[%s6746_s0 + $0x140] sm:$0xff]  ;;  %vm2674_vm6 = vcmask 1041408   ;;  %vm1858_vm7 = vcmask 228544  }
   0x5   :  { %v3583_v8 = vld [vmem:[%s6746_s0 + $0x68] sm:$0xff]  ;;  %v3587_v10 = vld [vmem:[%s6746_s0 + $0x138] sm:$0xff]  ;;  %v4296_v37 = vld [vmem:[%s6746_s0 + $0x20] sm:$0xff]  ;;  %94 = vst.msk [vmem:[#allocation2 + $0x58] sm:$0xff] %vm82_vm0, %v4291_v36  ;;  %vm2154_vm8 = vcmask 261344   ;;  %vm2450_vm9 = vcmask 294144  }
   0x6   :  { %v3588_v9 = vld [vmem:[%s6746_s0 + $0x148] sm:$0xff]  ;;  %v3589_v14 = vld [vmem:[%s6746_s0 + $0x158] sm:$0xff]  ;;  %v33_v38 = vld [vmem:[%s6746_s0] sm:$0xff]  ;;  %85 = vst.msk [vmem:[#allocation2 + $0x10] sm:$0xff] %vm82_vm0, %v4296_v37  ;;  %vm2598_vm10 = vcmask 293888   ;;  %vm2860_vm11 = vcmask 64512  }
   0x7   :  { %v3586_v11 = vld [vmem:[%s6746_s0 + $0x128] sm:$0xff]  ;;  %v3594_v15 = vld [vmem:[%s6746_s0 + $0x238] sm:$0xff]  ;;  %83 = vst.msk [vmem:[#allocation2] sm:$0xff] %vm82_vm0, %v33_v38  ;;  %v47_v43 = vld [vmem:[%s6746_s0 + $0x200] sm:$0xff]  ;;  %s4081_s18 = smov 56   ;;  %s4082_s19 = smov 48  }
   0x8   :  { %v3591_v12 = vld [vmem:[%s6746_s0 + $0x208] sm:$0xff]  ;;  %v3592_v17 = vld [vmem:[%s6746_s0 + $0x218] sm:$0xff]  ;;  %v4325_v44 = vld [vmem:[%s6746_s0 + $0x30] sm:$0xff]  ;;  %97 = vst.msk [vmem:[#allocation2 + $0x70] sm:$0xff] %vm82_vm0, %v47_v43  ;;  %vm2906_vm12 = vcmask 130112   ;;  %vm3284_vm13 = vcmask 1043456  }
   0x9   :  { %v3590_v13 = vld [vmem:[%s6746_s0 + $0x168] sm:$0xff]  ;;  %v3596_v19 = vld [vmem:[%s6746_s0 + $0x258] sm:$0xff]  ;;  %v4330_v45 = vld [vmem:[%s6746_s0 + $0x10] sm:$0xff]  ;;  %86 = vst.msk [vmem:[#allocation2 + $0x18] sm:$0xff] %vm82_vm0, %v4325_v44  ;;  %vm2952_vm14 = vcmask 195712   ;;  %vm2998_vm15 = vcmask 261312  }
   0xa   :  { %241 = vrot.lane.b32.xlu2 %v3582_v3, %s4072_s15  ;;  %v3593_v16 = vld [vmem:[%s6746_s0 + $0x228] sm:$0xff]  ;;  %v3599_v22 = vld [vmem:[%s6746_s0 + $0x318] sm:$0xff]  ;;  %84 = vst.msk [vmem:[#allocation2 + $0x8] sm:$0xff] %vm82_vm0, %v4330_v45  ;;  %v4352_v50 = vld [vmem:[%s6746_s0 + $0x230] sm:$0xff] }
   0xb   :  { %237 = vrot.lane.b32.xlu1 %v3580_v4, %s4072_s15  ;;  %v3597_v18 = vld [vmem:[%s6746_s0 + $0x268] sm:$0xff]  ;;  %v3603_v25 = vld [vmem:[%s6746_s0 + $0x358] sm:$0xff]  ;;  %v40_v51 = vld [vmem:[%s6746_s0 + $0x100] sm:$0xff]  ;;  %100 = vst.msk [vmem:[#allocation2 + $0x88] sm:$0xff] %vm82_vm0, %v4352_v50 }
   0xc   :  { %233 = vrot.lane.b32.xlu0 %v3578_v5, %s4072_s15  ;;  %v3595_v20 = vld [vmem:[%s6746_s0 + $0x248] sm:$0xff]  ;;  %v3601_v27 = vld [vmem:[%s6746_s0 + $0x338] sm:$0xff]  ;;  %v4361_v52 = vld [vmem:[%s6746_s0 + $0x60] sm:$0xff]  ;;  %90 = vst.msk [vmem:[#allocation2 + $0x38] sm:$0xff] %vm82_vm0, %v40_v51 }
   0xd   :  { %v3600_v21 = vld [vmem:[%s6746_s0 + $0x328] sm:$0xff]  ;;  %v3606_v29 = vld [vmem:[%s6746_s0 + $0x418] sm:$0xff]  ;;  %89 = vst.msk [vmem:[#allocation2 + $0x30] sm:$0xff] %vm82_vm0, %v4361_v52  ;;  %v4383_v57 = vld [vmem:[%s6746_s0 + $0x260] sm:$0xff] }
   0xe   :  { %v3598_v23 = vld [vmem:[%s6746_s0 + $0x308] sm:$0xff]  ;;  %v3608_v34 = vld [vmem:[%s6746_s0 + $0x438] sm:$0xff]  ;;  %v4389_v58 = vld [vmem:[%s6746_s0 + $0x130] sm:$0xff]  ;;  %103 = vst.msk [vmem:[#allocation2 + $0xa0] sm:$0xff] %vm82_vm0, %v4383_v57 }
   0xf   :  { %v3602_v26 = vld [vmem:[%s6746_s0 + $0x348] sm:$0xff]  ;;  %v3610_v41 = vld [vmem:[%s6746_s0 + $0x458] sm:$0xff]  ;;  %v4394_v59 = vld [vmem:[%s6746_s0 + $0x120] sm:$0xff]  ;;  %93 = vst.msk [vmem:[#allocation2 + $0x50] sm:$0xff] %vm82_vm0, %v4389_v58 }
  0x10   :  { %v3605_v30 = vld [vmem:[%s6746_s0 + $0x408] sm:$0xff]  ;;  %v3615_v46 = vld [vmem:[%s6746_s0 + $0x538] sm:$0xff]  ;;  %92 = vst.msk [vmem:[#allocation2 + $0x48] sm:$0xff] %vm82_vm0, %v4394_v59  ;;  %v4418_v2 = vld [vmem:[%s6746_s0 + $0x320] sm:$0xff] }
  0x11   :  { %v3604_v31 = vld [vmem:[%s6746_s0 + $0x368] sm:$0xff]  ;;  %v3613_v48 = vld [vmem:[%s6746_s0 + $0x518] sm:$0xff]  ;;  %v4424_v3 = vld [vmem:[%s6746_s0 + $0x160] sm:$0xff]  ;;  %106 = vst.msk [vmem:[#allocation2 + $0xb8] sm:$0xff] %vm82_vm0, %v4418_v2 }
  0x12   :  { %247 = vrot.lane.b32.xlu2 %v3585_v6, %s4072_s15  ;;  %v3609_v33 = vld [vmem:[%s6746_s0 + $0x448] sm:$0xff]  ;;  %v3617_v54 = vld [vmem:[%s6746_s0 + $0x558] sm:$0xff]  ;;  %v4436_v6 = vld [vmem:[%s6746_s0 + $0x150] sm:$0xff]  ;;  %96 = vst.msk [vmem:[#allocation2 + $0x68] sm:$0xff] %vm82_vm0, %v4424_v3 }
  0x13   :  { %245 = vrot.lane.b32.xlu1 %v3584_v7, %s4072_s15  ;;  %v3607_v35 = vld [vmem:[%s6746_s0 + $0x428] sm:$0xff]  ;;  %v3620_v61 = vld [vmem:[%s6746_s0 + $0x618] sm:$0xff]  ;;  %95 = vst.msk [vmem:[#allocation2 + $0x60] sm:$0xff] %vm82_vm0, %v4436_v6  ;;  %v4572_v38 = vld [vmem:[%s6746_s0 + $0x530] sm:$0xff] }
  0x14   :  { %243 = vrot.lane.b32.xlu0 %v3583_v8, %s4072_s15  ;;  %v3612_v39 = vld [vmem:[%s6746_s0 + $0x508] sm:$0xff]  ;;  %v3624_v4 = vld [vmem:[%s6746_s0 + $0x658] sm:$0xff]  ;;  %121 = vst.msk [vmem:[#allocation2 + $0x130] sm:$0xff] %vm82_vm0, %v4572_v38  ;;  %v4631_v51 = vld [vmem:[%s6746_s0 + $0x620] sm:$0xff] }
  0x15   :  { %v3611_v40 = vld [vmem:[%s6746_s0 + $0x468] sm:$0xff]  ;;  %v3622_v7 = vld [vmem:[%s6746_s0 + $0x638] sm:$0xff]  ;;  %127 = vst.msk [vmem:[#allocation2 + $0x160] sm:$0xff] %vm82_vm0, %v4631_v51 }
  0x16   :  { %v3614_v47 = vld [vmem:[%s6746_s0 + $0x528] sm:$0xff] }
  0x17   :  { %v3618_v53 = vld [vmem:[%s6746_s0 + $0x568] sm:$0xff] }
  0x18   :  { %v3616_v55 = vld [vmem:[%s6746_s0 + $0x548] sm:$0xff] }
  0x19   :  { %v3621_v60 = vld [vmem:[%s6746_s0 + $0x628] sm:$0xff] }
  0x1a   :  { %253 = vrot.lane.b32.xlu2 %v3588_v9, %s4072_s15  ;;  %v3619_v62 = vld [vmem:[%s6746_s0 + $0x608] sm:$0xff] }
  0x1b   :  { %251 = vrot.lane.b32.xlu1 %v3587_v10, %s4072_s15  ;;  %v3623_v5 = vld [vmem:[%s6746_s0 + $0x648] sm:$0xff] }
  0x1c   :  { %249 = vrot.lane.b32.xlu0 %v3586_v11, %s4072_s15  ;;  %v4454_v11 = vld [vmem:[%s6746_s0 + $0x350] sm:$0xff] }
  0x1d   :  { %109 = vst.msk [vmem:[#allocation2 + $0xd0] sm:$0xff] %vm82_vm0, %v4454_v11 }
  0x22   :  { %259 = vrot.lane.b32.xlu2 %v3591_v12, %s4072_s15  ;;  %v4460_v12 = vld [vmem:[%s6746_s0 + $0x220] sm:$0xff] }
  0x23   :  { %257 = vrot.lane.b32.xlu1 %v3590_v13, %s4072_s15  ;;  %v4466_v13 = vld [vmem:[%s6746_s0 + $0x210] sm:$0xff]  ;;  %99 = vst.msk [vmem:[#allocation2 + $0x80] sm:$0xff] %vm82_vm0, %v4460_v12 }
  0x24   :  { %255 = vrot.lane.b32.xlu0 %v3589_v14, %s4072_s15  ;;  %v3625_v14 = vld [vmem:[%s6746_s0 + $0x668] sm:$0xff]  ;;  %98 = vst.msk [vmem:[#allocation2 + $0x78] sm:$0xff] %vm82_vm0, %v4466_v13 }
  0x2a   :  { %265 = vrot.lane.b32.xlu2 %v3594_v15, %s4072_s15 }
  0x2b   :  { %263 = vrot.lane.b32.xlu1 %v3593_v16, %s4072_s15 }
  0x2c   :  { %261 = vrot.lane.b32.xlu0 %v3592_v17, %s4072_s15 }
  0x32   :  { %271 = vrot.lane.b32.xlu2 %v3597_v18, %s4072_s15  ;;  %v4486_v18 = vld [vmem:[%s6746_s0 + $0x410] sm:$0xff] }
  0x33   :  { %269 = vrot.lane.b32.xlu1 %v3596_v19, %s4072_s15  ;;  %v4492_v19 = vld [vmem:[%s6746_s0 + $0x250] sm:$0xff]  ;;  %112 = vst.msk [vmem:[#allocation2 + $0xe8] sm:$0xff] %vm82_vm0, %v4486_v18 }
  0x34   :  { %267 = vrot.lane.b32.xlu0 %v3595_v20, %s4072_s15  ;;  %v4498_v20 = vld [vmem:[%s6746_s0 + $0x240] sm:$0xff]  ;;  %102 = vst.msk [vmem:[#allocation2 + $0x98] sm:$0xff] %vm82_vm0, %v4492_v19 }
  0x35   :  { %101 = vst.msk [vmem:[#allocation2 + $0x90] sm:$0xff] %vm82_vm0, %v4498_v20 }
  0x3a   :  { %277 = vrot.lane.b32.xlu2 %v3600_v21, %s4072_s15 }
  0x3b   :  { %275 = vrot.lane.b32.xlu1 %v3599_v22, %s4072_s15 }
  0x3c   :  { %273 = vrot.lane.b32.xlu0 %v3598_v23, %s4072_s15 }
  0x42   :  { %283 = vrot.lane.b32.xlu2 %v3603_v25, %s4072_s15  ;;  %v4516_v25 = vld [vmem:[%s6746_s0 + $0x440] sm:$0xff] }
  0x43   :  { %281 = vrot.lane.b32.xlu1 %v3602_v26, %s4072_s15  ;;  %v3632_v26 = vld [vmem:[%s6746_s0 + $0x70] sm:$0xff]  ;;  %115 = vst.msk [vmem:[#allocation2 + $0x100] sm:$0xff] %vm82_vm0, %v4516_v25 }
  0x44   :  { %279 = vrot.lane.b32.xlu0 %v3601_v27, %s4072_s15  ;;  %v54_v27 = vld [vmem:[%s6746_s0 + $0x300] sm:$0xff] }
  0x45   :  { %104 = vst.msk [vmem:[#allocation2 + $0xa8] sm:$0xff] %vm82_vm0, %v54_v27 }
  0x4a   :  { %289 = vrot.lane.b32.xlu2 %v3606_v29, %s4072_s15 }
  0x4b   :  { %287 = vrot.lane.b32.xlu1 %v3605_v30, %s4072_s15 }
  0x4c   :  { %285 = vrot.lane.b32.xlu0 %v3604_v31, %s4072_s15  ;;  %v68_v31 = vld [vmem:[%s6746_s0 + $0x500] sm:$0xff] }
  0x4d   :  { %118 = vst.msk [vmem:[#allocation2 + $0x118] sm:$0xff] %vm82_vm0, %v68_v31 }
  0x52   :  { %295 = vrot.lane.b32.xlu2 %v3609_v33, %s4072_s15  ;;  %v4555_v33 = vld [vmem:[%s6746_s0 + $0x330] sm:$0xff] }
  0x53   :  { %293 = vrot.lane.b32.xlu1 %v3608_v34, %s4072_s15  ;;  %107 = vst.msk [vmem:[#allocation2 + $0xc0] sm:$0xff] %vm82_vm0, %v4555_v33 }
  0x54   :  { %291 = vrot.lane.b32.xlu0 %v3607_v35, %s4072_s15 }
  0x5a   :  { %301 = vrot.lane.b32.xlu2 %v3612_v39, %s4072_s15  ;;  %v3639_v39 = vld [vmem:[%s6746_s0 + $0x170] sm:$0xff] }
  0x5b   :  { %299 = vrot.lane.b32.xlu1 %v3611_v40, %s4072_s15  ;;  %v4585_v40 = vld [vmem:[%s6746_s0 + $0x360] sm:$0xff] }
  0x5c   :  { %297 = vrot.lane.b32.xlu0 %v3610_v41, %s4072_s15  ;;  %v240_v42 = vpop.permute.xlu2 %239  ;;  %110 = vst.msk [vmem:[#allocation2 + $0xd8] sm:$0xff] %vm82_vm0, %v4585_v40 }
  0x5d   :  { %383 = vst.msk [vmem:[#allocation2 + $0x20] sm:$0xff] %vm378_vm1, %v240_v42 }
  0x62   :  { %307 = vrot.lane.b32.xlu2 %v3615_v46, %s4072_s15  ;;  %v4613_v46 = vld [vmem:[%s6746_s0 + $0x420] sm:$0xff] }
  0x63   :  { %305 = vrot.lane.b32.xlu1 %v3614_v47, %s4072_s15  ;;  %113 = vst.msk [vmem:[#allocation2 + $0xf0] sm:$0xff] %vm82_vm0, %v4613_v46 }
  0x64   :  { %303 = vrot.lane.b32.xlu0 %v3613_v48, %s4072_s15  ;;  %v242_v49 = vpop.permute.xlu2 %241 }
  0x65   :  { %384 = vst.msk [vmem:[#allocation2 + $0x28] sm:$0xff] %vm378_vm1, %v242_v49 }
  0x6a   :  { %313 = vrot.lane.b32.xlu2 %v3618_v53, %s4072_s15 }
  0x6b   :  { %311 = vrot.lane.b32.xlu1 %v3617_v54, %s4072_s15 }
  0x6c   :  { %309 = vrot.lane.b32.xlu0 %v3616_v55, %s4072_s15  ;;  %v248_v56 = vpop.permute.xlu2 %247 }
  0x6d   :  { %387 = vst.msk [vmem:[#allocation2 + $0x40] sm:$0xff] %vm378_vm1, %v248_v56  ;;  %v4661_v56 = vld [vmem:[%s6746_s0 + $0x650] sm:$0xff] }
  0x6e   :  { %130 = vst.msk [vmem:[#allocation2 + $0x178] sm:$0xff] %vm82_vm0, %v4661_v56 }
  0x72   :  { %319 = vrot.lane.b32.xlu2 %v3621_v60, %s4072_s15 }
  0x73   :  { %317 = vrot.lane.b32.xlu1 %v3620_v61, %s4072_s15 }
  0x74   :  { %315 = vrot.lane.b32.xlu0 %v3619_v62, %s4072_s15  ;;  %v254_v63 = vpop.permute.xlu2 %253 }
  0x75   :  { %v236_v0 = vpop.permute.xlu1 %235  ;;  %390 = vst.msk [vmem:[#allocation2 + $0x58] sm:$0xff] %vm378_vm1, %v254_v63  ;;  %v4693_v63 = vld [vmem:[%s6746_s0 + $0x550] sm:$0xff] }
  0x76   :  { %v232_v1 = vpop.permute.xlu0 %231  ;;  %381 = vst.msk [vmem:[#allocation2 + $0x10] sm:$0xff] %vm378_vm1, %v236_v0  ;;  %v4699_v0 = vld [vmem:[%s6746_s0 + $0x540] sm:$0xff] }
  0x77   :  { %379 = vst.msk [vmem:[#allocation2] sm:$0xff] %vm378_vm1, %v232_v1 }
  0x78   :  { %123 = vst.msk [vmem:[#allocation2 + $0x140] sm:$0xff] %vm82_vm0, %v4693_v63 }
  0x79   :  { %122 = vst.msk [vmem:[#allocation2 + $0x138] sm:$0xff] %vm82_vm0, %v4699_v0 }
  0x7a   :  { %325 = vrot.lane.b32.xlu2 %v3624_v4, %s4072_s15  ;;  %v76_v4 = vld [vmem:[%s6746_s0 + $0x610] sm:$0xff] }
  0x7b   :  { %323 = vrot.lane.b32.xlu1 %v3623_v5, %s4072_s15  ;;  %v75_v5 = vld [vmem:[%s6746_s0 + $0x600] sm:$0xff]  ;;  %126 = vst.msk [vmem:[#allocation2 + $0x158] sm:$0xff] %vm82_vm0, %v76_v4 }
  0x7c   :  { %321 = vrot.lane.b32.xlu0 %v3622_v7, %s4072_s15  ;;  %v260_v8 = vpop.permute.xlu2 %259  ;;  %125 = vst.msk [vmem:[#allocation2 + $0x150] sm:$0xff] %vm82_vm0, %v75_v5  ;;  %v3692_v5 = vld [vmem:[%s6746_s0 + $0x2b0] sm:$0xff] }
  0x7d   :  { %v238_v9 = vpop.permute.xlu1 %237  ;;  %393 = vst.msk [vmem:[#allocation2 + $0x70] sm:$0xff] %vm378_vm1, %v260_v8 }
  0x7e   :  { %v234_v10 = vpop.permute.xlu0 %233  ;;  %382 = vst.msk [vmem:[#allocation2 + $0x18] sm:$0xff] %vm378_vm1, %v238_v9 }
  0x7f   :  { %380 = vst.msk [vmem:[#allocation2 + $0x8] sm:$0xff] %vm378_vm1, %v234_v10  ;;  %v79_v10 = vld [vmem:[%s6746_s0 + $0x640] sm:$0xff] }
  0x80   :  { %129 = vst.msk [vmem:[#allocation2 + $0x170] sm:$0xff] %vm82_vm0, %v79_v10 }
  0x82   :  { %529 = vrot.lane.b32.xlu2 %v4296_v37, %s4073_s30 }
  0x83   :  { %527 = vrot.lane.b32.xlu1 %v4330_v45, %s4073_s30  ;;  %v4607_v45 = vld [vmem:[%s6746_s0 + $0x430] sm:$0xff] }
  0x84   :  { %327 = vrot.lane.b32.xlu0 %v3625_v14, %s4072_s15  ;;  %v266_v15 = vpop.permute.xlu2 %265  ;;  %114 = vst.msk [vmem:[#allocation2 + $0xf8] sm:$0xff] %vm82_vm0, %v4607_v45 }
  0x85   :  { %v246_v16 = vpop.permute.xlu1 %245  ;;  %396 = vst.msk [vmem:[#allocation2 + $0x88] sm:$0xff] %vm378_vm1, %v266_v15  ;;  %v81_v15 = vld [vmem:[%s6746_s0 + $0x660] sm:$0xff] }
  0x86   :  { %v244_v17 = vpop.permute.xlu0 %243  ;;  %386 = vst.msk [vmem:[#allocation2 + $0x38] sm:$0xff] %vm378_vm1, %v246_v16  ;;  %v3660_v16 = vld [vmem:[%s6746_s0 + $0x470] sm:$0xff] }
  0x87   :  { %385 = vst.msk [vmem:[#allocation2 + $0x30] sm:$0xff] %vm378_vm1, %v244_v17 }
  0x88   :  { %131 = vst.msk [vmem:[#allocation2 + $0x180] sm:$0xff] %vm82_vm0, %v81_v15 }
  0x8a   :  { %535 = vrot.lane.b32.xlu2 %v4253_v28, %s4073_s30 }
  0x8b   :  { %533 = vrot.lane.b32.xlu1 %v4234_v24, %s4073_s30  ;;  %v4522_v24 = vld [vmem:[%s6746_s0 + $0x310] sm:$0xff] }
  0x8c   :  { %531 = vrot.lane.b32.xlu0 %v4325_v44, %s4073_s30  ;;  %v272_v21 = vpop.permute.xlu2 %271  ;;  %105 = vst.msk [vmem:[#allocation2 + $0xb0] sm:$0xff] %vm82_vm0, %v4522_v24  ;;  %v4601_v44 = vld [vmem:[%s6746_s0 + $0x560] sm:$0xff] }
  0x8d   :  { %v252_v22 = vpop.permute.xlu1 %251  ;;  %399 = vst.msk [vmem:[#allocation2 + $0xa0] sm:$0xff] %vm378_vm1, %v272_v21 }
  0x8e   :  { %v250_v23 = vpop.permute.xlu0 %249  ;;  %389 = vst.msk [vmem:[#allocation2 + $0x50] sm:$0xff] %vm378_vm1, %v252_v22 }
  0x8f   :  { %388 = vst.msk [vmem:[#allocation2 + $0x48] sm:$0xff] %vm378_vm1, %v250_v23 }
  0x90   :  { %124 = vst.msk [vmem:[#allocation2 + $0x148] sm:$0xff] %vm82_vm0, %v4601_v44 }
  0x92   :  { %541 = vrot.lane.b32.xlu2 %v4272_v32, %s4073_s30  ;;  %v4549_v32 = vld [vmem:[%s6746_s0 + $0x340] sm:$0xff] }
  0x93   :  { %539 = vrot.lane.b32.xlu1 %v3632_v26, %s4073_s30  ;;  %108 = vst.msk [vmem:[#allocation2 + $0xc8] sm:$0xff] %vm82_vm0, %v4549_v32  ;;  %v3667_v26 = vld [vmem:[%s6746_s0 + $0x570] sm:$0xff] }
  0x94   :  { %537 = vrot.lane.b32.xlu0 %v4361_v52, %s4073_s30  ;;  %v278_v28 = vpop.permute.xlu2 %277  ;;  %v4643_v52 = vld [vmem:[%s6746_s0 + $0x450] sm:$0xff] }
  0x95   :  { %v258_v29 = vpop.permute.xlu1 %257  ;;  %402 = vst.msk [vmem:[#allocation2 + $0xb8] sm:$0xff] %vm378_vm1, %v278_v28 }
  0x96   :  { %v256_v30 = vpop.permute.xlu0 %255  ;;  %392 = vst.msk [vmem:[#allocation2 + $0x68] sm:$0xff] %vm378_vm1, %v258_v29 }
  0x97   :  { %391 = vst.msk [vmem:[#allocation2 + $0x60] sm:$0xff] %vm378_vm1, %v256_v30 }
  0x98   :  { %116 = vst.msk [vmem:[#allocation2 + $0x108] sm:$0xff] %vm82_vm0, %v4643_v52 }
  0x9a   :  { %547 = vrot.lane.b32.xlu2 %v4291_v36, %s4073_s30  ;;  %v61_v36 = vld [vmem:[%s6746_s0 + $0x400] sm:$0xff] }
  0x9b   :  { %545 = vrot.lane.b32.xlu1 %v4389_v58, %s4073_s30  ;;  %111 = vst.msk [vmem:[#allocation2 + $0xe0] sm:$0xff] %vm82_vm0, %v61_v36  ;;  %v4673_v58 = vld [vmem:[%s6746_s0 + $0x510] sm:$0xff] }
  0x9c   :  { %543 = vrot.lane.b32.xlu0 %v4394_v59, %s4073_s30  ;;  %v284_v34 = vpop.permute.xlu2 %283  ;;  %v3646_v59 = vld [vmem:[%s6746_s0 + $0x270] sm:$0xff]  ;;  %119 = vst.msk [vmem:[#allocation2 + $0x120] sm:$0xff] %vm82_vm0, %v4673_v58 }
  0x9d   :  { %v264_v35 = vpop.permute.xlu1 %263  ;;  %405 = vst.msk [vmem:[#allocation2 + $0xd0] sm:$0xff] %vm378_vm1, %v284_v34  ;;  %v3674_v34 = vld [vmem:[%s6746_s0 + $0x670] sm:$0xff] }
  0x9e   :  { %v262_v37 = vpop.permute.xlu0 %261  ;;  %395 = vst.msk [vmem:[#allocation2 + $0x80] sm:$0xff] %vm378_vm1, %v264_v35  ;;  %v4816_v36 = vld [vmem:[%s6746_s0 + $0xb0] sm:$0xff] }
  0x9f   :  { %394 = vst.msk [vmem:[#allocation2 + $0x78] sm:$0xff] %vm378_vm1, %v262_v37 }
  0xa2   :  { %553 = vrot.lane.b32.xlu2 %v3639_v39, %s4073_s30  ;;  %v4821_v39 = vld [vmem:[%s6746_s0 + $0xa0] sm:$0xff] }
  0xa3   :  { %551 = vrot.lane.b32.xlu1 %v4424_v3, %s4073_s30 }
  0xa4   :  { %549 = vrot.lane.b32.xlu0 %v4436_v6, %s4073_s30  ;;  %v290_v41 = vpop.permute.xlu2 %289  ;;  %v3653_v6 = vld [vmem:[%s6746_s0 + $0x370] sm:$0xff] }
  0xa5   :  { %v270_v42 = vpop.permute.xlu1 %269  ;;  %408 = vst.msk [vmem:[#allocation2 + $0xe8] sm:$0xff] %vm378_vm1, %v290_v41 }
  0xa6   :  { %v268_v43 = vpop.permute.xlu0 %267  ;;  %398 = vst.msk [vmem:[#allocation2 + $0x98] sm:$0xff] %vm378_vm1, %v270_v42 }
  0xa7   :  { %397 = vst.msk [vmem:[#allocation2 + $0x90] sm:$0xff] %vm378_vm1, %v268_v43 }
  0xaa   :  { %559 = vrot.lane.b32.xlu2 %v4352_v50, %s4073_s30  ;;  %v4637_v50 = vld [vmem:[%s6746_s0 + $0x460] sm:$0xff] }
  0xab   :  { %557 = vrot.lane.b32.xlu1 %v4460_v12, %s4073_s30  ;;  %117 = vst.msk [vmem:[#allocation2 + $0x110] sm:$0xff] %vm82_vm0, %v4637_v50 }
  0xac   :  { %555 = vrot.lane.b32.xlu0 %v4466_v13, %s4073_s30  ;;  %v296_v47 = vpop.permute.xlu2 %295 }
  0xad   :  { %v276_v48 = vpop.permute.xlu1 %275  ;;  %411 = vst.msk [vmem:[#allocation2 + $0x100] sm:$0xff] %vm378_vm1, %v296_v47 }
  0xae   :  { %v274_v49 = vpop.permute.xlu0 %273  ;;  %401 = vst.msk [vmem:[#allocation2 + $0xb0] sm:$0xff] %vm378_vm1, %v276_v48 }
  0xaf   :  { %400 = vst.msk [vmem:[#allocation2 + $0xa8] sm:$0xff] %vm378_vm1, %v274_v49 }
  0xb2   :  { %565 = vrot.lane.b32.xlu2 %v4383_v57, %s4073_s30  ;;  %v4667_v57 = vld [vmem:[%s6746_s0 + $0x520] sm:$0xff] }
  0xb3   :  { %563 = vrot.lane.b32.xlu1 %v4492_v19, %s4073_s30  ;;  %120 = vst.msk [vmem:[#allocation2 + $0x128] sm:$0xff] %vm82_vm0, %v4667_v57 }
  0xb4   :  { %561 = vrot.lane.b32.xlu0 %v4498_v20, %s4073_s30  ;;  %v302_v53 = vpop.permute.xlu2 %301 }
  0xb5   :  { %v282_v54 = vpop.permute.xlu1 %281  ;;  %414 = vst.msk [vmem:[#allocation2 + $0x118] sm:$0xff] %vm378_vm1, %v302_v53 }
  0xb6   :  { %v280_v55 = vpop.permute.xlu0 %279  ;;  %404 = vst.msk [vmem:[#allocation2 + $0xc8] sm:$0xff] %vm378_vm1, %v282_v54 }
  0xb7   :  { %403 = vst.msk [vmem:[#allocation2 + $0xc0] sm:$0xff] %vm378_vm1, %v280_v55 }
  0xba   :  { %571 = vrot.lane.b32.xlu2 %v4418_v2, %s4073_s30 }
  0xbb   :  { %569 = vrot.lane.b32.xlu1 %v4522_v24, %s4073_s30 }
  0xbc   :  { %567 = vrot.lane.b32.xlu0 %v3646_v59, %s4073_s30  ;;  %v308_v60 = vpop.permute.xlu2 %307 }
  0xbd   :  { %v288_v61 = vpop.permute.xlu1 %287  ;;  %417 = vst.msk [vmem:[#allocation2 + $0x130] sm:$0xff] %vm378_vm1, %v308_v60 }
  0xbe   :  { %v286_v62 = vpop.permute.xlu0 %285  ;;  %407 = vst.msk [vmem:[#allocation2 + $0xe0] sm:$0xff] %vm378_vm1, %v288_v61 }
  0xbf   :  { %406 = vst.msk [vmem:[#allocation2 + $0xd8] sm:$0xff] %vm378_vm1, %v286_v62  ;;  %v3690_v62 = vld [vmem:[%s6746_s0 + $0x290] sm:$0xff] }
  0xc2   :  { %577 = vrot.lane.b32.xlu2 %v4454_v11, %s4073_s30  ;;  %v78_v11 = vld [vmem:[%s6746_s0 + $0x630] sm:$0xff] }
  0xc3   :  { %575 = vrot.lane.b32.xlu1 %v4549_v32, %s4073_s30  ;;  %128 = vst.msk [vmem:[#allocation2 + $0x168] sm:$0xff] %vm82_vm0, %v78_v11  ;;  %vm3044_vm0 = vcmask 326912  }
  0xc4   :  { %573 = vrot.lane.b32.xlu0 %v4555_v33, %s4073_s30  ;;  %v314_v1 = vpop.permute.xlu2 %313  ;;  %v3675_v33 = vld [vmem:[%s6746_s0 + $0x80] sm:$0xff] }
  0xc5   :  { %v294_v2 = vpop.permute.xlu1 %293  ;;  %420 = vst.msk [vmem:[#allocation2 + $0x148] sm:$0xff] %vm378_vm1, %v314_v1 }
  0xc6   :  { %v292_v3 = vpop.permute.xlu0 %291  ;;  %410 = vst.msk [vmem:[#allocation2 + $0xf8] sm:$0xff] %vm378_vm1, %v294_v2 }
  0xc7   :  { %409 = vst.msk [vmem:[#allocation2 + $0xf0] sm:$0xff] %vm378_vm1, %v292_v3 }
  0xca   :  { %583 = vrot.lane.b32.xlu2 %v4486_v18, %s4073_s30 }
  0xcb   :  { %581 = vrot.lane.b32.xlu1 %v3653_v6, %s4073_s30  ;;  %v3691_v6 = vld [vmem:[%s6746_s0 + $0x2a0] sm:$0xff] }
  0xcc   :  { %579 = vrot.lane.b32.xlu0 %v4585_v40, %s4073_s30  ;;  %v320_v7 = vpop.permute.xlu2 %319  ;;  %v4826_v40 = vld [vmem:[%s6746_s0 + $0x90] sm:$0xff] }
  0xcd   :  { %v300_v8 = vpop.permute.xlu1 %299  ;;  %423 = vst.msk [vmem:[#allocation2 + $0x160] sm:$0xff] %vm378_vm1, %v320_v7 }
  0xce   :  { %v298_v9 = vpop.permute.xlu0 %297  ;;  %413 = vst.msk [vmem:[#allocation2 + $0x110] sm:$0xff] %vm378_vm1, %v300_v8 }
  0xcf   :  { %412 = vst.msk [vmem:[#allocation2 + $0x108] sm:$0xff] %vm378_vm1, %v298_v9 }
  0xd2   :  { %589 = vrot.lane.b32.xlu2 %v4516_v25, %s4073_s30 }
  0xd3   :  { %587 = vrot.lane.b32.xlu1 %v4607_v45, %s4073_s30  ;;  %v4845_v45 = vld [vmem:[%s6746_s0 + $0xd0] sm:$0xff] }
  0xd4   :  { %585 = vrot.lane.b32.xlu0 %v4613_v46, %s4073_s30  ;;  %v326_v12 = vpop.permute.xlu2 %325  ;;  %v4850_v46 = vld [vmem:[%s6746_s0 + $0xc0] sm:$0xff] }
  0xd5   :  { %v306_v13 = vpop.permute.xlu1 %305  ;;  %426 = vst.msk [vmem:[#allocation2 + $0x178] sm:$0xff] %vm378_vm1, %v326_v12  ;;  %v3694_v12 = vld [vmem:[%s6746_s0 + $0x2d0] sm:$0xff] }
  0xd6   :  { %v304_v14 = vpop.permute.xlu0 %303  ;;  %416 = vst.msk [vmem:[#allocation2 + $0x128] sm:$0xff] %vm378_vm1, %v306_v13 }
  0xd7   :  { %415 = vst.msk [vmem:[#allocation2 + $0x120] sm:$0xff] %vm378_vm1, %v304_v14 }
  0xda   :  { %595 = vrot.lane.b32.xlu2 %v3660_v16, %s4073_s30  ;;  %v3699_v16 = vld [vmem:[%s6746_s0 + $0x3b0] sm:$0xff] }
  0xdb   :  { %593 = vrot.lane.b32.xlu1 %v4637_v50, %s4073_s30  ;;  %v4869_v50 = vld [vmem:[%s6746_s0 + $0x190] sm:$0xff] }
  0xdc   :  { %591 = vrot.lane.b32.xlu0 %v4643_v52, %s4073_s30  ;;  %v530_v17 = vpop.permute.xlu2 %529  ;;  %v3682_v52 = vld [vmem:[%s6746_s0 + $0x180] sm:$0xff] }
  0xdd   :  { %v312_v18 = vpop.permute.xlu1 %311  ;;  %676 = vst.msk [vmem:[#allocation2 + $0x8] sm:$0xff] %vm674_vm2, %v530_v17  ;;  %v3698_v17 = vld [vmem:[%s6746_s0 + $0x3a0] sm:$0xff] }
  0xde   :  { %v310_v19 = vpop.permute.xlu0 %309  ;;  %419 = vst.msk [vmem:[#allocation2 + $0x140] sm:$0xff] %vm378_vm1, %v312_v18  ;;  %v3697_v18 = vld [vmem:[%s6746_s0 + $0x390] sm:$0xff] }
  0xdf   :  { %418 = vst.msk [vmem:[#allocation2 + $0x138] sm:$0xff] %vm378_vm1, %v310_v19 }
  0xe2   :  { %601 = vrot.lane.b32.xlu2 %v4572_v38, %s4073_s30 }
  0xe3   :  { %599 = vrot.lane.b32.xlu1 %v4667_v57, %s4073_s30  ;;  %v4890_v57 = vld [vmem:[%s6746_s0 + $0x1c0] sm:$0xff] }
  0xe4   :  { %597 = vrot.lane.b32.xlu0 %v4673_v58, %s4073_s30  ;;  %v536_v20 = vpop.permute.xlu2 %535  ;;  %v4895_v58 = vld [vmem:[%s6746_s0 + $0x1b0] sm:$0xff] }
  0xe5   :  { %v318_v21 = vpop.permute.xlu1 %317  ;;  %679 = vst.msk [vmem:[#allocation2 + $0x20] sm:$0xff] %vm674_vm2, %v536_v20 }
  0xe6   :  { %v316_v22 = vpop.permute.xlu0 %315  ;;  %422 = vst.msk [vmem:[#allocation2 + $0x158] sm:$0xff] %vm378_vm1, %v318_v21 }
  0xe7   :  { %421 = vst.msk [vmem:[#allocation2 + $0x150] sm:$0xff] %vm378_vm1, %v316_v22  ;;  %v3702_v22 = vld [vmem:[%s6746_s0 + $0x3e0] sm:$0xff] }
  0xea   :  { %607 = vrot.lane.b32.xlu2 %v4601_v44, %s4073_s30  ;;  %v4840_v44 = vld [vmem:[%s6746_s0 + $0xe0] sm:$0xff] }
  0xeb   :  { %605 = vrot.lane.b32.xlu1 %v4693_v63, %s4073_s30  ;;  %v3689_v63 = vld [vmem:[%s6746_s0 + $0x280] sm:$0xff] }
  0xec   :  { %603 = vrot.lane.b32.xlu0 %v4699_v0, %s4073_s30  ;;  %v542_v23 = vpop.permute.xlu2 %541  ;;  %v4915_v0 = vld [vmem:[%s6746_s0 + $0x1e0] sm:$0xff] }
  0xed   :  { %v324_v25 = vpop.permute.xlu1 %323  ;;  %682 = vst.msk [vmem:[#allocation2 + $0x38] sm:$0xff] %vm674_vm2, %v542_v23  ;;  %v3701_v23 = vld [vmem:[%s6746_s0 + $0x3d0] sm:$0xff] }
  0xee   :  { %v322_v24 = vpop.permute.xlu0 %321  ;;  %425 = vst.msk [vmem:[#allocation2 + $0x170] sm:$0xff] %vm378_vm1, %v324_v25  ;;  %v3700_v25 = vld [vmem:[%s6746_s0 + $0x3c0] sm:$0xff] }
  0xef   :  { %424 = vst.msk [vmem:[#allocation2 + $0x168] sm:$0xff] %vm378_vm1, %v322_v24 }
  0xf2   :  { %613 = vrot.lane.b32.xlu2 %v4631_v51, %s4073_s30  ;;  %v4864_v51 = vld [vmem:[%s6746_s0 + $0x1a0] sm:$0xff] }
  0xf3   :  { %611 = vrot.lane.b32.xlu1 %v76_v4, %s4073_s30  ;;  %v3693_v4 = vld [vmem:[%s6746_s0 + $0x2c0] sm:$0xff] }
  0xf4   :  { %609 = vrot.lane.b32.xlu0 %v3667_v26, %s4073_s30  ;;  %v548_v27 = vpop.permute.xlu2 %547 }
  0xf5   :  { %v528_v28 = vpop.permute.xlu1 %527  ;;  %685 = vst.msk [vmem:[#allocation2 + $0x50] sm:$0xff] %vm674_vm2, %v548_v27 }
  0xf6   :  { %v328_v29 = vpop.permute.xlu0 %327  ;;  %675 = vst.msk [vmem:[#allocation2] sm:$0xff] %vm674_vm2, %v528_v28  ;;  %v3705_v28 = vld [vmem:[%s6746_s0 + $0x4a0] sm:$0xff] }
  0xf7   :  { %427 = vst.msk [vmem:[#allocation2 + $0x180] sm:$0xff] %vm378_vm1, %v328_v29  ;;  %v3704_v29 = vld [vmem:[%s6746_s0 + $0x490] sm:$0xff]  ;;  %vm3084_vm1 = vcmask 392512  }
  0xfa   :  { %619 = vrot.lane.b32.xlu2 %v4661_v56, %s4073_s30  ;;  %v4885_v56 = vld [vmem:[%s6746_s0 + $0x1d0] sm:$0xff] }
  0xfb   :  { %617 = vrot.lane.b32.xlu1 %v79_v10, %s4073_s30  ;;  %v3696_v10 = vld [vmem:[%s6746_s0 + $0x380] sm:$0xff] }
  0xfc   :  { %615 = vrot.lane.b32.xlu0 %v78_v11, %s4073_s30  ;;  %v554_v30 = vpop.permute.xlu2 %553  ;;  %v3695_v11 = vld [vmem:[%s6746_s0 + $0x2e0] sm:$0xff] }
  0xfd   :  { %v534_v31 = vpop.permute.xlu1 %533  ;;  %688 = vst.msk [vmem:[#allocation2 + $0x68] sm:$0xff] %vm674_vm2, %v554_v30  ;;  %v3703_v30 = vld [vmem:[%s6746_s0 + $0x480] sm:$0xff] }
  0xfe   :  { %v532_v32 = vpop.permute.xlu0 %531  ;;  %678 = vst.msk [vmem:[#allocation2 + $0x18] sm:$0xff] %vm674_vm2, %v534_v31 }
  0xff   :  { %677 = vst.msk [vmem:[#allocation2 + $0x10] sm:$0xff] %vm674_vm2, %v532_v32 }
 0x102   :  { %823 = vrot.lane.b32.xlu2 %v3675_v33, %s4074_s22 }
 0x103   :  { %623 = vrot.lane.b32.xlu1 %v3674_v34, %s4073_s30  ;;  %v3708_v34 = vld [vmem:[%s6746_s0 + $0x4d0] sm:$0xff] }
 0x104   :  { %621 = vrot.lane.b32.xlu0 %v81_v15, %s4073_s30  ;;  %v560_v35 = vpop.permute.xlu2 %559 }
 0x105   :  { %v540_v37 = vpop.permute.xlu1 %539  ;;  %691 = vst.msk [vmem:[#allocation2 + $0x80] sm:$0xff] %vm674_vm2, %v560_v35  ;;  %v3707_v35 = vld [vmem:[%s6746_s0 + $0x4c0] sm:$0xff] }
 0x106   :  { %v538_v38 = vpop.permute.xlu0 %537  ;;  %681 = vst.msk [vmem:[#allocation2 + $0x30] sm:$0xff] %vm674_vm2, %v540_v37  ;;  %v3706_v37 = vld [vmem:[%s6746_s0 + $0x4b0] sm:$0xff] }
 0x107   :  { %680 = vst.msk [vmem:[#allocation2 + $0x28] sm:$0xff] %vm674_vm2, %v538_v38 }
 0x10a   :  { %829 = vrot.lane.b32.xlu2 %v4816_v36, %s4074_s22 }
 0x10b   :  { %827 = vrot.lane.b32.xlu1 %v4821_v39, %s4074_s22 }
 0x10c   :  { %825 = vrot.lane.b32.xlu0 %v4826_v40, %s4074_s22  ;;  %v566_v41 = vpop.permute.xlu2 %565 }
 0x10d   :  { %v546_v42 = vpop.permute.xlu1 %545  ;;  %694 = vst.msk [vmem:[#allocation2 + $0x98] sm:$0xff] %vm674_vm2, %v566_v41 }
 0x10e   :  { %v544_v43 = vpop.permute.xlu0 %543  ;;  %684 = vst.msk [vmem:[#allocation2 + $0x48] sm:$0xff] %vm674_vm2, %v546_v42 }
 0x10f   :  { %683 = vst.msk [vmem:[#allocation2 + $0x40] sm:$0xff] %vm674_vm2, %v544_v43  ;;  %v3711_v43 = vld [vmem:[%s6746_s0 + $0x590] sm:$0xff] }
 0x112   :  { %835 = vrot.lane.b32.xlu2 %v4840_v44, %s4074_s22 }
 0x113   :  { %833 = vrot.lane.b32.xlu1 %v4845_v45, %s4074_s22 }
 0x114   :  { %831 = vrot.lane.b32.xlu0 %v4850_v46, %s4074_s22  ;;  %v572_v47 = vpop.permute.xlu2 %571 }
 0x115   :  { %v552_v48 = vpop.permute.xlu1 %551  ;;  %697 = vst.msk [vmem:[#allocation2 + $0xb0] sm:$0xff] %vm674_vm2, %v572_v47  ;;  %v3710_v47 = vld [vmem:[%s6746_s0 + $0x580] sm:$0xff] }
 0x116   :  { %v550_v49 = vpop.permute.xlu0 %549  ;;  %687 = vst.msk [vmem:[#allocation2 + $0x60] sm:$0xff] %vm674_vm2, %v552_v48  ;;  %v3709_v48 = vld [vmem:[%s6746_s0 + $0x4e0] sm:$0xff] }
 0x117   :  { %686 = vst.msk [vmem:[#allocation2 + $0x58] sm:$0xff] %vm674_vm2, %v550_v49 }
 0x11a   :  { %841 = vrot.lane.b32.xlu2 %v4864_v51, %s4074_s22 }
 0x11b   :  { %839 = vrot.lane.b32.xlu1 %v4869_v50, %s4074_s22 }
 0x11c   :  { %837 = vrot.lane.b32.xlu0 %v3682_v52, %s4074_s22  ;;  %v578_v53 = vpop.permute.xlu2 %577 }
 0x11d   :  { %v558_v54 = vpop.permute.xlu1 %557  ;;  %700 = vst.msk [vmem:[#allocation2 + $0xc8] sm:$0xff] %vm674_vm2, %v578_v53 }
 0x11e   :  { %v556_v55 = vpop.permute.xlu0 %555  ;;  %690 = vst.msk [vmem:[#allocation2 + $0x78] sm:$0xff] %vm674_vm2, %v558_v54  ;;  %v3714_v54 = vld [vmem:[%s6746_s0 + $0x5c0] sm:$0xff] }
 0x11f   :  { %689 = vst.msk [vmem:[#allocation2 + $0x70] sm:$0xff] %vm674_vm2, %v556_v55  ;;  %v3713_v55 = vld [vmem:[%s6746_s0 + $0x5b0] sm:$0xff] }
 0x122   :  { %847 = vrot.lane.b32.xlu2 %v4885_v56, %s4074_s22 }
 0x123   :  { %845 = vrot.lane.b32.xlu1 %v4890_v57, %s4074_s22 }
 0x124   :  { %843 = vrot.lane.b32.xlu0 %v4895_v58, %s4074_s22  ;;  %v584_v59 = vpop.permute.xlu2 %583 }
 0x125   :  { %v564_v60 = vpop.permute.xlu1 %563  ;;  %703 = vst.msk [vmem:[#allocation2 + $0xe0] sm:$0xff] %vm674_vm2, %v584_v59  ;;  %v3712_v59 = vld [vmem:[%s6746_s0 + $0x5a0] sm:$0xff] }
 0x126   :  { %v562_v61 = vpop.permute.xlu0 %561  ;;  %693 = vst.msk [vmem:[#allocation2 + $0x90] sm:$0xff] %vm674_vm2, %v564_v60 }
 0x127   :  { %692 = vst.msk [vmem:[#allocation2 + $0x88] sm:$0xff] %vm674_vm2, %v562_v61 }
 0x12a   :  { %853 = vrot.lane.b32.xlu2 %v3690_v62, %s4074_s22 }
 0x12b   :  { %851 = vrot.lane.b32.xlu1 %v3689_v63, %s4074_s22  ;;  %v3717_v63 = vld [vmem:[%s6746_s0 + $0x680] sm:$0xff] }
 0x12c   :  { %849 = vrot.lane.b32.xlu0 %v4915_v0, %s4074_s22  ;;  %v590_v1 = vpop.permute.xlu2 %589 }
 0x12d   :  { %v570_v2 = vpop.permute.xlu1 %569  ;;  %706 = vst.msk [vmem:[#allocation2 + $0xf8] sm:$0xff] %vm674_vm2, %v590_v1  ;;  %v3716_v1 = vld [vmem:[%s6746_s0 + $0x5e0] sm:$0xff] }
 0x12e   :  { %v568_v3 = vpop.permute.xlu0 %567  ;;  %696 = vst.msk [vmem:[#allocation2 + $0xa8] sm:$0xff] %vm674_vm2, %v570_v2  ;;  %v3715_v2 = vld [vmem:[%s6746_s0 + $0x5d0] sm:$0xff] }
 0x12f   :  { %695 = vst.msk [vmem:[#allocation2 + $0xa0] sm:$0xff] %vm674_vm2, %v568_v3 }
 0x132   :  { %859 = vrot.lane.b32.xlu2 %v3693_v4, %s4074_s22 }
 0x133   :  { %857 = vrot.lane.b32.xlu1 %v3692_v5, %s4074_s22 }
 0x134   :  { %855 = vrot.lane.b32.xlu0 %v3691_v6, %s4074_s22  ;;  %v596_v7 = vpop.permute.xlu2 %595  ;;  %v3720_v6 = vld [vmem:[%s6746_s0 + $0x6b0] sm:$0xff] }
 0x135   :  { %v576_v8 = vpop.permute.xlu1 %575  ;;  %709 = vst.msk [vmem:[#allocation2 + $0x110] sm:$0xff] %vm674_vm2, %v596_v7  ;;  %v3719_v7 = vld [vmem:[%s6746_s0 + $0x6a0] sm:$0xff] }
 0x136   :  { %v574_v9 = vpop.permute.xlu0 %573  ;;  %699 = vst.msk [vmem:[#allocation2 + $0xc0] sm:$0xff] %vm674_vm2, %v576_v8  ;;  %v3718_v8 = vld [vmem:[%s6746_s0 + $0x690] sm:$0xff] }
 0x137   :  { %698 = vst.msk [vmem:[#allocation2 + $0xb8] sm:$0xff] %vm674_vm2, %v574_v9 }
 0x13a   :  { %865 = vrot.lane.b32.xlu2 %v3696_v10, %s4074_s22 }
 0x13b   :  { %863 = vrot.lane.b32.xlu1 %v3695_v11, %s4074_s22 }
 0x13c   :  { %861 = vrot.lane.b32.xlu0 %v3694_v12, %s4074_s22  ;;  %v602_v13 = vpop.permute.xlu2 %601  ;;  %v3723_v12 = vld [vmem:[%s6746_s0 + $0x6e0] sm:$0xff] }
 0x13d   :  { %v582_v14 = vpop.permute.xlu1 %581  ;;  %712 = vst.msk [vmem:[#allocation2 + $0x128] sm:$0xff] %vm674_vm2, %v602_v13  ;;  %v3722_v13 = vld [vmem:[%s6746_s0 + $0x6d0] sm:$0xff] }
 0x13e   :  { %v580_v15 = vpop.permute.xlu0 %579  ;;  %702 = vst.msk [vmem:[#allocation2 + $0xd8] sm:$0xff] %vm674_vm2, %v582_v14  ;;  %v3721_v14 = vld [vmem:[%s6746_s0 + $0x6c0] sm:$0xff] }
 0x13f   :  { %701 = vst.msk [vmem:[#allocation2 + $0xd0] sm:$0xff] %vm674_vm2, %v580_v15 }
 0x142   :  { %871 = vrot.lane.b32.xlu2 %v3699_v16, %s4074_s22 }
 0x143   :  { %869 = vrot.lane.b32.xlu1 %v3698_v17, %s4074_s22 }
 0x144   :  { %867 = vrot.lane.b32.xlu0 %v3697_v18, %s4074_s22  ;;  %v608_v19 = vpop.permute.xlu2 %607  ;;  %v3726_v18 = vld [vmem:[%s6746_s0 + $0xa8] sm:$0xff] }
 0x145   :  { %v588_v20 = vpop.permute.xlu1 %587  ;;  %715 = vst.msk [vmem:[#allocation2 + $0x140] sm:$0xff] %vm674_vm2, %v608_v19  ;;  %v3725_v19 = vld [vmem:[%s6746_s0 + $0x98] sm:$0xff] }
 0x146   :  { %v586_v21 = vpop.permute.xlu0 %585  ;;  %705 = vst.msk [vmem:[#allocation2 + $0xf0] sm:$0xff] %vm674_vm2, %v588_v20  ;;  %v3724_v20 = vld [vmem:[%s6746_s0 + $0x88] sm:$0xff] }
 0x147   :  { %704 = vst.msk [vmem:[#allocation2 + $0xe8] sm:$0xff] %vm674_vm2, %v586_v21 }
 0x14a   :  { %877 = vrot.lane.b32.xlu2 %v3702_v22, %s4074_s22 }
 0x14b   :  { %875 = vrot.lane.b32.xlu1 %v3701_v23, %s4074_s22 }
 0x14c   :  { %873 = vrot.lane.b32.xlu0 %v3700_v25, %s4074_s22  ;;  %v614_v24 = vpop.permute.xlu2 %613  ;;  %v3729_v25 = vld [vmem:[%s6746_s0 + $0xd8] sm:$0xff] }
 0x14d   :  { %v594_v26 = vpop.permute.xlu1 %593  ;;  %718 = vst.msk [vmem:[#allocation2 + $0x158] sm:$0xff] %vm674_vm2, %v614_v24  ;;  %v3728_v24 = vld [vmem:[%s6746_s0 + $0xc8] sm:$0xff] }
 0x14e   :  { %v592_v27 = vpop.permute.xlu0 %591  ;;  %708 = vst.msk [vmem:[#allocation2 + $0x108] sm:$0xff] %vm674_vm2, %v594_v26  ;;  %v3727_v26 = vld [vmem:[%s6746_s0 + $0xb8] sm:$0xff] }
 0x14f   :  { %707 = vst.msk [vmem:[#allocation2 + $0x100] sm:$0xff] %vm674_vm2, %v592_v27 }
 0x152   :  { %883 = vrot.lane.b32.xlu2 %v3705_v28, %s4074_s22 }
 0x153   :  { %881 = vrot.lane.b32.xlu1 %v3704_v29, %s4074_s22 }
 0x154   :  { %879 = vrot.lane.b32.xlu0 %v3703_v30, %s4074_s22  ;;  %v620_v31 = vpop.permute.xlu2 %619  ;;  %v3732_v30 = vld [vmem:[%s6746_s0 + $0x198] sm:$0xff] }
 0x155   :  { %v600_v32 = vpop.permute.xlu1 %599  ;;  %721 = vst.msk [vmem:[#allocation2 + $0x170] sm:$0xff] %vm674_vm2, %v620_v31  ;;  %v3731_v31 = vld [vmem:[%s6746_s0 + $0x188] sm:$0xff] }
 0x156   :  { %v598_v33 = vpop.permute.xlu0 %597  ;;  %711 = vst.msk [vmem:[#allocation2 + $0x120] sm:$0xff] %vm674_vm2, %v600_v32  ;;  %v3730_v32 = vld [vmem:[%s6746_s0 + $0xe8] sm:$0xff] }
 0x157   :  { %710 = vst.msk [vmem:[#allocation2 + $0x118] sm:$0xff] %vm674_vm2, %v598_v33 }
 0x15a   :  { %889 = vrot.lane.b32.xlu2 %v3708_v34, %s4074_s22 }
 0x15b   :  { %887 = vrot.lane.b32.xlu1 %v3707_v35, %s4074_s22 }
 0x15c   :  { %885 = vrot.lane.b32.xlu0 %v3706_v37, %s4074_s22  ;;  %v824_v38 = vpop.permute.xlu2 %823  ;;  %v3735_v37 = vld [vmem:[%s6746_s0 + $0x1c8] sm:$0xff] }
 0x15d   :  { %v606_v41 = vpop.permute.xlu1 %605  ;;  %971 = vst.msk [vmem:[#allocation2] sm:$0xff] %vm970_vm3, %v824_v38  ;;  %v3734_v38 = vld [vmem:[%s6746_s0 + $0x1b8] sm:$0xff] }
 0x15e   :  { %v604_v42 = vpop.permute.xlu0 %603  ;;  %714 = vst.msk [vmem:[#allocation2 + $0x138] sm:$0xff] %vm674_vm2, %v606_v41  ;;  %v3733_v41 = vld [vmem:[%s6746_s0 + $0x1a8] sm:$0xff] }
 0x15f   :  { %713 = vst.msk [vmem:[#allocation2 + $0x130] sm:$0xff] %vm674_vm2, %v604_v42 }
 0x162   :  { %895 = vrot.lane.b32.xlu2 %v3711_v43, %s4074_s22 }
 0x163   :  { %893 = vrot.lane.b32.xlu1 %v3710_v47, %s4074_s22 }
 0x164   :  { %891 = vrot.lane.b32.xlu0 %v3709_v48, %s4074_s22  ;;  %v830_v49 = vpop.permute.xlu2 %829  ;;  %v3738_v48 = vld [vmem:[%s6746_s0 + $0x288] sm:$0xff] }
 0x165   :  { %v612_v52 = vpop.permute.xlu1 %611  ;;  %974 = vst.msk [vmem:[#allocation2 + $0x18] sm:$0xff] %vm970_vm3, %v830_v49  ;;  %v3737_v49 = vld [vmem:[%s6746_s0 + $0x1e8] sm:$0xff] }
 0x166   :  { %v610_v53 = vpop.permute.xlu0 %609  ;;  %717 = vst.msk [vmem:[#allocation2 + $0x150] sm:$0xff] %vm674_vm2, %v612_v52  ;;  %v3736_v52 = vld [vmem:[%s6746_s0 + $0x1d8] sm:$0xff] }
 0x167   :  { %716 = vst.msk [vmem:[#allocation2 + $0x148] sm:$0xff] %vm674_vm2, %v610_v53 }
 0x16a   :  { %901 = vrot.lane.b32.xlu2 %v3714_v54, %s4074_s22 }
 0x16b   :  { %899 = vrot.lane.b32.xlu1 %v3713_v55, %s4074_s22 }
 0x16c   :  { %897 = vrot.lane.b32.xlu0 %v3712_v59, %s4074_s22  ;;  %v836_v60 = vpop.permute.xlu2 %835  ;;  %v3741_v59 = vld [vmem:[%s6746_s0 + $0x2b8] sm:$0xff] }
 0x16d   :  { %v618_v61 = vpop.permute.xlu1 %617  ;;  %977 = vst.msk [vmem:[#allocation2 + $0x30] sm:$0xff] %vm970_vm3, %v836_v60  ;;  %v3740_v60 = vld [vmem:[%s6746_s0 + $0x2a8] sm:$0xff] }
 0x16e   :  { %v616_v62 = vpop.permute.xlu0 %615  ;;  %720 = vst.msk [vmem:[#allocation2 + $0x168] sm:$0xff] %vm674_vm2, %v618_v61  ;;  %v3739_v61 = vld [vmem:[%s6746_s0 + $0x298] sm:$0xff] }
 0x16f   :  { %719 = vst.msk [vmem:[#allocation2 + $0x160] sm:$0xff] %vm674_vm2, %v616_v62 }
 0x172   :  { %907 = vrot.lane.b32.xlu2 %v3717_v63, %s4074_s22 }
 0x173   :  { %905 = vrot.lane.b32.xlu1 %v3716_v1, %s4074_s22 }
 0x174   :  { %903 = vrot.lane.b32.xlu0 %v3715_v2, %s4074_s22  ;;  %v842_v3 = vpop.permute.xlu2 %841  ;;  %v3744_v2 = vld [vmem:[%s6746_s0 + $0x2e8] sm:$0xff] }
 0x175   :  { %v624_v4 = vpop.permute.xlu1 %623  ;;  %980 = vst.msk [vmem:[#allocation2 + $0x48] sm:$0xff] %vm970_vm3, %v842_v3  ;;  %v3743_v3 = vld [vmem:[%s6746_s0 + $0x2d8] sm:$0xff] }
 0x176   :  { %v622_v5 = vpop.permute.xlu0 %621  ;;  %723 = vst.msk [vmem:[#allocation2 + $0x180] sm:$0xff] %vm674_vm2, %v624_v4  ;;  %v3742_v4 = vld [vmem:[%s6746_s0 + $0x2c8] sm:$0xff] }
 0x177   :  { %722 = vst.msk [vmem:[#allocation2 + $0x178] sm:$0xff] %vm674_vm2, %v622_v5  ;;  %vm3126_vm2 = vcmask 458112  }
 0x17a   :  { %913 = vrot.lane.b32.xlu2 %v3720_v6, %s4074_s22 }
 0x17b   :  { %911 = vrot.lane.b32.xlu1 %v3719_v7, %s4074_s22 }
 0x17c   :  { %909 = vrot.lane.b32.xlu0 %v3718_v8, %s4074_s22  ;;  %v848_v9 = vpop.permute.xlu2 %847  ;;  %v3747_v8 = vld [vmem:[%s6746_s0 + $0x3a8] sm:$0xff] }
 0x17d   :  { %v828_v10 = vpop.permute.xlu1 %827  ;;  %983 = vst.msk [vmem:[#allocation2 + $0x60] sm:$0xff] %vm970_vm3, %v848_v9  ;;  %v3746_v9 = vld [vmem:[%s6746_s0 + $0x398] sm:$0xff] }
 0x17e   :  { %v826_v11 = vpop.permute.xlu0 %825  ;;  %973 = vst.msk [vmem:[#allocation2 + $0x10] sm:$0xff] %vm970_vm3, %v828_v10  ;;  %v3745_v10 = vld [vmem:[%s6746_s0 + $0x388] sm:$0xff] }
 0x17f   :  { %972 = vst.msk [vmem:[#allocation2 + $0x8] sm:$0xff] %vm970_vm3, %v826_v11 }
 0x182   :  { %919 = vrot.lane.b32.xlu2 %v3723_v12, %s4074_s22 }
 0x183   :  { %917 = vrot.lane.b32.xlu1 %v3722_v13, %s4074_s22 }
 0x184   :  { %915 = vrot.lane.b32.xlu0 %v3721_v14, %s4074_s22  ;;  %v854_v15 = vpop.permute.xlu2 %853  ;;  %s4075_s22 = smov 16   ;;  %v3750_v14 = vld [vmem:[%s6746_s0 + $0x3d8] sm:$0xff] }
 0x185   :  { %v834_v16 = vpop.permute.xlu1 %833  ;;  %986 = vst.msk [vmem:[#allocation2 + $0x78] sm:$0xff] %vm970_vm3, %v854_v15  ;;  %v3749_v15 = vld [vmem:[%s6746_s0 + $0x3c8] sm:$0xff] }
 0x186   :  { %v832_v17 = vpop.permute.xlu0 %831  ;;  %976 = vst.msk [vmem:[#allocation2 + $0x28] sm:$0xff] %vm970_vm3, %v834_v16  ;;  %v3748_v16 = vld [vmem:[%s6746_s0 + $0x3b8] sm:$0xff] }
 0x187   :  { %975 = vst.msk [vmem:[#allocation2 + $0x20] sm:$0xff] %vm970_vm3, %v832_v17 }
 0x18a   :  { %1123 = vrot.lane.b32.xlu2 %v3726_v18, %s4075_s22 }
 0x18b   :  { %1121 = vrot.lane.b32.xlu1 %v3725_v19, %s4075_s22 }
 0x18c   :  { %1119 = vrot.lane.b32.xlu0 %v3724_v20, %s4075_s22  ;;  %v860_v21 = vpop.permute.xlu2 %859  ;;  %v3753_v20 = vld [vmem:[%s6746_s0 + $0x498] sm:$0xff] }
 0x18d   :  { %v840_v22 = vpop.permute.xlu1 %839  ;;  %989 = vst.msk [vmem:[#allocation2 + $0x90] sm:$0xff] %vm970_vm3, %v860_v21  ;;  %v3752_v21 = vld [vmem:[%s6746_s0 + $0x488] sm:$0xff] }
 0x18e   :  { %v838_v23 = vpop.permute.xlu0 %837  ;;  %979 = vst.msk [vmem:[#allocation2 + $0x40] sm:$0xff] %vm970_vm3, %v840_v22  ;;  %v3751_v22 = vld [vmem:[%s6746_s0 + $0x3e8] sm:$0xff] }
 0x18f   :  { %978 = vst.msk [vmem:[#allocation2 + $0x38] sm:$0xff] %vm970_vm3, %v838_v23 }
 0x192   :  { %1129 = vrot.lane.b32.xlu2 %v3729_v25, %s4075_s22 }
 0x193   :  { %1127 = vrot.lane.b32.xlu1 %v3728_v24, %s4075_s22 }
 0x194   :  { %1125 = vrot.lane.b32.xlu0 %v3727_v26, %s4075_s22  ;;  %v866_v27 = vpop.permute.xlu2 %865  ;;  %v3756_v26 = vld [vmem:[%s6746_s0 + $0x4c8] sm:$0xff] }
 0x195   :  { %v846_v28 = vpop.permute.xlu1 %845  ;;  %992 = vst.msk [vmem:[#allocation2 + $0xa8] sm:$0xff] %vm970_vm3, %v866_v27  ;;  %v3755_v27 = vld [vmem:[%s6746_s0 + $0x4b8] sm:$0xff] }
 0x196   :  { %v844_v29 = vpop.permute.xlu0 %843  ;;  %982 = vst.msk [vmem:[#allocation2 + $0x58] sm:$0xff] %vm970_vm3, %v846_v28  ;;  %v3754_v28 = vld [vmem:[%s6746_s0 + $0x4a8] sm:$0xff] }
 0x197   :  { %981 = vst.msk [vmem:[#allocation2 + $0x50] sm:$0xff] %vm970_vm3, %v844_v29 }
 0x19a   :  { %1135 = vrot.lane.b32.xlu2 %v3732_v30, %s4075_s22 }
 0x19b   :  { %1133 = vrot.lane.b32.xlu1 %v3731_v31, %s4075_s22 }
 0x19c   :  { %1131 = vrot.lane.b32.xlu0 %v3730_v32, %s4075_s22  ;;  %v872_v33 = vpop.permute.xlu2 %871  ;;  %v3759_v32 = vld [vmem:[%s6746_s0 + $0x588] sm:$0xff] }
 0x19d   :  { %v852_v34 = vpop.permute.xlu1 %851  ;;  %995 = vst.msk [vmem:[#allocation2 + $0xc0] sm:$0xff] %vm970_vm3, %v872_v33  ;;  %v3758_v33 = vld [vmem:[%s6746_s0 + $0x4e8] sm:$0xff] }
 0x19e   :  { %v850_v35 = vpop.permute.xlu0 %849  ;;  %985 = vst.msk [vmem:[#allocation2 + $0x70] sm:$0xff] %vm970_vm3, %v852_v34  ;;  %v3757_v34 = vld [vmem:[%s6746_s0 + $0x4d8] sm:$0xff] }
 0x19f   :  { %984 = vst.msk [vmem:[#allocation2 + $0x68] sm:$0xff] %vm970_vm3, %v850_v35 }
 0x1a2   :  { %1141 = vrot.lane.b32.xlu2 %v3735_v37, %s4075_s22 }
 0x1a3   :  { %1139 = vrot.lane.b32.xlu1 %v3734_v38, %s4075_s22 }
 0x1a4   :  { %1137 = vrot.lane.b32.xlu0 %v3733_v41, %s4075_s22  ;;  %v878_v42 = vpop.permute.xlu2 %877  ;;  %v3762_v41 = vld [vmem:[%s6746_s0 + $0x5b8] sm:$0xff] }
 0x1a5   :  { %v858_v43 = vpop.permute.xlu1 %857  ;;  %998 = vst.msk [vmem:[#allocation2 + $0xd8] sm:$0xff] %vm970_vm3, %v878_v42  ;;  %v3761_v42 = vld [vmem:[%s6746_s0 + $0x5a8] sm:$0xff] }
 0x1a6   :  { %v856_v47 = vpop.permute.xlu0 %855  ;;  %988 = vst.msk [vmem:[#allocation2 + $0x88] sm:$0xff] %vm970_vm3, %v858_v43  ;;  %v3760_v43 = vld [vmem:[%s6746_s0 + $0x598] sm:$0xff] }
 0x1a7   :  { %987 = vst.msk [vmem:[#allocation2 + $0x80] sm:$0xff] %vm970_vm3, %v856_v47 }
 0x1aa   :  { %1147 = vrot.lane.b32.xlu2 %v3738_v48, %s4075_s22 }
 0x1ab   :  { %1145 = vrot.lane.b32.xlu1 %v3737_v49, %s4075_s22 }
 0x1ac   :  { %1143 = vrot.lane.b32.xlu0 %v3736_v52, %s4075_s22  ;;  %v884_v53 = vpop.permute.xlu2 %883  ;;  %v3765_v52 = vld [vmem:[%s6746_s0 + $0x5e8] sm:$0xff] }
 0x1ad   :  { %v864_v54 = vpop.permute.xlu1 %863  ;;  %1001 = vst.msk [vmem:[#allocation2 + $0xf0] sm:$0xff] %vm970_vm3, %v884_v53  ;;  %v3764_v53 = vld [vmem:[%s6746_s0 + $0x5d8] sm:$0xff] }
 0x1ae   :  { %v862_v55 = vpop.permute.xlu0 %861  ;;  %991 = vst.msk [vmem:[#allocation2 + $0xa0] sm:$0xff] %vm970_vm3, %v864_v54  ;;  %v3763_v54 = vld [vmem:[%s6746_s0 + $0x5c8] sm:$0xff] }
 0x1af   :  { %990 = vst.msk [vmem:[#allocation2 + $0x98] sm:$0xff] %vm970_vm3, %v862_v55 }
 0x1b2   :  { %1153 = vrot.lane.b32.xlu2 %v3741_v59, %s4075_s22 }
 0x1b3   :  { %1151 = vrot.lane.b32.xlu1 %v3740_v60, %s4075_s22 }
 0x1b4   :  { %1149 = vrot.lane.b32.xlu0 %v3739_v61, %s4075_s22  ;;  %v890_v62 = vpop.permute.xlu2 %889  ;;  %v3767_v61 = vld [vmem:[%s6746_s0 + $0x698] sm:$0xff] }
 0x1b5   :  { %v870_v63 = vpop.permute.xlu1 %869  ;;  %1004 = vst.msk [vmem:[#allocation2 + $0x108] sm:$0xff] %vm970_vm3, %v890_v62  ;;  %v3766_v62 = vld [vmem:[%s6746_s0 + $0x688] sm:$0xff] }
 0x1b6   :  { %v868_v1 = vpop.permute.xlu0 %867  ;;  %994 = vst.msk [vmem:[#allocation2 + $0xb8] sm:$0xff] %vm970_vm3, %v870_v63 }
 0x1b7   :  { %993 = vst.msk [vmem:[#allocation2 + $0xb0] sm:$0xff] %vm970_vm3, %v868_v1 }
 0x1ba   :  { %1159 = vrot.lane.b32.xlu2 %v3744_v2, %s4075_s22 }
 0x1bb   :  { %1157 = vrot.lane.b32.xlu1 %v3743_v3, %s4075_s22  ;;  %v3823_v3 = vld [vmem:[%s6746_s0 + $0x110] sm:$0xff] }
 0x1bc   :  { %1155 = vrot.lane.b32.xlu0 %v3742_v4, %s4075_s22  ;;  %v896_v5 = vpop.permute.xlu2 %895 }
 0x1bd   :  { %v876_v6 = vpop.permute.xlu1 %875  ;;  %1007 = vst.msk [vmem:[#allocation2 + $0x120] sm:$0xff] %vm970_vm3, %v896_v5 }
 0x1be   :  { %v874_v7 = vpop.permute.xlu0 %873  ;;  %997 = vst.msk [vmem:[#allocation2 + $0xd0] sm:$0xff] %vm970_vm3, %v876_v6 }
 0x1bf   :  { %996 = vst.msk [vmem:[#allocation2 + $0xc8] sm:$0xff] %vm970_vm3, %v874_v7  ;;  %v3872_v7 = vld [vmem:[%s6746_s0 + $0x118] sm:$0xff] }
 0x1c2   :  { %1165 = vrot.lane.b32.xlu2 %v3747_v8, %s4075_s22  ;;  %v3871_v8 = vld [vmem:[%s6746_s0 + $0x108] sm:$0xff] }
 0x1c3   :  { %1163 = vrot.lane.b32.xlu1 %v3746_v9, %s4075_s22 }
 0x1c4   :  { %1161 = vrot.lane.b32.xlu0 %v3745_v10, %s4075_s22  ;;  %v902_v11 = vpop.permute.xlu2 %901 }
 0x1c5   :  { %v882_v12 = vpop.permute.xlu1 %881  ;;  %1010 = vst.msk [vmem:[#allocation2 + $0x138] sm:$0xff] %vm970_vm3, %v902_v11  ;;  %v3921_v11 = vld [vmem:[%s6746_s0 + $0x120] sm:$0xff] }
 0x1c6   :  { %v880_v13 = vpop.permute.xlu0 %879  ;;  %1000 = vst.msk [vmem:[#allocation2 + $0xe8] sm:$0xff] %vm970_vm3, %v882_v12 }
 0x1c7   :  { %999 = vst.msk [vmem:[#allocation2 + $0xe0] sm:$0xff] %vm970_vm3, %v880_v13 }
 0x1ca   :  { %1171 = vrot.lane.b32.xlu2 %v3750_v14, %s4075_s22 }
 0x1cb   :  { %1169 = vrot.lane.b32.xlu1 %v3749_v15, %s4075_s22  ;;  %v3873_v15 = vld [vmem:[%s6746_s0 + $0x128] sm:$0xff] }
 0x1cc   :  { %1167 = vrot.lane.b32.xlu0 %v3748_v16, %s4075_s22  ;;  %v908_v17 = vpop.permute.xlu2 %907 }
 0x1cd   :  { %v888_v18 = vpop.permute.xlu1 %887  ;;  %1013 = vst.msk [vmem:[#allocation2 + $0x150] sm:$0xff] %vm970_vm3, %v908_v17 }
 0x1ce   :  { %v886_v19 = vpop.permute.xlu0 %885  ;;  %1003 = vst.msk [vmem:[#allocation2 + $0x100] sm:$0xff] %vm970_vm3, %v888_v18  ;;  %v3923_v18 = vld [vmem:[%s6746_s0 + $0x140] sm:$0xff] }
 0x1cf   :  { %1002 = vst.msk [vmem:[#allocation2 + $0xf8] sm:$0xff] %vm970_vm3, %v886_v19  ;;  %v3874_v19 = vld [vmem:[%s6746_s0 + $0x138] sm:$0xff] }
 0x1d2   :  { %1177 = vrot.lane.b32.xlu2 %v3753_v20, %s4075_s22 }
 0x1d3   :  { %1175 = vrot.lane.b32.xlu1 %v3752_v21, %s4075_s22 }
 0x1d4   :  { %1173 = vrot.lane.b32.xlu0 %v3751_v22, %s4075_s22  ;;  %v914_v23 = vpop.permute.xlu2 %913 }
 0x1d5   :  { %v894_v25 = vpop.permute.xlu1 %893  ;;  %1016 = vst.msk [vmem:[#allocation2 + $0x168] sm:$0xff] %vm970_vm3, %v914_v23 }
 0x1d6   :  { %v892_v24 = vpop.permute.xlu0 %891  ;;  %1006 = vst.msk [vmem:[#allocation2 + $0x118] sm:$0xff] %vm970_vm3, %v894_v25 }
 0x1d7   :  { %1005 = vst.msk [vmem:[#allocation2 + $0x110] sm:$0xff] %vm970_vm3, %v892_v24 }
 0x1da   :  { %1183 = vrot.lane.b32.xlu2 %v3756_v26, %s4075_s22  ;;  %v3876_v26 = vld [vmem:[%s6746_s0 + $0x158] sm:$0xff] }
 0x1db   :  { %1181 = vrot.lane.b32.xlu1 %v3755_v27, %s4075_s22 }
 0x1dc   :  { %1179 = vrot.lane.b32.xlu0 %v3754_v28, %s4075_s22  ;;  %v920_v29 = vpop.permute.xlu2 %919 }
 0x1dd   :  { %v900_v30 = vpop.permute.xlu1 %899  ;;  %1019 = vst.msk [vmem:[#allocation2 + $0x180] sm:$0xff] %vm970_vm3, %v920_v29 }
 0x1de   :  { %v898_v31 = vpop.permute.xlu0 %897  ;;  %1009 = vst.msk [vmem:[#allocation2 + $0x130] sm:$0xff] %vm970_vm3, %v900_v30  ;;  %v3779_v30 = vld [vmem:[%s6746_s0 + $0xf0] sm:$0xff] }
 0x1df   :  { %1008 = vst.msk [vmem:[#allocation2 + $0x128] sm:$0xff] %vm970_vm3, %v898_v31  ;;  %v3925_v31 = vld [vmem:[%s6746_s0 + $0x160] sm:$0xff] }
 0x1e2   :  { %1189 = vrot.lane.b32.xlu2 %v3759_v32, %s4075_s22 }
 0x1e3   :  { %1187 = vrot.lane.b32.xlu1 %v3758_v33, %s4075_s22 }
 0x1e4   :  { %1185 = vrot.lane.b32.xlu0 %v3757_v34, %s4075_s22  ;;  %v1124_v35 = vpop.permute.xlu2 %1123 }
 0x1e5   :  { %v906_v37 = vpop.permute.xlu1 %905  ;;  %1269 = vst.msk [vmem:[#allocation2 + $0x10] sm:$0xff] %vm1266_vm4, %v1124_v35  ;;  %v3829_v35 = vld [vmem:[%s6746_s0 + $0x200] sm:$0xff] }
 0x1e6   :  { %v904_v38 = vpop.permute.xlu0 %903  ;;  %1012 = vst.msk [vmem:[#allocation2 + $0x148] sm:$0xff] %vm970_vm3, %v906_v37 }
 0x1e7   :  { %1011 = vst.msk [vmem:[#allocation2 + $0x140] sm:$0xff] %vm970_vm3, %v904_v38 }
 0x1ea   :  { %1195 = vrot.lane.b32.xlu2 %v3762_v41, %s4075_s22 }
 0x1eb   :  { %1193 = vrot.lane.b32.xlu1 %v3761_v42, %s4075_s22  ;;  %v3926_v42 = vld [vmem:[%s6746_s0 + $0x170] sm:$0xff] }
 0x1ec   :  { %1191 = vrot.lane.b32.xlu0 %v3760_v43, %s4075_s22  ;;  %v1130_v47 = vpop.permute.xlu2 %1129  ;;  %v3878_v43 = vld [vmem:[%s6746_s0 + $0x208] sm:$0xff] }
 0x1ed   :  { %v912_v48 = vpop.permute.xlu1 %911  ;;  %1272 = vst.msk [vmem:[#allocation2 + $0x28] sm:$0xff] %vm1266_vm4, %v1130_v47 }
 0x1ee   :  { %v910_v49 = vpop.permute.xlu0 %909  ;;  %1015 = vst.msk [vmem:[#allocation2 + $0x160] sm:$0xff] %vm970_vm3, %v912_v48 }
 0x1ef   :  { %1014 = vst.msk [vmem:[#allocation2 + $0x158] sm:$0xff] %vm970_vm3, %v910_v49 }
 0x1f2   :  { %1201 = vrot.lane.b32.xlu2 %v3765_v52, %s4075_s22  ;;  %v3927_v52 = vld [vmem:[%s6746_s0 + $0x210] sm:$0xff] }
 0x1f3   :  { %1199 = vrot.lane.b32.xlu1 %v3764_v53, %s4075_s22 }
 0x1f4   :  { %1197 = vrot.lane.b32.xlu0 %v3763_v54, %s4075_s22  ;;  %v1136_v55 = vpop.permute.xlu2 %1135 }
 0x1f5   :  { %v918_v59 = vpop.permute.xlu1 %917  ;;  %1275 = vst.msk [vmem:[#allocation2 + $0x40] sm:$0xff] %vm1266_vm4, %v1136_v55 }
 0x1f6   :  { %v916_v60 = vpop.permute.xlu0 %915  ;;  %1018 = vst.msk [vmem:[#allocation2 + $0x178] sm:$0xff] %vm970_vm3, %v918_v59  ;;  %v3879_v59 = vld [vmem:[%s6746_s0 + $0x218] sm:$0xff] }
 0x1f7   :  { %1017 = vst.msk [vmem:[#allocation2 + $0x170] sm:$0xff] %vm970_vm3, %v916_v60  ;;  %vm3166_vm3 = vcmask 523712  }
 0x1fa   :  { %1415 = vrot.lane.b32.xlu2 %v4826_v40, %s4076_s16  ;;  %v3822_v40 = vld [vmem:[%s6746_s0 + $0x100] sm:$0xff] }
 0x1fb   :  { %1205 = vrot.lane.b32.xlu1 %v3767_v61, %s4075_s22 }
 0x1fc   :  { %1203 = vrot.lane.b32.xlu0 %v3766_v62, %s4075_s22  ;;  %v1142_v63 = vpop.permute.xlu2 %1141  ;;  %v3929_v62 = vld [vmem:[%s6746_s0 + $0x230] sm:$0xff] }
 0x1fd   :  { %v1122_v1 = vpop.permute.xlu1 %1121  ;;  %1278 = vst.msk [vmem:[#allocation2 + $0x58] sm:$0xff] %vm1266_vm4, %v1142_v63  ;;  %v3880_v63 = vld [vmem:[%s6746_s0 + $0x228] sm:$0xff] }
 0x1fe   :  { %v1120_v2 = vpop.permute.xlu0 %1119  ;;  %1268 = vst.msk [vmem:[#allocation2 + $0x8] sm:$0xff] %vm1266_vm4, %v1122_v1  ;;  %v2578_v1 = vld [vmem:[%s6747_s1 + $0x10] sm:$0x3] }
 0x1ff   :  { %1267 = vst.msk [vmem:[#allocation2] sm:$0xff] %vm1266_vm4, %v1120_v2  ;;  %v2592_v2 = vunpack.c.l.b16 %v2578_v1 }
 0x202   :  { %1713 = vrot.lane.b32.xlu2 %v3823_v3, %s4077_s21 }
 0x203   :  { %1711 = vrot.lane.b32.xlu1 %v3822_v40, %s4077_s21 }
 0x204   :  { %1417 = vrot.lane.b32.xlu0 %v4821_v39, %s4076_s16  ;;  %v1148_v4 = vpop.permute.xlu2 %1147 }
 0x205   :  { %v1128_v5 = vpop.permute.xlu1 %1127  ;;  %1281 = vst.msk [vmem:[#allocation2 + $0x70] sm:$0xff] %vm1266_vm4, %v1148_v4 }
 0x206   :  { %v1126_v6 = vpop.permute.xlu0 %1125  ;;  %1271 = vst.msk [vmem:[#allocation2 + $0x20] sm:$0xff] %vm1266_vm4, %v1128_v5 }
 0x207   :  { %1270 = vst.msk [vmem:[#allocation2 + $0x18] sm:$0xff] %vm1266_vm4, %v1126_v6 }
 0x20a   :  { %2303 = vrot.lane.b32.xlu2 %v3823_v3, %s4078_s27  ;;  %v2595_v3 = vpack.c.b16 %v2592_v2, %v2592_v2 }
 0x20b   :  { %2009 = vrot.lane.b32.xlu1 %v3872_v7, %s4079_s28  ;;  %v4033_v7 = vld [vmem:[%s6747_s1 + $0x8] sm:$0xff] }
 0x20c   :  { %2007 = vrot.lane.b32.xlu0 %v3871_v8, %s4079_s28  ;;  %v1154_v39 = vpop.permute.xlu2 %1153  ;;  %v2676_v6 = vsel %vm2674_vm6, %v2595_v3, 0  ;;  %v4032_v8 = vld [vmem:[%s6747_s1] sm:$0xff]  ;;  %vm3531_vm6 = vcmask 261120  }
 0x20d   :  { %v1134_v9 = vpop.permute.xlu1 %1133  ;;  %1284 = vst.msk [vmem:[#allocation2 + $0x88] sm:$0xff] %vm1266_vm4, %v1154_v39  ;;  %2683 = vmatpush.bf16.msra.mxu0 %v2676_v6  ;;  %4039 = vmatpush.bf16.msra.mxu2 %v2676_v6 }
 0x20e   :  { %v1132_v10 = vpop.permute.xlu0 %1131  ;;  %1274 = vst.msk [vmem:[#allocation2 + $0x38] sm:$0xff] %vm1266_vm4, %v1134_v9  ;;  %4038 = vmatpush.bf16.msra.mxu1 %v2676_v6  ;;  %4040 = vmatpush.bf16.msra.mxu3 %v2676_v6  ;;  %v3793_v6 = vld [vmem:[%s6746_s0 + $0x2f0] sm:$0xff] }
 0x20f   :  { %1273 = vst.msk [vmem:[#allocation2 + $0x30] sm:$0xff] %vm1266_vm4, %v1132_v10 }
 0x211   :  { %2684 = vmatpush.bf16.msra.mxu0 %v4033_v7  ;;  %4042 = vmatpush.bf16.msra.mxu2 %v4033_v7 }
 0x212   :  { %1421 = vrot.lane.b32.xlu2 %v4850_v46, %s4076_s16  ;;  %v3825_v46 = vld [vmem:[%s6746_s0 + $0x130] sm:$0xff]  ;;  %4041 = vmatpush.bf16.msra.mxu1 %v4033_v7 }
 0x213   :  { %1419 = vrot.lane.b32.xlu1 %v4816_v36, %s4076_s16  ;;  %4043 = vmatpush.bf16.msra.mxu3 %v4033_v7  ;;  %v5614_v7 = vld [vmem:[%s6746_s0 + $0x520] sm:$0xff] }
 0x214   :  { %2305 = vrot.lane.b32.xlu0 %v3921_v11, %s4078_s27  ;;  %v1160_v12 = vpop.permute.xlu2 %1159 }
 0x215   :  { %v1140_v13 = vpop.permute.xlu1 %1139  ;;  %1287 = vst.msk [vmem:[#allocation2 + $0xa0] sm:$0xff] %vm1266_vm4, %v1160_v12  ;;  %2685 = vmatpush.bf16.msra.mxu0 %v4032_v8  ;;  %4045 = vmatpush.bf16.msra.mxu2 %v4032_v8 }
 0x216   :  { %v1138_v14 = vpop.permute.xlu0 %1137  ;;  %1277 = vst.msk [vmem:[#allocation2 + $0x50] sm:$0xff] %vm1266_vm4, %v1140_v13  ;;  %4044 = vmatpush.bf16.msra.mxu1 %v4032_v8 }
 0x217   :  { %1276 = vst.msk [vmem:[#allocation2 + $0x48] sm:$0xff] %vm1266_vm4, %v1138_v14  ;;  %4046 = vmatpush.bf16.msra.mxu3 %v4032_v8 }
 0x21a   :  { %2011 = vrot.lane.b32.xlu2 %v3873_v15, %s4079_s28  ;;  %v3931_v15 = vld [vmem:[%s6746_s0 + $0x250] sm:$0xff] }
 0x21b   :  { %1717 = vrot.lane.b32.xlu1 %v3825_v46, %s4077_s21 }
 0x21c   :  { %1715 = vrot.lane.b32.xlu0 %v3921_v11, %s4077_s21  ;;  %v1166_v36 = vpop.permute.xlu2 %1165  ;;  %v3833_v11 = vld [vmem:[%s6746_s0 + $0x240] sm:$0xff] }
 0x21d   :  { %v1146_v16 = vpop.permute.xlu1 %1145  ;;  %1290 = vst.msk [vmem:[#allocation2 + $0xb8] sm:$0xff] %vm1266_vm4, %v1166_v36 }
 0x21e   :  { %v1144_v17 = vpop.permute.xlu0 %1143  ;;  %1280 = vst.msk [vmem:[#allocation2 + $0x68] sm:$0xff] %vm1266_vm4, %v1146_v16 }
 0x21f   :  { %1279 = vst.msk [vmem:[#allocation2 + $0x60] sm:$0xff] %vm1266_vm4, %v1144_v17  ;;  %v3835_v17 = vld [vmem:[%s6746_s0 + $0x260] sm:$0xff] }
 0x222   :  { %2309 = vrot.lane.b32.xlu2 %v3923_v18, %s4078_s27 }
 0x223   :  { %2307 = vrot.lane.b32.xlu1 %v3825_v46, %s4078_s27 }
 0x224   :  { %2013 = vrot.lane.b32.xlu0 %v3874_v19, %s4079_s28  ;;  %v1172_v20 = vpop.permute.xlu2 %1171 }
 0x225   :  { %v1152_v21 = vpop.permute.xlu1 %1151  ;;  %1293 = vst.msk [vmem:[#allocation2 + $0xd0] sm:$0xff] %vm1266_vm4, %v1172_v20 }
 0x226   :  { %v1150_v22 = vpop.permute.xlu0 %1149  ;;  %1283 = vst.msk [vmem:[#allocation2 + $0x80] sm:$0xff] %vm1266_vm4, %v1152_v21  ;;  %v3884_v21 = vld [vmem:[%s6746_s0 + $0x268] sm:$0xff] }
 0x227   :  { %1282 = vst.msk [vmem:[#allocation2 + $0x78] sm:$0xff] %vm1266_vm4, %v1150_v22  ;;  %v3883_v22 = vld [vmem:[%s6746_s0 + $0x258] sm:$0xff] }
 0x22a   :  { %1719 = vrot.lane.b32.xlu2 %v3923_v18, %s4077_s21 }
 0x22b   :  { %1425 = vrot.lane.b32.xlu1 %v4840_v44, %s4076_s16  ;;  %v3875_v44 = vld [vmem:[%s6746_s0 + $0x148] sm:$0xff] }
 0x22c   :  { %1423 = vrot.lane.b32.xlu0 %v4845_v45, %s4076_s16  ;;  %v1178_v23 = vpop.permute.xlu2 %1177  ;;  %v3827_v45 = vld [vmem:[%s6746_s0 + $0x150] sm:$0xff] }
 0x22d   :  { %v1158_v25 = vpop.permute.xlu1 %1157  ;;  %1296 = vst.msk [vmem:[#allocation2 + $0xe8] sm:$0xff] %vm1266_vm4, %v1178_v23 }
 0x22e   :  { %v1156_v24 = vpop.permute.xlu0 %1155  ;;  %1286 = vst.msk [vmem:[#allocation2 + $0x98] sm:$0xff] %vm1266_vm4, %v1158_v25 }
 0x22f   :  { %1285 = vst.msk [vmem:[#allocation2 + $0x90] sm:$0xff] %vm1266_vm4, %v1156_v24 }
 0x232   :  { %2017 = vrot.lane.b32.xlu2 %v3876_v26, %s4079_s28 }
 0x233   :  { %2015 = vrot.lane.b32.xlu1 %v3875_v44, %s4079_s28 }
 0x234   :  { %1721 = vrot.lane.b32.xlu0 %v3827_v45, %s4077_s21  ;;  %v1184_v27 = vpop.permute.xlu2 %1183 }
 0x235   :  { %v1164_v28 = vpop.permute.xlu1 %1163  ;;  %1299 = vst.msk [vmem:[#allocation2 + $0x100] sm:$0xff] %vm1266_vm4, %v1184_v27  ;;  %v3788_v27 = vld [vmem:[%s6746_s0 + $0x2a0] sm:$0xff] }
 0x236   :  { %v1162_v29 = vpop.permute.xlu0 %1161  ;;  %1289 = vst.msk [vmem:[#allocation2 + $0xb0] sm:$0xff] %vm1266_vm4, %v1164_v28  ;;  %v3787_v28 = vld [vmem:[%s6746_s0 + $0x290] sm:$0xff] }
 0x237   :  { %1288 = vst.msk [vmem:[#allocation2 + $0xa8] sm:$0xff] %vm1266_vm4, %v1162_v29  ;;  %v3933_v29 = vld [vmem:[%s6746_s0 + $0x270] sm:$0xff] }
 0x23a   :  { %1427 = vrot.lane.b32.xlu2 %v3779_v30, %s4076_s16 }
 0x23b   :  { %2313 = vrot.lane.b32.xlu1 %v3925_v31, %s4078_s27 }
 0x23c   :  { %2311 = vrot.lane.b32.xlu0 %v3827_v45, %s4078_s27  ;;  %v1190_v32 = vpop.permute.xlu2 %1189 }
 0x23d   :  { %v1170_v33 = vpop.permute.xlu1 %1169  ;;  %1302 = vst.msk [vmem:[#allocation2 + $0x118] sm:$0xff] %vm1266_vm4, %v1190_v32 }
 0x23e   :  { %v1168_v34 = vpop.permute.xlu0 %1167  ;;  %1292 = vst.msk [vmem:[#allocation2 + $0xc8] sm:$0xff] %vm1266_vm4, %v1170_v33  ;;  %v3885_v33 = vld [vmem:[%s6746_s0 + $0x308] sm:$0xff] }
 0x23f   :  { %1291 = vst.msk [vmem:[#allocation2 + $0xc0] sm:$0xff] %vm1266_vm4, %v1168_v34  ;;  %v3837_v34 = vld [vmem:[%s6746_s0 + $0x310] sm:$0xff] }
 0x242   :  { %1725 = vrot.lane.b32.xlu2 %v3829_v35, %s4077_s21  ;;  %v3836_v35 = vld [vmem:[%s6746_s0 + $0x300] sm:$0xff] }
 0x243   :  { %1723 = vrot.lane.b32.xlu1 %v3925_v31, %s4077_s21 }
 0x244   :  { %1429 = vrot.lane.b32.xlu0 %v4869_v50, %s4076_s16  ;;  %v1196_v37 = vpop.permute.xlu2 %1195  ;;  %v3877_v50 = vld [vmem:[%s6746_s0 + $0x168] sm:$0xff] }
 0x245   :  { %v1176_v38 = vpop.permute.xlu1 %1175  ;;  %1305 = vst.msk [vmem:[#allocation2 + $0x130] sm:$0xff] %vm1266_vm4, %v1196_v37 }
 0x246   :  { %v1174_v41 = vpop.permute.xlu0 %1173  ;;  %1295 = vst.msk [vmem:[#allocation2 + $0xe0] sm:$0xff] %vm1266_vm4, %v1176_v38 }
 0x247   :  { %1294 = vst.msk [vmem:[#allocation2 + $0xd8] sm:$0xff] %vm1266_vm4, %v1174_v41 }
 0x24a   :  { %2315 = vrot.lane.b32.xlu2 %v3926_v42, %s4078_s27 }
 0x24b   :  { %2021 = vrot.lane.b32.xlu1 %v3878_v43, %s4079_s28 }
 0x24c   :  { %2019 = vrot.lane.b32.xlu0 %v3877_v50, %s4079_s28  ;;  %v1202_v47 = vpop.permute.xlu2 %1201  ;;  %v5565_v50 = vld [vmem:[%s6746_s0 + $0x320] sm:$0xff] }
 0x24d   :  { %v1182_v48 = vpop.permute.xlu1 %1181  ;;  %1308 = vst.msk [vmem:[#allocation2 + $0x148] sm:$0xff] %vm1266_vm4, %v1202_v47 }
 0x24e   :  { %v1180_v49 = vpop.permute.xlu0 %1179  ;;  %1298 = vst.msk [vmem:[#allocation2 + $0xf8] sm:$0xff] %vm1266_vm4, %v1182_v48  ;;  %v3886_v48 = vld [vmem:[%s6746_s0 + $0x318] sm:$0xff] }
 0x24f   :  { %1297 = vst.msk [vmem:[#allocation2 + $0xf0] sm:$0xff] %vm1266_vm4, %v1180_v49 }
 0x252   :  { %1433 = vrot.lane.b32.xlu2 %v4895_v58, %s4076_s16 }
 0x253   :  { %1431 = vrot.lane.b32.xlu1 %v4864_v51, %s4076_s16  ;;  %v3831_v51 = vld [vmem:[%s6746_s0 + $0x220] sm:$0xff] }
 0x254   :  { %2317 = vrot.lane.b32.xlu0 %v3927_v52, %s4078_s27  ;;  %v1416_v53 = vpop.permute.xlu2 %1415 }
 0x255   :  { %v1188_v54 = vpop.permute.xlu1 %1187  ;;  %1563 = vst.msk [vmem:[#allocation2] sm:$0xff] %vm1562_vm5, %v1416_v53 }
 0x256   :  { %v1186_v55 = vpop.permute.xlu0 %1185  ;;  %1301 = vst.msk [vmem:[#allocation2 + $0x110] sm:$0xff] %vm1266_vm4, %v1188_v54  ;;  %v3850_v54 = vld [vmem:[%s6746_s0 + $0x500] sm:$0xff] }
 0x257   :  { %1300 = vst.msk [vmem:[#allocation2 + $0x108] sm:$0xff] %vm1266_vm4, %v1186_v55  ;;  %v3802_v55 = vld [vmem:[%s6746_s0 + $0x4a0] sm:$0xff] }
 0x25a   :  { %2023 = vrot.lane.b32.xlu2 %v3879_v59, %s4079_s28  ;;  %v3801_v59 = vld [vmem:[%s6746_s0 + $0x490] sm:$0xff] }
 0x25b   :  { %1729 = vrot.lane.b32.xlu1 %v3831_v51, %s4077_s21 }
 0x25c   :  { %1727 = vrot.lane.b32.xlu0 %v3927_v52, %s4077_s21  ;;  %v1714_v58 = vpop.permute.xlu2 %1713 }
 0x25d   :  { %v1194_v60 = vpop.permute.xlu1 %1193 }
 0x25e   :  { %1304 = vst.msk [vmem:[#allocation2 + $0x128] sm:$0xff] %vm1266_vm4, %v1194_v60  ;;  %v1192_v61 = vpop.permute.xlu0 %1191 }
 0x25f   :  { %1303 = vst.msk [vmem:[#allocation2 + $0x120] sm:$0xff] %vm1266_vm4, %v1192_v61  ;;  %v3900_v61 = vld [vmem:[%s6746_s0 + $0x518] sm:$0xff] }
 0x262   :  { %2321 = vrot.lane.b32.xlu2 %v3929_v62, %s4078_s27 }
 0x263   :  { %2319 = vrot.lane.b32.xlu1 %v3831_v51, %s4078_s27 }
 0x264   :  { %2025 = vrot.lane.b32.xlu0 %v3880_v63, %s4079_s28  ;;  %v2304_v40 = vpop.permute.xlu2 %2303  ;;  %v3851_v63 = vld [vmem:[%s6746_s0 + $0x510] sm:$0xff] }
 0x265   :  { %v1200_v4 = vpop.permute.xlu1 %1199 }
 0x266   :  { %1307 = vst.msk [vmem:[#allocation2 + $0x140] sm:$0xff] %vm1266_vm4, %v1200_v4  ;;  %v1198_v5 = vpop.permute.xlu0 %1197 }
 0x267   :  { %1306 = vst.msk [vmem:[#allocation2 + $0x138] sm:$0xff] %vm1266_vm4, %v1198_v5 }
 0x26a   :  { %1731 = vrot.lane.b32.xlu2 %v3929_v62, %s4077_s21  ;;  %v3899_v62 = vld [vmem:[%s6746_s0 + $0x508] sm:$0xff] }
 0x26b   :  { %1437 = vrot.lane.b32.xlu1 %v4885_v56, %s4076_s16  ;;  %v3882_v56 = vld [vmem:[%s6746_s0 + $0x248] sm:$0xff] }
 0x26c   :  { %1435 = vrot.lane.b32.xlu0 %v4890_v57, %s4076_s16  ;;  %v1422_v39 = vpop.permute.xlu2 %1421  ;;  %v3881_v57 = vld [vmem:[%s6746_s0 + $0x238] sm:$0xff] }
 0x26d   :  { %v1206_v9 = vpop.permute.xlu1 %1205  ;;  %1566 = vst.msk [vmem:[#allocation2 + $0x18] sm:$0xff] %vm1562_vm5, %v1422_v39 }
 0x26e   :  { %v1204_v10 = vpop.permute.xlu0 %1203  ;;  %1310 = vst.msk [vmem:[#allocation2 + $0x158] sm:$0xff] %vm1266_vm4, %v1206_v9 }
 0x26f   :  { %1309 = vst.msk [vmem:[#allocation2 + $0x150] sm:$0xff] %vm1266_vm4, %v1204_v10  ;;  %v3843_v10 = vld [vmem:[%s6746_s0 + $0x400] sm:$0xff] }
 0x272   :  { %2029 = vrot.lane.b32.xlu2 %v3882_v56, %s4079_s28  ;;  %v5630_v56 = vld [vmem:[%s6746_s0 + $0x360] sm:$0xff] }
 0x273   :  { %2027 = vrot.lane.b32.xlu1 %v3881_v57, %s4079_s28  ;;  %v3794_v57 = vld [vmem:[%s6746_s0 + $0x390] sm:$0xff] }
 0x274   :  { %1733 = vrot.lane.b32.xlu0 %v3833_v11, %s4077_s21  ;;  %v2012_v12 = vpop.permute.xlu2 %2011 }
 0x275   :  { %v1712_v13 = vpop.permute.xlu1 %1711 }
 0x276   :  { %1859 = vst.msk [vmem:[#allocation2] sm:$0xff] %vm1858_vm7, %v1712_v13  ;;  %v1418_v14 = vpop.permute.xlu0 %1417 }
 0x277   :  { %1564 = vst.msk [vmem:[#allocation2 + $0x8] sm:$0xff] %vm1562_vm5, %v1418_v14  ;;  %v3789_v14 = vld [vmem:[%s6746_s0 + $0x2b0] sm:$0xff] }
 0x278   :  { %1860 = vst.msk [vmem:[#allocation2 + $0x8] sm:$0xff] %vm1858_vm7, %v1714_v58 }
 0x27a   :  { %1439 = vrot.lane.b32.xlu2 %v4915_v0, %s4076_s16  ;;  %v3786_v0 = vld [vmem:[%s6746_s0 + $0x1f0] sm:$0xff] }
 0x27b   :  { %2325 = vrot.lane.b32.xlu1 %v3931_v15, %s4078_s27 }
 0x27c   :  { %2323 = vrot.lane.b32.xlu0 %v3833_v11, %s4078_s27  ;;  %v2310_v46 = vpop.permute.xlu2 %2309 }
 0x27d   :  { %v2010_v36 = vpop.permute.xlu1 %2009 }
 0x27e   :  { %2156 = vst.msk [vmem:[#allocation2 + $0x8] sm:$0xff] %vm2154_vm8, %v2010_v36  ;;  %v2008_v16 = vpop.permute.xlu0 %2007 }
 0x27f   :  { %2155 = vst.msk [vmem:[#allocation2] sm:$0xff] %vm2154_vm8, %v2008_v16 }
 0x280   :  { %2451 = vst.msk [vmem:[#allocation2] sm:$0xff] %vm2450_vm9, %v2304_v40 }
 0x282   :  { %1737 = vrot.lane.b32.xlu2 %v3835_v17, %s4077_s21 }
 0x283   :  { %1735 = vrot.lane.b32.xlu1 %v3931_v15, %s4077_s21  ;;  %v3892_v15 = vld [vmem:[%s6746_s0 + $0x408] sm:$0xff] }
 0x284   :  { %1441 = vrot.lane.b32.xlu0 %v3786_v0, %s4076_s16  ;;  %v1720_v18 = vpop.permute.xlu2 %1719 }
 0x285   :  { %v1420_v19 = vpop.permute.xlu1 %1419 }
 0x286   :  { %1565 = vst.msk [vmem:[#allocation2 + $0x10] sm:$0xff] %vm1562_vm5, %v1420_v19  ;;  %v2306_v20 = vpop.permute.xlu0 %2305 }
 0x287   :  { %2452 = vst.msk [vmem:[#allocation2 + $0x8] sm:$0xff] %vm2450_vm9, %v2306_v20  ;;  %v2500_v23 = vld [vmem:[#allocation2] sm:$0xff]  ;;  %v5659_v20 = vld [vmem:[%s6746_s0 + $0x410] sm:$0xff] }
 0x28a   :  { %2327 = vrot.lane.b32.xlu2 %v3835_v17, %s4078_s27 }
 0x28b   :  { %2033 = vrot.lane.b32.xlu1 %v3884_v21, %s4079_s28  ;;  %v3940_v21 = vld [vmem:[%s6746_s0 + $0x370] sm:$0xff] }
 0x28c   :  { %2031 = vrot.lane.b32.xlu0 %v3883_v22, %s4079_s28  ;;  %v2018_v25 = vpop.permute.xlu2 %2017  ;;  %v3790_v22 = vld [vmem:[%s6746_s0 + $0x2c0] sm:$0xff] }
 0x28d   :  { %v1718_v24 = vpop.permute.xlu1 %1717 }
 0x28e   :  { %1862 = vst.msk [vmem:[#allocation2 + $0x18] sm:$0xff] %vm1858_vm7, %v1718_v24  ;;  %v1716_v26 = vpop.permute.xlu0 %1715  ;;  %v2501_v44 = vld [vmem:[#allocation2 + $0x8] sm:$0xff] }
 0x28f   :  { %1861 = vst.msk [vmem:[#allocation2 + $0x10] sm:$0xff] %vm1858_vm7, %v1716_v26  ;;  %v2549_v45 = vpack.c.bf16 %v2501_v44, %v2500_v23  ;;  %v3811_v26 = vld [vmem:[%s6746_s0 + $0x5c0] sm:$0xff]  ;;  %v3839_v44 = vld [vmem:[%s6746_s0 + $0x330] sm:$0xff] }
 0x290   :  { %2157 = vst.msk [vmem:[#allocation2 + $0x10] sm:$0xff] %vm2154_vm8, %v2012_v12 }
 0x291   :  { %3977 = vmatmul.msk.bf16.vlgmr.msra.gmra.mxu0 %vm2598_vm10, %v2549_v45 }
 0x292   :  { %1445 = vrot.lane.b32.xlu2 %v3788_v27, %s4076_s16 }
 0x293   :  { %1443 = vrot.lane.b32.xlu1 %v3787_v28, %s4076_s16 }
 0x294   :  { %2329 = vrot.lane.b32.xlu0 %v3933_v29, %s4078_s27  ;;  %v1428_v30 = vpop.permute.xlu2 %1427 }
 0x295   :  { %v2308_v31 = vpop.permute.xlu1 %2307  ;;  %1569 = vst.msk [vmem:[#allocation2 + $0x30] sm:$0xff] %vm1562_vm5, %v1428_v30 }
 0x296   :  { %v2014_v32 = vpop.permute.xlu0 %2013  ;;  %2453 = vst.msk [vmem:[#allocation2 + $0x10] sm:$0xff] %vm2450_vm9, %v2308_v31  ;;  %v3888_v31 = vld [vmem:[%s6746_s0 + $0x338] sm:$0xff] }
 0x297   :  { %2158 = vst.msk [vmem:[#allocation2 + $0x18] sm:$0xff] %vm2154_vm8, %v2014_v32 }
 0x298   :  { %2454 = vst.msk [vmem:[#allocation2 + $0x18] sm:$0xff] %vm2450_vm9, %v2310_v46  ;;  %v3891_v46 = vld [vmem:[%s6746_s0 + $0x368] sm:$0xff] }
 0x29a   :  { %2035 = vrot.lane.b32.xlu2 %v3885_v33, %s4079_s28  ;;  %v3887_v33 = vld [vmem:[%s6746_s0 + $0x328] sm:$0xff] }
 0x29b   :  { %1741 = vrot.lane.b32.xlu1 %v3837_v34, %s4077_s21 }
 0x29c   :  { %1739 = vrot.lane.b32.xlu0 %v3836_v35, %s4077_s21  ;;  %v1726_v37 = vpop.permute.xlu2 %1725 }
 0x29d   :  { %v1426_v38 = vpop.permute.xlu1 %1425  ;;  %v2502_v42 = vld [vmem:[#allocation2 + $0x10] sm:$0xff] }
 0x29e   :  { %1568 = vst.msk [vmem:[#allocation2 + $0x28] sm:$0xff] %vm1562_vm5, %v1426_v38  ;;  %v1424_v41 = vpop.permute.xlu0 %1423 }
 0x29f   :  { %1567 = vst.msk [vmem:[#allocation2 + $0x20] sm:$0xff] %vm1562_vm5, %v1424_v41  ;;  %v2503_v43 = vld [vmem:[#allocation2 + $0x18] sm:$0xff]  ;;  %v3861_v41 = vld [vmem:[%s6746_s0 + $0x640] sm:$0xff] }
 0x2a0   :  { %1863 = vst.msk [vmem:[#allocation2 + $0x20] sm:$0xff] %vm1858_vm7, %v1720_v18  ;;  %v2550_v47 = vpack.c.bf16 %v2503_v43, %v2502_v42  ;;  %v5711_v42 = vld [vmem:[%s6746_s0 + $0x630] sm:$0xff] }
 0x2a2   :  { %3978 = vmatmul.msk.bf16.gmra.mxu0 %vm2598_vm10, %v2550_v47  ;;  %2333 = vrot.lane.b32.xlu2 %v5565_v50, %s4078_s27 }
 0x2a3   :  { %2331 = vrot.lane.b32.xlu1 %v3837_v34, %s4078_s27  ;;  %v3812_v34 = vld [vmem:[%s6746_s0 + $0x5d0] sm:$0xff] }
 0x2a4   :  { %2037 = vrot.lane.b32.xlu0 %v3886_v48, %s4079_s28  ;;  %v2316_v49 = vpop.permute.xlu2 %2315  ;;  %v3910_v48 = vld [vmem:[%s6746_s0 + $0x648] sm:$0xff] }
 0x2a5   :  { %v2016_v52 = vpop.permute.xlu1 %2015 }
 0x2a6   :  { %2159 = vst.msk [vmem:[#allocation2 + $0x20] sm:$0xff] %vm2154_vm8, %v2016_v52  ;;  %v1722_v53 = vpop.permute.xlu0 %1721  ;;  %v5729_v52 = vld [vmem:[%s6746_s0 + $0x340] sm:$0xff] }
 0x2a7   :  { %1864 = vst.msk [vmem:[#allocation2 + $0x28] sm:$0xff] %vm1858_vm7, %v1722_v53 }
 0x2a8   :  { %2160 = vst.msk [vmem:[#allocation2 + $0x28] sm:$0xff] %vm2154_vm8, %v2018_v25 }
 0x2aa   :  { %1767 = vrot.lane.b32.xlu2 %v3850_v54, %s4077_s21 }
 0x2ab   :  { %1473 = vrot.lane.b32.xlu1 %v3802_v55, %s4076_s16 }
 0x2ac   :  { %1471 = vrot.lane.b32.xlu0 %v3801_v59, %s4076_s16  ;;  %v1434_v51 = vpop.permute.xlu2 %1433 }
 0x2ad   :  { %v2314_v58 = vpop.permute.xlu1 %2313  ;;  %1572 = vst.msk [vmem:[#allocation2 + $0x48] sm:$0xff] %vm1562_vm5, %v1434_v51 }
 0x2ae   :  { %v2312_v60 = vpop.permute.xlu0 %2311  ;;  %2456 = vst.msk [vmem:[#allocation2 + $0x28] sm:$0xff] %vm2450_vm9, %v2314_v58 }
 0x2af   :  { %2455 = vst.msk [vmem:[#allocation2 + $0x20] sm:$0xff] %vm2450_vm9, %v2312_v60  ;;  %v3804_v60 = vld [vmem:[%s6746_s0 + $0x4c0] sm:$0xff] }
 0x2b2   :  { %2065 = vrot.lane.b32.xlu2 %v3900_v61, %s4079_s28  ;;  %v3803_v61 = vld [vmem:[%s6746_s0 + $0x4b0] sm:$0xff] }
 0x2b3   :  { %2063 = vrot.lane.b32.xlu1 %v3899_v62, %s4079_s28 }
 0x2b4   :  { %1769 = vrot.lane.b32.xlu0 %v3851_v63, %s4077_s21  ;;  %v2024_v1 = vpop.permute.xlu2 %2023 }
 0x2b5   :  { %v1724_v2 = vpop.permute.xlu1 %1723  ;;  %v2505_v40 = vld [vmem:[#allocation2 + $0x28] sm:$0xff] }
 0x2b6   :  { %1865 = vst.msk [vmem:[#allocation2 + $0x30] sm:$0xff] %vm1858_vm7, %v1724_v2  ;;  %v1430_v3 = vpop.permute.xlu0 %1429  ;;  %v2504_v4 = vld [vmem:[#allocation2 + $0x20] sm:$0xff]  ;;  %v3853_v2 = vld [vmem:[%s6746_s0 + $0x530] sm:$0xff] }
 0x2b7   :  { %1570 = vst.msk [vmem:[#allocation2 + $0x38] sm:$0xff] %vm1562_vm5, %v1430_v3  ;;  %v2551_v5 = vpack.c.bf16 %v2505_v40, %v2504_v4  ;;  %v5757_v3 = vld [vmem:[%s6746_s0 + $0x650] sm:$0xff] }
 0x2b8   :  { %1866 = vst.msk [vmem:[#allocation2 + $0x38] sm:$0xff] %vm1858_vm7, %v1726_v37 }
 0x2b9   :  { %3979 = vmatmul.msk.bf16.gmra.mxu0 %vm2598_vm10, %v2551_v5 }
 0x2ba   :  { %1455 = vrot.lane.b32.xlu2 %v3793_v6, %s4076_s16  ;;  %v3902_v6 = vld [vmem:[%s6746_s0 + $0x538] sm:$0xff] }
 0x2bb   :  { %2361 = vrot.lane.b32.xlu1 %v5614_v7, %s4078_s27 }
 0x2bc   :  { %2359 = vrot.lane.b32.xlu0 %v3851_v63, %s4078_s27  ;;  %v2322_v8 = vpop.permute.xlu2 %2321 }
 0x2bd   :  { %v2022_v39 = vpop.permute.xlu1 %2021 }
 0x2be   :  { %2162 = vst.msk [vmem:[#allocation2 + $0x38] sm:$0xff] %vm2154_vm8, %v2022_v39  ;;  %v2020_v9 = vpop.permute.xlu0 %2019 }
 0x2bf   :  { %2161 = vst.msk [vmem:[#allocation2 + $0x30] sm:$0xff] %vm2154_vm8, %v2020_v9 }
 0x2c0   :  { %2457 = vst.msk [vmem:[#allocation2 + $0x30] sm:$0xff] %vm2450_vm9, %v2316_v49  ;;  %v3909_v49 = vld [vmem:[%s6746_s0 + $0x638] sm:$0xff] }
 0x2c2   :  { %1753 = vrot.lane.b32.xlu2 %v3843_v10, %s4077_s21 }
 0x2c3   :  { %1751 = vrot.lane.b32.xlu1 %v5630_v56, %s4077_s21 }
 0x2c4   :  { %1457 = vrot.lane.b32.xlu0 %v3794_v57, %s4076_s16  ;;  %v1732_v11 = vpop.permute.xlu2 %1731 }
 0x2c5   :  { %v1432_v12 = vpop.permute.xlu1 %1431 }
 0x2c6   :  { %1571 = vst.msk [vmem:[#allocation2 + $0x40] sm:$0xff] %vm1562_vm5, %v1432_v12  ;;  %v2318_v13 = vpop.permute.xlu0 %2317 }
 0x2c7   :  { %2458 = vst.msk [vmem:[#allocation2 + $0x38] sm:$0xff] %vm2450_vm9, %v2318_v13  ;;  %v2506_v36 = vld [vmem:[#allocation2 + $0x30] sm:$0xff] }
 0x2ca   :  { %1447 = vrot.lane.b32.xlu2 %v3789_v14, %s4076_s16 }
 0x2cb   :  { %2049 = vrot.lane.b32.xlu1 %v3892_v15, %s4079_s28  ;;  %v3796_v15 = vld [vmem:[%s6746_s0 + $0x3b0] sm:$0xff] }
 0x2cc   :  { %2047 = vrot.lane.b32.xlu0 %v3891_v46, %s4079_s28  ;;  %v2030_v16 = vpop.permute.xlu2 %2029 }
 0x2cd   :  { %v1730_v17 = vpop.permute.xlu1 %1729 }
 0x2ce   :  { %1868 = vst.msk [vmem:[#allocation2 + $0x48] sm:$0xff] %vm1858_vm7, %v1730_v17  ;;  %v1728_v0 = vpop.permute.xlu0 %1727  ;;  %v2507_v18 = vld [vmem:[#allocation2 + $0x38] sm:$0xff] }
 0x2cf   :  { %1867 = vst.msk [vmem:[#allocation2 + $0x40] sm:$0xff] %vm1858_vm7, %v1728_v0  ;;  %v2552_v19 = vpack.c.bf16 %v2507_v18, %v2506_v36  ;;  %v3795_v36 = vld [vmem:[%s6746_s0 + $0x3a0] sm:$0xff] }
 0x2d0   :  { %2163 = vst.msk [vmem:[#allocation2 + $0x40] sm:$0xff] %vm2154_vm8, %v2024_v1 }
 0x2d1   :  { %3980 = vmatmul.msk.bf16.gmra.mxu0 %vm2598_vm10, %v2552_v19 }
 0x2d2   :  { %2345 = vrot.lane.b32.xlu2 %v5659_v20, %s4078_s27 }
 0x2d3   :  { %2343 = vrot.lane.b32.xlu1 %v3940_v21, %s4078_s27  ;;  %v3893_v21 = vld [vmem:[%s6746_s0 + $0x418] sm:$0xff] }
 0x2d4   :  { %1449 = vrot.lane.b32.xlu0 %v3790_v22, %s4076_s16  ;;  %v1440_v23 = vpop.permute.xlu2 %1439  ;;  %v3845_v22 = vld [vmem:[%s6746_s0 + $0x420] sm:$0xff] }
 0x2d5   :  { %v2320_v25 = vpop.permute.xlu1 %2319  ;;  %1575 = vst.msk [vmem:[#allocation2 + $0x60] sm:$0xff] %vm1562_vm5, %v1440_v23 }
 0x2d6   :  { %v2026_v24 = vpop.permute.xlu0 %2025  ;;  %2459 = vst.msk [vmem:[#allocation2 + $0x40] sm:$0xff] %vm2450_vm9, %v2320_v25 }
 0x2d7   :  { %2164 = vst.msk [vmem:[#allocation2 + $0x48] sm:$0xff] %vm2154_vm8, %v2026_v24 }
 0x2d8   :  { %2460 = vst.msk [vmem:[#allocation2 + $0x48] sm:$0xff] %vm2450_vm9, %v2322_v8  ;;  %v3901_v8 = vld [vmem:[%s6746_s0 + $0x528] sm:$0xff] }
 0x2da   :  { %1491 = vrot.lane.b32.xlu2 %v3811_v26, %s4076_s16 }
 0x2db   :  { %1745 = vrot.lane.b32.xlu1 %v3839_v44, %s4077_s21 }
 0x2dc   :  { %1743 = vrot.lane.b32.xlu0 %v5565_v50, %s4077_s21  ;;  %v1738_v45 = vpop.permute.xlu2 %1737 }
 0x2dd   :  { %v1438_v27 = vpop.permute.xlu1 %1437  ;;  %v2508_v29 = vld [vmem:[#allocation2 + $0x40] sm:$0xff] }
 0x2de   :  { %1574 = vst.msk [vmem:[#allocation2 + $0x58] sm:$0xff] %vm1562_vm5, %v1438_v27  ;;  %v1436_v28 = vpop.permute.xlu0 %1435  ;;  %v3792_v27 = vld [vmem:[%s6746_s0 + $0x2e0] sm:$0xff] }
 0x2df   :  { %1573 = vst.msk [vmem:[#allocation2 + $0x50] sm:$0xff] %vm1562_vm5, %v1436_v28  ;;  %v2509_v30 = vld [vmem:[#allocation2 + $0x48] sm:$0xff] }
 0x2e0   :  { %1869 = vst.msk [vmem:[#allocation2 + $0x50] sm:$0xff] %vm1858_vm7, %v1732_v11  ;;  %v2553_v32 = vpack.c.bf16 %v2509_v30, %v2508_v29  ;;  %v3791_v29 = vld [vmem:[%s6746_s0 + $0x2d0] sm:$0xff]  ;;  %v3894_v30 = vld [vmem:[%s6746_s0 + $0x428] sm:$0xff] }
 0x2e2   :  { %3981 = vmatmul.msk.bf16.gmra.mxu0 %vm2598_vm10, %v2553_v32  ;;  %2041 = vrot.lane.b32.xlu2 %v3888_v31, %s4079_s28 }
 0x2e3   :  { %2039 = vrot.lane.b32.xlu1 %v3887_v33, %s4079_s28 }
 0x2e4   :  { %1493 = vrot.lane.b32.xlu0 %v3812_v34, %s4076_s16  ;;  %v2328_v35 = vpop.permute.xlu2 %2327 }
 0x2e5   :  { %v2028_v37 = vpop.permute.xlu1 %2027 }
 0x2e6   :  { %2165 = vst.msk [vmem:[#allocation2 + $0x50] sm:$0xff] %vm2154_vm8, %v2028_v37  ;;  %v1734_v38 = vpop.permute.xlu0 %1733 }
 0x2e7   :  { %1870 = vst.msk [vmem:[#allocation2 + $0x58] sm:$0xff] %vm1858_vm7, %v1734_v38 }
 0x2e8   :  { %2166 = vst.msk [vmem:[#allocation2 + $0x58] sm:$0xff] %vm2154_vm8, %v2030_v16  ;;  %v5794_v16 = vld [vmem:[%s6746_s0 + $0x540] sm:$0xff] }
 0x2ea   :  { %2335 = vrot.lane.b32.xlu2 %v3839_v44, %s4078_s27 }
 0x2eb   :  { %1789 = vrot.lane.b32.xlu1 %v3861_v41, %s4077_s21 }
 0x2ec   :  { %1787 = vrot.lane.b32.xlu0 %v5711_v42, %s4077_s21  ;;  %v1446_v43 = vpop.permute.xlu2 %1445 }
 0x2ed   :  { %v2326_v50 = vpop.permute.xlu1 %2325  ;;  %1578 = vst.msk [vmem:[#allocation2 + $0x78] sm:$0xff] %vm1562_vm5, %v1446_v43 }
 0x2ee   :  { %v2324_v47 = vpop.permute.xlu0 %2323  ;;  %2462 = vst.msk [vmem:[#allocation2 + $0x58] sm:$0xff] %vm2450_vm9, %v2326_v50  ;;  %v3814_v50 = vld [vmem:[%s6746_s0 + $0x5f0] sm:$0xff] }
 0x2ef   :  { %2461 = vst.msk [vmem:[#allocation2 + $0x50] sm:$0xff] %vm2450_vm9, %v2324_v47  ;;  %v3813_v47 = vld [vmem:[%s6746_s0 + $0x5e0] sm:$0xff] }
 0x2f2   :  { %2085 = vrot.lane.b32.xlu2 %v3910_v48, %s4079_s28  ;;  %v3841_v48 = vld [vmem:[%s6746_s0 + $0x350] sm:$0xff] }
 0x2f3   :  { %2083 = vrot.lane.b32.xlu1 %v3909_v49, %s4079_s28 }
 0x2f4   :  { %2337 = vrot.lane.b32.xlu0 %v5729_v52, %s4078_s27  ;;  %v2036_v53 = vpop.permute.xlu2 %2035 }
 0x2f5   :  { %v1736_v54 = vpop.permute.xlu1 %1735  ;;  %v2511_v59 = vld [vmem:[#allocation2 + $0x58] sm:$0xff] }
 0x2f6   :  { %1871 = vst.msk [vmem:[#allocation2 + $0x60] sm:$0xff] %vm1858_vm7, %v1736_v54  ;;  %v1442_v55 = vpop.permute.xlu0 %1441  ;;  %v2510_v51 = vld [vmem:[#allocation2 + $0x50] sm:$0xff] }
 0x2f7   :  { %1576 = vst.msk [vmem:[#allocation2 + $0x68] sm:$0xff] %vm1562_vm5, %v1442_v55  ;;  %v2554_v58 = vpack.c.bf16 %v2511_v59, %v2510_v51 }
 0x2f8   :  { %1872 = vst.msk [vmem:[#allocation2 + $0x68] sm:$0xff] %vm1858_vm7, %v1738_v45 }
 0x2f9   :  { %3982 = vmatmul.msk.bf16.gmra.mxu0 %vm2598_vm10, %v2554_v58 }
 0x2fa   :  { %2379 = vrot.lane.b32.xlu2 %v3861_v41, %s4078_s27 }
 0x2fb   :  { %1477 = vrot.lane.b32.xlu1 %v3804_v60, %s4076_s16  ;;  %v3890_v60 = vld [vmem:[%s6746_s0 + $0x358] sm:$0xff] }
 0x2fc   :  { %1475 = vrot.lane.b32.xlu0 %v3803_v61, %s4076_s16  ;;  %v2334_v62 = vpop.permute.xlu2 %2333  ;;  %v3889_v61 = vld [vmem:[%s6746_s0 + $0x348] sm:$0xff] }
 0x2fd   :  { %v2034_v63 = vpop.permute.xlu1 %2033 }
 0x2fe   :  { %2168 = vst.msk [vmem:[#allocation2 + $0x68] sm:$0xff] %vm2154_vm8, %v2034_v63  ;;  %v2032_v1 = vpop.permute.xlu0 %2031 }
 0x2ff   :  { %2167 = vst.msk [vmem:[#allocation2 + $0x60] sm:$0xff] %vm2154_vm8, %v2032_v1 }
 0x300   :  { %2463 = vst.msk [vmem:[#allocation2 + $0x60] sm:$0xff] %vm2450_vm9, %v2328_v35  ;;  %v5847_v35 = vld [vmem:[%s6746_s0 + $0x430] sm:$0xff] }
 0x302   :  { %1773 = vrot.lane.b32.xlu2 %v3853_v2, %s4077_s21 }
 0x303   :  { %1771 = vrot.lane.b32.xlu1 %v5614_v7, %s4077_s21  ;;  %v5776_v7 = vld [vmem:[%s6748_s2] ss:$0 sm:$0xff] }
 0x304   :  { %2381 = vrot.lane.b32.xlu0 %v5757_v3, %s4078_s27  ;;  %v1768_v40 = vpop.permute.xlu2 %1767 }
 0x305   :  { %v1444_v4 = vpop.permute.xlu1 %1443 }
 0x306   :  { %1577 = vst.msk [vmem:[#allocation2 + $0x70] sm:$0xff] %vm1562_vm5, %v1444_v4  ;;  %v2330_v5 = vpop.permute.xlu0 %2329 }
 0x307   :  { %2464 = vst.msk [vmem:[#allocation2 + $0x68] sm:$0xff] %vm2450_vm9, %v2330_v5  ;;  %v2512_v39 = vld [vmem:[#allocation2 + $0x60] sm:$0xff] }
 0x30a   :  { %2363 = vrot.lane.b32.xlu2 %v3853_v2, %s4078_s27 }
 0x30b   :  { %2069 = vrot.lane.b32.xlu1 %v3902_v6, %s4079_s28  ;;  %v3805_v6 = vld [vmem:[%s6746_s0 + $0x4d0] sm:$0xff] }
 0x30c   :  { %2067 = vrot.lane.b32.xlu0 %v3901_v8, %s4079_s28  ;;  %v2066_v9 = vpop.permute.xlu2 %2065  ;;  %v3912_v8 = vld [vmem:[%s6746_s0 + $0x668] sm:$0xff] }
 0x30d   :  { %v1742_v10 = vpop.permute.xlu1 %1741 }
 0x30e   :  { %1874 = vst.msk [vmem:[#allocation2 + $0x78] sm:$0xff] %vm1858_vm7, %v1742_v10  ;;  %v1740_v57 = vpop.permute.xlu0 %1739  ;;  %v2687_v11 = vpop.f32.mrf.mxu0  ;;  %v2513_v12 = vld [vmem:[#allocation2 + $0x68] sm:$0xff] }
 0x30f   :  { %1873 = vst.msk [vmem:[#allocation2 + $0x70] sm:$0xff] %vm1858_vm7, %v1740_v57  ;;  %v2688_v13 = vadd.f32 %v5776_v7, %v2687_v11  ;;  %v2555_v14 = vpack.c.bf16 %v2513_v12, %v2512_v39 }
 0x310   :  { %2169 = vst.msk [vmem:[#allocation2 + $0x70] sm:$0xff] %vm2154_vm8, %v2036_v53 }
 0x311   :  { %v2811_v46 = vmax.f32 %v2688_v13, 0.0  ;;  %3983 = vmatmul.msk.bf16.gmra.mxu0 %vm2598_vm10, %v2555_v14  ;;  %v3961_v14 = vld [vmem:[%s6746_s0 + $0x670] sm:$0xff] }
 0x312   :  { %1461 = vrot.lane.b32.xlu2 %v3796_v15, %s4076_s16  ;;  %v3806_v15 = vld [vmem:[%s6746_s0 + $0x4e0] sm:$0xff] }
 0x313   :  { %2861 = vst.msk [vmem:[#allocation3] sm:$0xff] %vm2860_vm11, %v2811_v46  ;;  %1459 = vrot.lane.b32.xlu1 %v3795_v36, %s4076_s16 }
 0x314   :  { %2365 = vrot.lane.b32.xlu0 %v5794_v16, %s4078_s27  ;;  %v1456_v17 = vpop.permute.xlu2 %1455 }
 0x315   :  { %1583 = vst.msk [vmem:[#allocation2 + $0xa0] sm:$0xff] %vm1562_vm5, %v1456_v17  ;;  %v2332_v0 = vpop.permute.xlu1 %2331 }
 0x316   :  { %v2038_v18 = vpop.permute.xlu0 %2037  ;;  %2465 = vst.msk [vmem:[#allocation2 + $0x70] sm:$0xff] %vm2450_vm9, %v2332_v0  ;;  %v5803_v19 = vpop.f32.mrf.mxu0 }
 0x317   :  { %2170 = vst.msk [vmem:[#allocation2 + $0x78] sm:$0xff] %vm2154_vm8, %v2038_v18  ;;  %v3903_v18 = vld [vmem:[%s6746_s0 + $0x548] sm:$0xff] }
 0x318   :  { %2466 = vst.msk [vmem:[#allocation2 + $0x78] sm:$0xff] %vm2450_vm9, %v2334_v62 }
 0x31a   :  { %2051 = vrot.lane.b32.xlu2 %v3893_v21, %s4079_s28  ;;  %v3855_v21 = vld [vmem:[%s6746_s0 + $0x550] sm:$0xff] }
 0x31b   :  { %1757 = vrot.lane.b32.xlu1 %v3845_v22, %s4077_s21 }
 0x31c   :  { %1755 = vrot.lane.b32.xlu0 %v5659_v20, %s4077_s21  ;;  %v1754_v23 = vpop.permute.xlu2 %1753 }
 0x31d   :  { %v1474_v25 = vpop.permute.xlu1 %1473  ;;  %v2514_v26 = vld [vmem:[#allocation2 + $0x70] sm:$0xff] }
 0x31e   :  { %v1472_v24 = vpop.permute.xlu0 %1471  ;;  %1592 = vst.msk [vmem:[#allocation2 + $0xe8] sm:$0xff] %vm1562_vm5, %v1474_v25 }
 0x31f   :  { %1591 = vst.msk [vmem:[#allocation2 + $0xe0] sm:$0xff] %vm1562_vm5, %v1472_v24  ;;  %v2692_v44 = vpop.f32.mrf.mxu0  ;;  %v2515_v45 = vld [vmem:[#allocation2 + $0x78] sm:$0xff]  ;;  %v5951_v24 = vld [vmem:[%s6746_s0 + $0x560] sm:$0xff] }
 0x320   :  { %1887 = vst.msk [vmem:[#allocation2 + $0xe0] sm:$0xff] %vm1858_vm7, %v1768_v40  ;;  %v5824_v28 = vadd.f32 %v5776_v7, %v2692_v44  ;;  %v2556_v20 = vpack.c.bf16 %v2515_v45, %v2514_v26 }
 0x322   :  { %v2813_v31 = vmax.f32 %v5824_v28, 0.0  ;;  %3984 = vmatmul.msk.bf16.gmra.mxu0 %vm2598_vm10, %v2556_v20  ;;  %1453 = vrot.lane.b32.xlu2 %v3792_v27, %s4076_s16  ;;  %v3798_v20 = vld [vmem:[%s6746_s0 + $0x3d0] sm:$0xff] }
 0x323   :  { %1451 = vrot.lane.b32.xlu1 %v3791_v29, %s4076_s16  ;;  %v3797_v29 = vld [vmem:[%s6746_s0 + $0x3c0] sm:$0xff] }
 0x324   :  { %2053 = vrot.lane.b32.xlu0 %v3894_v30, %s4079_s28  ;;  %2862 = vst.msk [vmem:[#allocation3 + $0x8] sm:$0xff] %vm2860_vm11, %v2813_v31  ;;  %v1448_v32 = vpop.permute.xlu2 %1447 }
 0x325   :  { %1579 = vst.msk [vmem:[#allocation2 + $0x80] sm:$0xff] %vm1562_vm5, %v1448_v32  ;;  %v2064_v33 = vpop.permute.xlu1 %2063 }
 0x326   :  { %v1770_v34 = vpop.permute.xlu0 %1769  ;;  %2183 = vst.msk [vmem:[#allocation2 + $0xe0] sm:$0xff] %vm2154_vm8, %v2064_v33 }
 0x327   :  { %1888 = vst.msk [vmem:[#allocation2 + $0xe8] sm:$0xff] %vm1858_vm7, %v1770_v34  ;;  %v5854_v43 = vpop.f32.mrf.mxu0 }
 0x328   :  { %2184 = vst.msk [vmem:[#allocation2 + $0xe8] sm:$0xff] %vm2154_vm8, %v2066_v9 }
 0x32a   :  { %1747 = vrot.lane.b32.xlu2 %v5729_v52, %s4077_s21 }
 0x32b   :  { %2349 = vrot.lane.b32.xlu1 %v5847_v35, %s4078_s27 }
 0x32c   :  { %2347 = vrot.lane.b32.xlu0 %v3845_v22, %s4078_s27  ;;  %v2346_v37 = vpop.permute.xlu2 %2345 }
 0x32d   :  { %v2362_v38 = vpop.permute.xlu1 %2361 }
 0x32e   :  { %v2360_v41 = vpop.permute.xlu0 %2359  ;;  %2480 = vst.msk [vmem:[#allocation2 + $0xe8] sm:$0xff] %vm2450_vm9, %v2362_v38 }
 0x32f   :  { %2479 = vst.msk [vmem:[#allocation2 + $0xe0] sm:$0xff] %vm2450_vm9, %v2360_v41  ;;  %v3896_v41 = vld [vmem:[%s6746_s0 + $0x448] sm:$0xff] }
 0x332   :  { %1497 = vrot.lane.b32.xlu2 %v3814_v50, %s4076_s16  ;;  %v3895_v50 = vld [vmem:[%s6746_s0 + $0x438] sm:$0xff] }
 0x333   :  { %1495 = vrot.lane.b32.xlu1 %v3813_v47, %s4076_s16  ;;  %v3847_v47 = vld [vmem:[%s6746_s0 + $0x440] sm:$0xff] }
 0x334   :  { %1749 = vrot.lane.b32.xlu0 %v3841_v48, %s4077_s21  ;;  %v1492_v49 = vpop.permute.xlu2 %1491 }
 0x335   :  { %1601 = vst.msk [vmem:[#allocation2 + $0x130] sm:$0xff] %vm1562_vm5, %v1492_v49  ;;  %v1752_v52 = vpop.permute.xlu1 %1751  ;;  %v2529_v54 = vld [vmem:[#allocation2 + $0xe8] sm:$0xff] }
 0x336   :  { %v1458_v53 = vpop.permute.xlu0 %1457  ;;  %1879 = vst.msk [vmem:[#allocation2 + $0xa0] sm:$0xff] %vm1858_vm7, %v1752_v52  ;;  %v2697_v55 = vpop.f32.mrf.mxu0  ;;  %v2528_v59 = vld [vmem:[#allocation2 + $0xe0] sm:$0xff] }
 0x337   :  { %1584 = vst.msk [vmem:[#allocation2 + $0xa8] sm:$0xff] %vm1562_vm5, %v1458_v53  ;;  %v5874_v51 = vadd.f32 %v5776_v7, %v2697_v55  ;;  %v2563_v58 = vpack.c.bf16 %v2529_v54, %v2528_v59  ;;  %v3815_v54 = vld [vmem:[%s6746_s0 + $0x690] sm:$0xff] }
 0x338   :  { %1880 = vst.msk [vmem:[#allocation2 + $0xa8] sm:$0xff] %vm1858_vm7, %v1754_v23  ;;  %v6005_v55 = vld [vmem:[%s6746_s0 + $0x450] sm:$0xff] }
 0x339   :  { %v2815_v62 = vmax.f32 %v5874_v51, 0.0  ;;  %3991 = vmatmul.msk.bf16.vlgmr.msra.gmra.mxu2 %vm2598_vm10, %v2563_v58 }
 0x33a   :  { %1791 = vrot.lane.b32.xlu2 %v5757_v3, %s4077_s21  ;;  %v3863_v3 = vld [vmem:[%s6746_s0 + $0x660] sm:$0xff] }
 0x33b   :  { %2863 = vst.msk [vmem:[#allocation3 + $0x10] sm:$0xff] %vm2860_vm11, %v2815_v62  ;;  %2045 = vrot.lane.b32.xlu1 %v3890_v60, %s4079_s28 }
 0x33c   :  { %2043 = vrot.lane.b32.xlu0 %v3889_v61, %s4079_s28  ;;  %v2042_v63 = vpop.permute.xlu2 %2041 }
 0x33d   :  { %v2050_v1 = vpop.permute.xlu1 %2049 }
 0x33e   :  { %v2048_v2 = vpop.permute.xlu0 %2047  ;;  %2176 = vst.msk [vmem:[#allocation2 + $0xa8] sm:$0xff] %vm2154_vm8, %v2050_v1  ;;  %v5916_v12 = vpop.f32.mrf.mxu0 }
 0x33f   :  { %2472 = vst.msk [vmem:[#allocation2 + $0xa8] sm:$0xff] %vm2450_vm9, %v2346_v37 }
 0x340   :  { %2175 = vst.msk [vmem:[#allocation2 + $0xa0] sm:$0xff] %vm2154_vm8, %v2048_v2 }
 0x342   :  { %2341 = vrot.lane.b32.xlu2 %v5630_v56, %s4078_s27  ;;  %v3911_v56 = vld [vmem:[%s6746_s0 + $0x658] sm:$0xff] }
 0x343   :  { %2339 = vrot.lane.b32.xlu1 %v3841_v48, %s4078_s27 }
 0x344   :  { %1793 = vrot.lane.b32.xlu0 %v3863_v3, %s4077_s21  ;;  %v2336_v40 = vpop.permute.xlu2 %2335 }
 0x345   :  { %v2344_v4 = vpop.permute.xlu1 %2343 }
 0x346   :  { %v1450_v5 = vpop.permute.xlu0 %1449  ;;  %2471 = vst.msk [vmem:[#allocation2 + $0xa0] sm:$0xff] %vm2450_vm9, %v2344_v4  ;;  %v2521_v39 = vld [vmem:[#allocation2 + $0xa8] sm:$0xff]  ;;  %v3816_v4 = vld [vmem:[%s6746_s0 + $0x6a0] sm:$0xff] }
 0x347   :  { %1580 = vst.msk [vmem:[#allocation2 + $0x88] sm:$0xff] %vm1562_vm5, %v1450_v5 }
 0x34a   :  { %1479 = vrot.lane.b32.xlu2 %v3805_v6, %s4076_s16 }
 0x34b   :  { %2089 = vrot.lane.b32.xlu1 %v3912_v8, %s4079_s28 }
 0x34c   :  { %2087 = vrot.lane.b32.xlu0 %v3911_v56, %s4079_s28  ;;  %v2086_v9 = vpop.permute.xlu2 %2085 }
 0x34d   :  { %v1746_v10 = vpop.permute.xlu1 %1745  ;;  %v2520_v11 = vld [vmem:[#allocation2 + $0xa0] sm:$0xff] }
 0x34e   :  { %v1744_v57 = vpop.permute.xlu0 %1743  ;;  %1876 = vst.msk [vmem:[#allocation2 + $0x88] sm:$0xff] %vm1858_vm7, %v1746_v10  ;;  %v2559_v13 = vpack.c.bf16 %v2521_v39, %v2520_v11  ;;  %v5931_v0 = vpop.f32.mrf.mxu0  ;;  %v3807_v39 = vld [vmem:[%s6746_s0 + $0x4f0] sm:$0xff]  ;;  %v3913_v10 = vld [vmem:[%s6746_s0 + $0x708] sm:$0xff] }
 0x34f   :  { %2172 = vst.msk [vmem:[#allocation2 + $0x88] sm:$0xff] %vm2154_vm8, %v2042_v63 }
 0x350   :  { %1875 = vst.msk [vmem:[#allocation2 + $0x80] sm:$0xff] %vm1858_vm7, %v1744_v57  ;;  %3987 = vmatmul.msk.bf16.vlgmr.msra.gmra.mxu1 %vm2598_vm10, %v2559_v13 }
 0x352   :  { %2385 = vrot.lane.b32.xlu2 %v3961_v14, %s4078_s27 }
 0x353   :  { %2383 = vrot.lane.b32.xlu1 %v3863_v3, %s4078_s27  ;;  %v3865_v3 = vld [vmem:[%s6746_s0 + $0x710] sm:$0xff] }
 0x354   :  { %1481 = vrot.lane.b32.xlu0 %v3806_v15, %s4076_s16  ;;  %v2380_v46 = vpop.permute.xlu2 %2379 }
 0x355   :  { %v2040_v36 = vpop.permute.xlu1 %2039 }
 0x356   :  { %v1494_v17 = vpop.permute.xlu0 %1493  ;;  %2171 = vst.msk [vmem:[#allocation2 + $0x80] sm:$0xff] %vm2154_vm8, %v2040_v36  ;;  %v5953_v26 = vpop.f32.mrf.mxu0 }
 0x357   :  { %2467 = vst.msk [vmem:[#allocation2 + $0x80] sm:$0xff] %vm2450_vm9, %v2336_v40  ;;  %v3864_v40 = vld [vmem:[%s6746_s0 + $0x700] sm:$0xff] }
 0x358   :  { %1602 = vst.msk [vmem:[#allocation2 + $0x138] sm:$0xff] %vm1562_vm5, %v1494_v17  ;;  %v6054_v17 = vld [vmem:[%s6746_s0 + $0x720] sm:$0xff] }
 0x35a   :  { %2071 = vrot.lane.b32.xlu2 %v3903_v18, %s4079_s28  ;;  %v3808_v18 = vld [vmem:[%s6746_s0 + $0x590] sm:$0xff] }
 0x35b   :  { %1777 = vrot.lane.b32.xlu1 %v3855_v21, %s4077_s21 }
 0x35c   :  { %1775 = vrot.lane.b32.xlu0 %v5794_v16, %s4077_s21  ;;  %v1774_v22 = vpop.permute.xlu2 %1773  ;;  %v3904_v16 = vld [vmem:[%s6746_s0 + $0x558] sm:$0xff] }
 0x35d   :  { %v1790_v23 = vpop.permute.xlu1 %1789 }
 0x35e   :  { %v1788_v25 = vpop.permute.xlu0 %1787  ;;  %1898 = vst.msk [vmem:[#allocation2 + $0x138] sm:$0xff] %vm1858_vm7, %v1790_v23  ;;  %v2516_v37 = vld [vmem:[#allocation2 + $0x80] sm:$0xff] }
 0x35f   :  { %2194 = vst.msk [vmem:[#allocation2 + $0x138] sm:$0xff] %vm2154_vm8, %v2086_v9  ;;  %v5972_v30 = vpop.f32.mrf.mxu0  ;;  %v3914_v9 = vld [vmem:[%s6746_s0 + $0x718] sm:$0xff] }
 0x360   :  { %1897 = vst.msk [vmem:[#allocation2 + $0x130] sm:$0xff] %vm1858_vm7, %v1788_v25 }
 0x362   :  { %2369 = vrot.lane.b32.xlu2 %v5951_v24, %s4078_s27 }
 0x363   :  { %2367 = vrot.lane.b32.xlu1 %v3855_v21, %s4078_s27 }
 0x364   :  { %2073 = vrot.lane.b32.xlu0 %v3904_v16, %s4079_s28  ;;  %v2364_v44 = vpop.permute.xlu2 %2363  ;;  %v3905_v16 = vld [vmem:[%s6746_s0 + $0x568] sm:$0xff] }
 0x365   :  { %v2084_v45 = vpop.permute.xlu1 %2083 }
 0x366   :  { %v2338_v27 = vpop.permute.xlu0 %2337  ;;  %2193 = vst.msk [vmem:[#allocation2 + $0x130] sm:$0xff] %vm2154_vm8, %v2084_v45 }
 0x367   :  { %2489 = vst.msk [vmem:[#allocation2 + $0x130] sm:$0xff] %vm2450_vm9, %v2380_v46  ;;  %v5995_v48 = vpop.f32.mrf.mxu0 }
 0x368   :  { %2468 = vst.msk [vmem:[#allocation2 + $0x88] sm:$0xff] %vm2450_vm9, %v2338_v27 }
 0x36a   :  { %1759 = vrot.lane.b32.xlu2 %v5847_v35, %s4077_s21 }
 0x36b   :  { %1465 = vrot.lane.b32.xlu1 %v3798_v20, %s4076_s16 }
 0x36c   :  { %1463 = vrot.lane.b32.xlu0 %v3797_v29, %s4076_s16  ;;  %v1462_v32 = vpop.permute.xlu2 %1461 }
 0x36d   :  { %1586 = vst.msk [vmem:[#allocation2 + $0xb8] sm:$0xff] %vm1562_vm5, %v1462_v32  ;;  %v1478_v33 = vpop.permute.xlu1 %1477  ;;  %v6085_v32 = vld [vmem:[%s6746_s0 + $0x610] sm:$0xff] }
 0x36e   :  { %v1476_v34 = vpop.permute.xlu0 %1475  ;;  %1594 = vst.msk [vmem:[#allocation2 + $0xf8] sm:$0xff] %vm1562_vm5, %v1478_v33  ;;  %v2538_v60 = vld [vmem:[#allocation2 + $0x130] sm:$0xff] }
 0x36f   :  { %1890 = vst.msk [vmem:[#allocation2 + $0xf8] sm:$0xff] %vm1858_vm7, %v1774_v22  ;;  %v2517_v38 = vld [vmem:[#allocation2 + $0x88] sm:$0xff] }
 0x370   :  { %1593 = vst.msk [vmem:[#allocation2 + $0xf0] sm:$0xff] %vm1562_vm5, %v1476_v34  ;;  %v2557_v35 = vpack.c.bf16 %v2517_v38, %v2516_v37  ;;  %v3906_v34 = vld [vmem:[%s6746_s0 + $0x608] sm:$0xff] }
 0x372   :  { %3985 = vmatmul.msk.bf16.gmra.mxu0 %vm2598_vm10, %v2557_v35  ;;  %2057 = vrot.lane.b32.xlu2 %v3896_v41, %s4079_s28 }
 0x373   :  { %2055 = vrot.lane.b32.xlu1 %v3895_v50, %s4079_s28 }
 0x374   :  { %1761 = vrot.lane.b32.xlu0 %v3847_v47, %s4077_s21  ;;  %v2052_v49 = vpop.permute.xlu2 %2051 }
 0x375   :  { %v1772_v52 = vpop.permute.xlu1 %1771 }
 0x376   :  { %v2382_v53 = vpop.permute.xlu0 %2381  ;;  %1889 = vst.msk [vmem:[#allocation2 + $0xf0] sm:$0xff] %vm1858_vm7, %v1772_v52  ;;  %v6011_v59 = vpop.f32.mrf.mxu0  ;;  %v3800_v52 = vld [vmem:[%s6746_s0 + $0x3f0] sm:$0xff] }
 0x377   :  { %2490 = vst.msk [vmem:[#allocation2 + $0x138] sm:$0xff] %vm2450_vm9, %v2382_v53  ;;  %v3799_v53 = vld [vmem:[%s6746_s0 + $0x3e0] sm:$0xff] }
 0x37a   :  { %1499 = vrot.lane.b32.xlu2 %v3815_v54, %s4076_s16 }
 0x37b   :  { %2353 = vrot.lane.b32.xlu1 %v6005_v55, %s4078_s27 }
 0x37c   :  { %2351 = vrot.lane.b32.xlu0 %v3847_v47, %s4078_s27  ;;  %v1454_v58 = vpop.permute.xlu2 %1453 }
 0x37d   :  { %1582 = vst.msk [vmem:[#allocation2 + $0x98] sm:$0xff] %vm1562_vm5, %v1454_v58  ;;  %v2070_v61 = vpop.permute.xlu1 %2069 }
 0x37e   :  { %v2068_v63 = vpop.permute.xlu0 %2067  ;;  %2186 = vst.msk [vmem:[#allocation2 + $0xf8] sm:$0xff] %vm2154_vm8, %v2070_v61  ;;  %v2539_v1 = vld [vmem:[#allocation2 + $0x138] sm:$0xff]  ;;  %v6030_v56 = vpop.f32.mrf.mxu0  ;;  %v3898_v61 = vld [vmem:[%s6746_s0 + $0x468] sm:$0xff] }
 0x37f   :  { %2185 = vst.msk [vmem:[#allocation2 + $0xf0] sm:$0xff] %vm2154_vm8, %v2068_v63  ;;  %v2568_v2 = vpack.c.bf16 %v2539_v1, %v2538_v60  ;;  %v3849_v63 = vld [vmem:[%s6746_s0 + $0x460] sm:$0xff] }
 0x380   :  { %2481 = vst.msk [vmem:[#allocation2 + $0xf0] sm:$0xff] %vm2450_vm9, %v2364_v44  ;;  %v3857_v44 = vld [vmem:[%s6746_s0 + $0x600] sm:$0xff] }
 0x381   :  { %3996 = vmatmul.msk.bf16.vlgmr.msra.gmra.mxu3 %vm2598_vm10, %v2568_v2 }
 0x382   :  { %1797 = vrot.lane.b32.xlu2 %v3865_v3, %s4077_s21 }
 0x383   :  { %1795 = vrot.lane.b32.xlu1 %v3864_v40, %s4077_s21  ;;  %v3768_v40 = vld [vmem:[%s6746_s0 + $0x6a8] sm:$0xff] }
 0x384   :  { %1501 = vrot.lane.b32.xlu0 %v3816_v4, %s4076_s16  ;;  %v1748_v5 = vpop.permute.xlu2 %1747  ;;  %v3947_v4 = vld [vmem:[%s6746_s0 + $0x470] sm:$0xff] }
 0x385   :  { %v1460_v6 = vpop.permute.xlu1 %1459 }
 0x386   :  { %v2366_v8 = vpop.permute.xlu0 %2365  ;;  %1585 = vst.msk [vmem:[#allocation2 + $0xb0] sm:$0xff] %vm1562_vm5, %v1460_v6 }
 0x387   :  { %2482 = vst.msk [vmem:[#allocation2 + $0xf8] sm:$0xff] %vm2450_vm9, %v2366_v8  ;;  %v2530_v11 = vld [vmem:[#allocation2 + $0xf0] sm:$0xff] }
 0x38a   :  { %1483 = vrot.lane.b32.xlu2 %v3807_v39, %s4076_s16 }
 0x38b   :  { %2093 = vrot.lane.b32.xlu1 %v3914_v9, %s4079_s28 }
 0x38c   :  { %2091 = vrot.lane.b32.xlu0 %v3913_v10, %s4079_s28  ;;  %v1498_v57 = vpop.permute.xlu2 %1497 }
 0x38d   :  { %1604 = vst.msk [vmem:[#allocation2 + $0x148] sm:$0xff] %vm1562_vm5, %v1498_v57  ;;  %v1758_v13 = vpop.permute.xlu1 %1757 }
 0x38e   :  { %v1756_v14 = vpop.permute.xlu0 %1755  ;;  %1882 = vst.msk [vmem:[#allocation2 + $0xb8] sm:$0xff] %vm1858_vm7, %v1758_v13  ;;  %v6048_v15 = vpop.f32.mrf.mxu0  ;;  %v2531_v46 = vld [vmem:[#allocation2 + $0xf8] sm:$0xff] }
 0x38f   :  { %1881 = vst.msk [vmem:[#allocation2 + $0xb0] sm:$0xff] %vm1858_vm7, %v1756_v14  ;;  %v2564_v36 = vpack.c.bf16 %v2531_v46, %v2530_v11  ;;  %v3818_v14 = vld [vmem:[%s6746_s0 + $0x6c0] sm:$0xff]  ;;  %v3817_v46 = vld [vmem:[%s6746_s0 + $0x6b0] sm:$0xff] }
 0x390   :  { %2177 = vst.msk [vmem:[#allocation2 + $0xb0] sm:$0xff] %vm2154_vm8, %v2052_v49 }
 0x391   :  { %3992 = vmatmul.msk.bf16.gmra.mxu2 %vm2598_vm10, %v2564_v36  ;;  %v3769_v36 = vld [vmem:[%s6746_s0 + $0x6b8] sm:$0xff] }
 0x392   :  { %2389 = vrot.lane.b32.xlu2 %v6054_v17, %s4078_s27 }
 0x393   :  { %2387 = vrot.lane.b32.xlu1 %v3865_v3, %s4078_s27 }
 0x394   :  { %1485 = vrot.lane.b32.xlu0 %v3808_v18, %s4076_s16  ;;  %v1792_v21 = vpop.permute.xlu2 %1791 }
 0x395   :  { %v1452_v22 = vpop.permute.xlu1 %1451 }
 0x396   :  { %v2054_v23 = vpop.permute.xlu0 %2053  ;;  %1581 = vst.msk [vmem:[#allocation2 + $0x90] sm:$0xff] %vm1562_vm5, %v1452_v22  ;;  %v6066_v25 = vpop.f32.mrf.mxu0 }
 0x397   :  { %1877 = vst.msk [vmem:[#allocation2 + $0x90] sm:$0xff] %vm1858_vm7, %v1748_v5 }
 0x398   :  { %2178 = vst.msk [vmem:[#allocation2 + $0xb8] sm:$0xff] %vm2154_vm8, %v2054_v23  ;;  %v3915_v23 = vld [vmem:[%s6746_s0 + $0x728] sm:$0xff] }
 0x39a   :  { %2075 = vrot.lane.b32.xlu2 %v3905_v16, %s4079_s28  ;;  %v3867_v16 = vld [vmem:[%s6746_s0 + $0x730] sm:$0xff] }
 0x39b   :  { %1781 = vrot.lane.b32.xlu1 %v3857_v44, %s4077_s21 }
 0x39c   :  { %1779 = vrot.lane.b32.xlu0 %v5951_v24, %s4077_s21  ;;  %v2342_v45 = vpop.permute.xlu2 %2341  ;;  %v3954_v24 = vld [vmem:[%s6746_s0 + $0x570] sm:$0xff] }
 0x39d   :  { %v2350_v27 = vpop.permute.xlu1 %2349 }
 0x39e   :  { %v2348_v20 = vpop.permute.xlu0 %2347  ;;  %2474 = vst.msk [vmem:[#allocation2 + $0xb8] sm:$0xff] %vm2450_vm9, %v2350_v27 }
 0x39f   :  { %2473 = vst.msk [vmem:[#allocation2 + $0xb0] sm:$0xff] %vm2450_vm9, %v2348_v20  ;;  %v2722_v29 = vpop.f32.mrf.mxu0 }
 0x3a0   :  { %v6088_v33 = vadd.f32 %v5776_v7, %v2722_v29 }
 0x3a2   :  { %v2825_v37 = vmax.f32 %v6088_v33, 0.0  ;;  %2373 = vrot.lane.b32.xlu2 %v6085_v32, %s4078_s27 }
 0x3a3   :  { %2371 = vrot.lane.b32.xlu1 %v3954_v24, %s4078_s27 }
 0x3a4   :  { %2077 = vrot.lane.b32.xlu0 %v3906_v34, %s4079_s28  ;;  %2864 = vst.msk [vmem:[#allocation3 + $0x18] sm:$0xff] %vm2860_vm11, %v2825_v37  ;;  %v1480_v38 = vpop.permute.xlu2 %1479  ;;  %v3810_v34 = vld [vmem:[%s6746_s0 + $0x5b0] sm:$0xff] }
 0x3a5   :  { %1595 = vst.msk [vmem:[#allocation2 + $0x100] sm:$0xff] %vm1562_vm5, %v1480_v38  ;;  %v1496_v41 = vpop.permute.xlu1 %1495  ;;  %v2523_v50 = vld [vmem:[#allocation2 + $0xb8] sm:$0xff] }
 0x3a6   :  { %v1750_v35 = vpop.permute.xlu0 %1749  ;;  %1603 = vst.msk [vmem:[#allocation2 + $0x140] sm:$0xff] %vm1562_vm5, %v1496_v41  ;;  %v2522_v47 = vld [vmem:[#allocation2 + $0xb0] sm:$0xff]  ;;  %v3916_v38 = vld [vmem:[%s6746_s0 + $0x738] sm:$0xff] }
 0x3a7   :  { %1899 = vst.msk [vmem:[#allocation2 + $0x140] sm:$0xff] %vm1858_vm7, %v1792_v21  ;;  %v2560_v49 = vpack.c.bf16 %v2523_v50, %v2522_v47  ;;  %v3965_v47 = vld [vmem:[%s6746_s0 + $0x740] sm:$0xff] }
 0x3a8   :  { %1878 = vst.msk [vmem:[#allocation2 + $0x98] sm:$0xff] %vm1858_vm7, %v1750_v35 }
 0x3a9   :  { %3988 = vmatmul.msk.bf16.gmra.mxu1 %vm2598_vm10, %v2560_v49 }
 0x3aa   :  { %1763 = vrot.lane.b32.xlu2 %v6005_v55, %s4077_s21  ;;  %v3897_v55 = vld [vmem:[%s6746_s0 + $0x458] sm:$0xff] }
 0x3ab   :  { %1469 = vrot.lane.b32.xlu1 %v3800_v52, %s4076_s16 }
 0x3ac   :  { %1467 = vrot.lane.b32.xlu0 %v3799_v53, %s4076_s16  ;;  %v2386_v54 = vpop.permute.xlu2 %2385 }
 0x3ad   :  { %v2046_v58 = vpop.permute.xlu1 %2045 }
 0x3ae   :  { %v2044_v60 = vpop.permute.xlu0 %2043  ;;  %2174 = vst.msk [vmem:[#allocation2 + $0x98] sm:$0xff] %vm2154_vm8, %v2046_v58 }
 0x3af   :  { %2470 = vst.msk [vmem:[#allocation2 + $0x98] sm:$0xff] %vm2450_vm9, %v2342_v45 }
 0x3b0   :  { %2173 = vst.msk [vmem:[#allocation2 + $0x90] sm:$0xff] %vm2154_vm8, %v2044_v60  ;;  %v3908_v60 = vld [vmem:[%s6746_s0 + $0x628] sm:$0xff] }
 0x3b2   :  { %2061 = vrot.lane.b32.xlu2 %v3898_v61, %s4079_s28  ;;  %v3907_v61 = vld [vmem:[%s6746_s0 + $0x618] sm:$0xff] }
 0x3b3   :  { %2059 = vrot.lane.b32.xlu1 %v3897_v55, %s4079_s28  ;;  %v3859_v55 = vld [vmem:[%s6746_s0 + $0x620] sm:$0xff] }
 0x3b4   :  { %1765 = vrot.lane.b32.xlu0 %v3849_v63, %s4077_s21  ;;  %v2072_v1 = vpop.permute.xlu2 %2071 }
 0x3b5   :  { %v2340_v2 = vpop.permute.xlu1 %2339 }
 0x3b6   :  { %v1794_v3 = vpop.permute.xlu0 %1793  ;;  %2469 = vst.msk [vmem:[#allocation2 + $0x90] sm:$0xff] %vm2450_vm9, %v2340_v2  ;;  %v2519_v5 = vld [vmem:[#allocation2 + $0x98] sm:$0xff] }
 0x3b7   :  { %1900 = vst.msk [vmem:[#allocation2 + $0x148] sm:$0xff] %vm1858_vm7, %v1794_v3  ;;  %v6225_v3 = vpop.f32.mrf.mxu0 }
 0x3ba   :  { %1207 = vrot.lane.b32.xlu2 %v3768_v40, %s4075_s22  ;;  %v3770_v40 = vld [vmem:[%s6746_s0 + $0x6c8] sm:$0xff] }
 0x3bb   :  { %2357 = vrot.lane.b32.xlu1 %v3947_v4, %s4078_s27 }
 0x3bc   :  { %2355 = vrot.lane.b32.xlu0 %v3849_v63, %s4078_s27  ;;  %v2757_v6 = vpop.f32.mrf.mxu2  ;;  %v2370_v8 = vpop.permute.xlu2 %2369 }
 0x3bd   :  { %v6146_v39 = vadd.f32 %v5776_v7, %v2757_v6  ;;  %v2090_v9 = vpop.permute.xlu1 %2089  ;;  %v2518_v57 = vld [vmem:[#allocation2 + $0x90] sm:$0xff] }
 0x3be   :  { %v2088_v10 = vpop.permute.xlu0 %2087  ;;  %2196 = vst.msk [vmem:[#allocation2 + $0x148] sm:$0xff] %vm2154_vm8, %v2090_v9  ;;  %v2558_v11 = vpack.c.bf16 %v2519_v5, %v2518_v57  ;;  %v3820_v9 = vld [vmem:[%s6746_s0 + $0x6e0] sm:$0xff]  ;;  %v3771_v57 = vld [vmem:[%s6746_s0 + $0x6d8] sm:$0xff] }
 0x3bf   :  { %v2839_v13 = vmax.f32 %v6146_v39, 0.0  ;;  %2492 = vst.msk [vmem:[#allocation2 + $0x148] sm:$0xff] %vm2450_vm9, %v2386_v54 }
 0x3c0   :  { %2195 = vst.msk [vmem:[#allocation2 + $0x140] sm:$0xff] %vm2154_vm8, %v2088_v10  ;;  %3986 = vmatmul.msk.bf16.gmra.mxu0 %vm2598_vm10, %v2558_v11 }
 0x3c1   :  { %2867 = vst.msk [vmem:[#allocation3 + $0x30] sm:$0xff] %vm2860_vm11, %v2839_v13 }
 0x3c2   :  { %1505 = vrot.lane.b32.xlu2 %v3818_v14, %s4076_s16 }
 0x3c3   :  { %1503 = vrot.lane.b32.xlu1 %v3817_v46, %s4076_s16 }
 0x3c4   :  { %1209 = vrot.lane.b32.xlu0 %v3769_v36, %s4075_s22  ;;  %v1760_v18 = vpop.permute.xlu2 %1759 }
 0x3c5   :  { %v2384_v21 = vpop.permute.xlu1 %2383 }
 0x3c6   :  { %v1482_v22 = vpop.permute.xlu0 %1481  ;;  %2491 = vst.msk [vmem:[#allocation2 + $0x140] sm:$0xff] %vm2450_vm9, %v2384_v21  ;;  %v2541_v44 = vld [vmem:[#allocation2 + $0x148] sm:$0xff] }
 0x3c7   :  { %1596 = vst.msk [vmem:[#allocation2 + $0x108] sm:$0xff] %vm1562_vm5, %v1482_v22 }
 0x3ca   :  { %2095 = vrot.lane.b32.xlu2 %v3915_v23, %s4079_s28  ;;  %v3917_v23 = vld [vmem:[%s6746_s0 + $0x748] sm:$0xff] }
 0x3cb   :  { %1801 = vrot.lane.b32.xlu1 %v3867_v16, %s4077_s21 }
 0x3cc   :  { %1799 = vrot.lane.b32.xlu0 %v6054_v17, %s4077_s21  ;;  %v2058_v45 = vpop.permute.xlu2 %2057  ;;  %v3809_v17 = vld [vmem:[%s6746_s0 + $0x5a0] sm:$0xff] }
 0x3cd   :  { %v1778_v27 = vpop.permute.xlu1 %1777  ;;  %v2540_v29 = vld [vmem:[#allocation2 + $0x140] sm:$0xff] }
 0x3ce   :  { %v1776_v20 = vpop.permute.xlu0 %1775  ;;  %1892 = vst.msk [vmem:[#allocation2 + $0x108] sm:$0xff] %vm1858_vm7, %v1778_v27  ;;  %v2569_v24 = vpack.c.bf16 %v2541_v44, %v2540_v29  ;;  %v3918_v29 = vld [vmem:[%s6746_s0 + $0x758] sm:$0xff] }
 0x3cf   :  { %1891 = vst.msk [vmem:[#allocation2 + $0x100] sm:$0xff] %vm1858_vm7, %v1776_v20  ;;  %v3967_v20 = vld [vmem:[%s6746_s0 + $0x760] sm:$0xff] }
 0x3d0   :  { %2187 = vst.msk [vmem:[#allocation2 + $0x100] sm:$0xff] %vm2154_vm8, %v2072_v1  ;;  %3997 = vmatmul.msk.bf16.gmra.mxu3 %vm2598_vm10, %v2569_v24 }
 0x3d2   :  { %1489 = vrot.lane.b32.xlu2 %v3810_v34, %s4076_s16 }
 0x3d3   :  { %1487 = vrot.lane.b32.xlu1 %v3809_v17, %s4076_s16 }
 0x3d4   :  { %2097 = vrot.lane.b32.xlu0 %v3916_v38, %s4079_s28  ;;  %v1500_v41 = vpop.permute.xlu2 %1499  ;;  %v3821_v38 = vld [vmem:[%s6746_s0 + $0x6f0] sm:$0xff] }
 0x3d5   :  { %1605 = vst.msk [vmem:[#allocation2 + $0x150] sm:$0xff] %vm1562_vm5, %v1500_v41  ;;  %v2368_v35 = vpop.permute.xlu1 %2367  ;;  %v3772_v41 = vld [vmem:[%s6746_s0 + $0x6e8] sm:$0xff] }
 0x3d6   :  { %v2074_v50 = vpop.permute.xlu0 %2073  ;;  %2483 = vst.msk [vmem:[#allocation2 + $0x100] sm:$0xff] %vm2450_vm9, %v2368_v35 }
 0x3d7   :  { %2188 = vst.msk [vmem:[#allocation2 + $0x108] sm:$0xff] %vm2154_vm8, %v2074_v50  ;;  %v2690_v50 = vadd.f32 %v5776_v7, %v5803_v19  ;;  %v3968_v19 = vld [vmem:[%s6746_s0 + $0x770] sm:$0xff] }
 0x3d8   :  { %2484 = vst.msk [vmem:[#allocation2 + $0x108] sm:$0xff] %vm2450_vm9, %v2370_v8 }
 0x3da   :  { %1783 = vrot.lane.b32.xlu2 %v6085_v32, %s4077_s21 }
 0x3db   :  { %2393 = vrot.lane.b32.xlu1 %v3965_v47, %s4078_s27 }
 0x3dc   :  { %2391 = vrot.lane.b32.xlu0 %v3867_v16, %s4078_s27  ;;  %v1798_v49 = vpop.permute.xlu2 %1797  ;;  %v3869_v16 = vld [vmem:[%s6746_s0 + $0x750] sm:$0xff] }
 0x3dd   :  { %v1466_v52 = vpop.permute.xlu1 %1465  ;;  %v2532_v54 = vld [vmem:[#allocation2 + $0x100] sm:$0xff] }
 0x3de   :  { %v1464_v53 = vpop.permute.xlu0 %1463  ;;  %1588 = vst.msk [vmem:[#allocation2 + $0xc8] sm:$0xff] %vm1562_vm5, %v1466_v52 }
 0x3df   :  { %1587 = vst.msk [vmem:[#allocation2 + $0xc0] sm:$0xff] %vm1562_vm5, %v1464_v53  ;;  %v2533_v58 = vld [vmem:[#allocation2 + $0x108] sm:$0xff] }
 0x3e0   :  { %1883 = vst.msk [vmem:[#allocation2 + $0xc0] sm:$0xff] %vm1858_vm7, %v1760_v18  ;;  %v2565_v32 = vpack.c.bf16 %v2533_v58, %v2532_v54 }
 0x3e2   :  { %3993 = vmatmul.msk.bf16.gmra.mxu2 %vm2598_vm10, %v2565_v32  ;;  %2081 = vrot.lane.b32.xlu2 %v3908_v60, %s4079_s28  ;;  %v2812_v60 = vmax.f32 %v2690_v50, 0.0  ;;  %v3919_v32 = vld [vmem:[%s6746_s0 + $0x768] sm:$0xff] }
 0x3e3   :  { %2079 = vrot.lane.b32.xlu1 %v3907_v61, %s4079_s28 }
 0x3e4   :  { %1785 = vrot.lane.b32.xlu0 %v3859_v55, %s4077_s21  ;;  %v1484_v63 = vpop.permute.xlu2 %1483 }
 0x3e5   :  { %1597 = vst.msk [vmem:[#allocation2 + $0x110] sm:$0xff] %vm1562_vm5, %v1484_v63  ;;  %v2056_v1 = vpop.permute.xlu1 %2055  ;;  %v2695_v63 = vadd.f32 %v5776_v7, %v5854_v43  ;;  %v2708_v43 = vadd.f32 %v5776_v7, %v5972_v30 }
 0x3e6   :  { %v1762_v2 = vpop.permute.xlu0 %1761  ;;  %2179 = vst.msk [vmem:[#allocation2 + $0xc0] sm:$0xff] %vm2154_vm8, %v2056_v1 }
 0x3e7   :  { %1884 = vst.msk [vmem:[#allocation2 + $0xc8] sm:$0xff] %vm1858_vm7, %v1762_v2  ;;  %v2819_v28 = vmax.f32 %v2708_v43, 0.0 }
 0x3e8   :  { %2180 = vst.msk [vmem:[#allocation2 + $0xc8] sm:$0xff] %vm2154_vm8, %v2058_v45 }
 0x3ea   :  { %1211 = vrot.lane.b32.xlu2 %v3770_v40, %s4075_s22 }
 0x3eb   :  { %2377 = vrot.lane.b32.xlu1 %v5711_v42, %s4078_s27  ;;  %v3819_v42 = vld [vmem:[%s6746_s0 + $0x6d0] sm:$0xff]  ;;  %s4080_s0 = smov 40  }
 0x3ec   :  { %2375 = vrot.lane.b32.xlu0 %v3859_v55, %s4078_s27  ;;  %v2390_v4 = vpop.permute.xlu2 %2389 }
 0x3ed   :  { %v2354_v5 = vpop.permute.xlu1 %2353 }
 0x3ee   :  { %v2352_v6 = vpop.permute.xlu0 %2351  ;;  %2476 = vst.msk [vmem:[#allocation2 + $0xc8] sm:$0xff] %vm2450_vm9, %v2354_v5  ;;  %v2814_v5 = vmax.f32 %v2695_v63, 0.0 }
 0x3ef   :  { %2475 = vst.msk [vmem:[#allocation2 + $0xc0] sm:$0xff] %vm2450_vm9, %v2352_v6  ;;  %v2727_v8 = vpop.f32.mrf.mxu0 }
 0x3f0   :  { %v2728_v10 = vadd.f32 %v5776_v7, %v2727_v8  ;;  %v2705_v8 = vadd.f32 %v5776_v7, %v5953_v26  ;;  %v6341_v26 = vadd.f32 %v5776_v7, %v6030_v56 }
 0x3f2   :  { %v6248_v11 = vmax.f32 %v2728_v10, 0.0  ;;  %1509 = vrot.lane.b32.xlu2 %v3820_v9, %s4076_s16  ;;  %v2710_v9 = vadd.f32 %v5776_v7, %v5995_v48  ;;  %v2818_v30 = vmax.f32 %v2705_v8, 0.0 }
 0x3f3   :  { %1507 = vrot.lane.b32.xlu1 %v3819_v42, %s4076_s16 }
 0x3f4   :  { %1213 = vrot.lane.b32.xlu0 %v3771_v57, %s4075_s22  ;;  %2865 = vst.msk [vmem:[#allocation3 + $0x20] sm:$0xff] %vm2860_vm11, %v6248_v11  ;;  %v2076_v14 = vpop.permute.xlu2 %2075  ;;  %v2820_v57 = vmax.f32 %v2710_v9, 0.0 }
 0x3f5   :  { %v1796_v46 = vpop.permute.xlu1 %1795  ;;  %v2525_v18 = vld [vmem:[#allocation2 + $0xc8] sm:$0xff] }
 0x3f6   :  { %v1502_v36 = vpop.permute.xlu0 %1501  ;;  %1901 = vst.msk [vmem:[#allocation2 + $0x150] sm:$0xff] %vm1858_vm7, %v1796_v46  ;;  %v2524_v21 = vld [vmem:[#allocation2 + $0xc0] sm:$0xff] }
 0x3f7   :  { %1606 = vst.msk [vmem:[#allocation2 + $0x158] sm:$0xff] %vm1562_vm5, %v1502_v36  ;;  %v2561_v22 = vpack.c.bf16 %v2525_v18, %v2524_v21  ;;  %v2822_v18 = vmax.f32 %v6341_v26, 0.0 }
 0x3f8   :  { %1902 = vst.msk [vmem:[#allocation2 + $0x158] sm:$0xff] %vm1858_vm7, %v1798_v49 }
 0x3f9   :  { %3989 = vmatmul.msk.bf16.gmra.mxu1 %vm2598_vm10, %v2561_v22 }
 0x3fa   :  { %2099 = vrot.lane.b32.xlu2 %v3917_v23, %s4079_s28 }
 0x3fb   :  { %1805 = vrot.lane.b32.xlu1 %v3869_v16, %s4077_s21 }
 0x3fc   :  { %1803 = vrot.lane.b32.xlu0 %v3965_v47, %s4077_s21  ;;  %v2374_v44 = vpop.permute.xlu2 %2373  ;;  %v6293_v47 = vpop.f32.mrf.mxu2 }
 0x3fd   :  { %v2094_v45 = vpop.permute.xlu1 %2093 }
 0x3fe   :  { %v2092_v27 = vpop.permute.xlu0 %2091  ;;  %2198 = vst.msk [vmem:[#allocation2 + $0x158] sm:$0xff] %vm2154_vm8, %v2094_v45 }
 0x3ff   :  { %2494 = vst.msk [vmem:[#allocation2 + $0x158] sm:$0xff] %vm2450_vm9, %v2390_v4 }
 0x400   :  { %2197 = vst.msk [vmem:[#allocation2 + $0x150] sm:$0xff] %vm2154_vm8, %v2092_v27 }
 0x402   :  { %2397 = vrot.lane.b32.xlu2 %v3967_v20, %s4078_s27 }
 0x403   :  { %2395 = vrot.lane.b32.xlu1 %v3869_v16, %s4078_s27 }
 0x404   :  { %2101 = vrot.lane.b32.xlu0 %v3918_v29, %s4079_s28  ;;  %v1764_v24 = vpop.permute.xlu2 %1763 }
 0x405   :  { %v2388_v34 = vpop.permute.xlu1 %2387 }
 0x406   :  { %v1486_v17 = vpop.permute.xlu0 %1485  ;;  %2493 = vst.msk [vmem:[#allocation2 + $0x150] sm:$0xff] %vm2450_vm9, %v2388_v34  ;;  %v2543_v35 = vld [vmem:[#allocation2 + $0x158] sm:$0xff] }
 0x407   :  { %1598 = vst.msk [vmem:[#allocation2 + $0x118] sm:$0xff] %vm1562_vm5, %v1486_v17 }
 0x40a   :  { %1807 = vrot.lane.b32.xlu2 %v3967_v20, %s4077_s21 }
 0x40b   :  { %1511 = vrot.lane.b32.xlu1 %v3821_v38, %s4076_s16 }
 0x40c   :  { %1215 = vrot.lane.b32.xlu0 %v3772_v41, %s4075_s22  ;;  %v2062_v49 = vpop.permute.xlu2 %2061 }
 0x40d   :  { %v1782_v52 = vpop.permute.xlu1 %1781  ;;  %v2542_v54 = vld [vmem:[#allocation2 + $0x150] sm:$0xff] }
 0x40e   :  { %v1780_v53 = vpop.permute.xlu0 %1779  ;;  %1894 = vst.msk [vmem:[#allocation2 + $0x118] sm:$0xff] %vm1858_vm7, %v1782_v52  ;;  %v2570_v58 = vpack.c.bf16 %v2543_v35, %v2542_v54 }
 0x40f   :  { %1893 = vst.msk [vmem:[#allocation2 + $0x110] sm:$0xff] %vm1858_vm7, %v1780_v53 }
 0x410   :  { %2189 = vst.msk [vmem:[#allocation2 + $0x110] sm:$0xff] %vm2154_vm8, %v2076_v14  ;;  %3998 = vmatmul.msk.bf16.gmra.mxu3 %vm2598_vm10, %v2570_v58  ;;  %v2713_v14 = vadd.f32 %v5776_v7, %v6011_v59 }
 0x412   :  { %2879 = vrot.lane.b32.xlu2 %v2812_v60, %s4073_s30  ;;  %v2821_v21 = vmax.f32 %v2713_v14, 0.0 }
 0x413   :  { %2399 = vrot.lane.b32.xlu1 %v3968_v19, %s4078_s27 }
 0x414   :  { %2103 = vrot.lane.b32.xlu0 %v3919_v32, %s4079_s28  ;;  %v2762_v61 = vpop.f32.mrf.mxu2  ;;  %v1208_v55 = vpop.permute.xlu2 %1207 }
 0x415   :  { %v2763_v1 = vadd.f32 %v5776_v7, %v2762_v61  ;;  %1311 = vst.msk [vmem:[#allocation2 + $0x160] sm:$0xff] %vm1266_vm4, %v1208_v55  ;;  %v2372_v2 = vpop.permute.xlu1 %2371  ;;  %v6357_v7 = vld [vmem:[%s6748_s2] ss:$0 sm:$0xff]  ;;  %s4083_s2 = smov 64  }
 0x416   :  { %v2078_v40 = vpop.permute.xlu0 %2077  ;;  %2485 = vst.msk [vmem:[#allocation2 + $0x110] sm:$0xff] %vm2450_vm9, %v2372_v2  ;;  %v2725_v59 = vadd.f32 %v6357_v7, %v6225_v3  ;;  %v2700_v38 = vadd.f32 %v6357_v7, %v5916_v12  ;;  %v2703_v58 = vadd.f32 %v6357_v7, %v5931_v0  ;;  %v2718_v55 = vadd.f32 %v6357_v7, %v6048_v15 }
 0x417   :  { %v6313_v4 = vmax.f32 %v2763_v1, 0.0  ;;  %2190 = vst.msk [vmem:[#allocation2 + $0x118] sm:$0xff] %vm2154_vm8, %v2078_v40  ;;  %v2720_v8 = vadd.f32 %v6357_v7, %v6066_v25 }
 0x418   :  { %2486 = vst.msk [vmem:[#allocation2 + $0x118] sm:$0xff] %vm2450_vm9, %v2374_v44  ;;  %v2826_v16 = vmax.f32 %v2725_v59, 0.0  ;;  %v2729_v44 = vpop.f32.mrf.mxu0  ;;  %v2816_v53 = vmax.f32 %v2700_v38, 0.0  ;;  %v2817_v61 = vmax.f32 %v2703_v58, 0.0 }
 0x419   :  { %2868 = vst.msk [vmem:[#allocation3 + $0x38] sm:$0xff] %vm2860_vm11, %v6313_v4  ;;  %v6371_v45 = vadd.f32 %v6357_v7, %v2729_v44 }
 0x41a   :  { %2927 = vrot.lane.b32.xlu2 %v2815_v62, %s4075_s22 }
 0x41b   :  { %2925 = vrot.lane.b32.xlu1 %v2813_v31, %s4075_s22  ;;  %v2828_v33 = vmax.f32 %v6371_v45, 0.0 }
 0x41c   :  { %2881 = vrot.lane.b32.xlu0 %v2814_v5, %s4073_s30  ;;  %v1506_v6 = vpop.permute.xlu2 %1505  ;;  %v2823_v5 = vmax.f32 %v2718_v55, 0.0 }
 0x41d   :  { %v1470_v10 = vpop.permute.xlu1 %1469  ;;  %v2534_v51 = vld [vmem:[#allocation2 + $0x110] sm:$0xff] }
 0x41e   :  { %v1468_v42 = vpop.permute.xlu0 %1467  ;;  %1590 = vst.msk [vmem:[#allocation2 + $0xd8] sm:$0xff] %vm1562_vm5, %v1470_v10 }
 0x41f   :  { %1589 = vst.msk [vmem:[#allocation2 + $0xd0] sm:$0xff] %vm1562_vm5, %v1468_v42  ;;  %v2535_v62 = vld [vmem:[#allocation2 + $0x118] sm:$0xff] }
 0x420   :  { %1885 = vst.msk [vmem:[#allocation2 + $0xd0] sm:$0xff] %vm1858_vm7, %v1764_v24  ;;  %v2566_v31 = vpack.c.bf16 %v2535_v62, %v2534_v51  ;;  %v6373_v24 = vpop.f32.mrf.mxu1 }
 0x422   :  { %3994 = vmatmul.msk.bf16.gmra.mxu2 %vm2598_vm10, %v2566_v31  ;;  %3017 = vrot.lane.b32.xlu2 %v2819_v28, %s4078_s27  ;;  %v2824_v31 = vmax.f32 %v2720_v8, 0.0 }
 0x423   :  { %2973 = vrot.lane.b32.xlu1 %v2820_v57, %s4077_s21 }
 0x424   :  { %2971 = vrot.lane.b32.xlu0 %v2818_v30, %s4077_s21  ;;  %v2096_v48 = vpop.permute.xlu2 %2095 }
 0x425   :  { %v2060_v46 = vpop.permute.xlu1 %2059 }
 0x426   :  { %v1766_v36 = vpop.permute.xlu0 %1765  ;;  %2181 = vst.msk [vmem:[#allocation2 + $0xd0] sm:$0xff] %vm2154_vm8, %v2060_v46 }
 0x427   :  { %1886 = vst.msk [vmem:[#allocation2 + $0xd8] sm:$0xff] %vm1858_vm7, %v1766_v36  ;;  %v6439_v36 = vadd.f32 %v6357_v7, %v6293_v47  ;;  %v2738_v47 = vadd.f32 %v6357_v7, %v6373_v24 }
 0x428   :  { %2182 = vst.msk [vmem:[#allocation2 + $0xd8] sm:$0xff] %vm2154_vm8, %v2062_v49  ;;  %v2739_v52 = vpop.f32.mrf.mxu1 }
 0x429   :  { %v2740_v63 = vadd.f32 %v6357_v7, %v2739_v52 }
 0x42a   :  { %3059 = vrot.lane.b32.xlu2 %v2822_v18, %s4080_s0 }
 0x42b   :  { %3057 = vrot.lane.b32.xlu1 %v2820_v57, %s4080_s0  ;;  %v6432_v57 = vpop.f32.mrf.mxu2 }
 0x42c   :  { %3019 = vrot.lane.b32.xlu0 %v2821_v21, %s4078_s27  ;;  %v1490_v56 = vpop.permute.xlu2 %1489  ;;  %v2840_v21 = vmax.f32 %v6439_v36, 0.0 }
 0x42d   :  { %1600 = vst.msk [vmem:[#allocation2 + $0x128] sm:$0xff] %vm1562_vm5, %v1490_v56  ;;  %v2358_v22 = vpop.permute.xlu1 %2357 }
 0x42e   :  { %v2356_v23 = vpop.permute.xlu0 %2355  ;;  %2478 = vst.msk [vmem:[#allocation2 + $0xd8] sm:$0xff] %vm2450_vm9, %v2358_v22 }
 0x42f   :  { %2477 = vst.msk [vmem:[#allocation2 + $0xd0] sm:$0xff] %vm2450_vm9, %v2356_v23 }
 0x430   :  { %v2742_v32 = vpop.f32.mrf.mxu1 }
 0x431   :  { %v2743_v40 = vadd.f32 %v6357_v7, %v2742_v32 }
 0x432   :  { %3139 = vrot.lane.b32.xlu2 %v2826_v16, %s4081_s18 }
 0x433   :  { %3101 = vrot.lane.b32.xlu1 %v6248_v11, %s4082_s19  ;;  %v2833_v43 = vmax.f32 %v2743_v40, 0.0 }
 0x434   :  { %3099 = vrot.lane.b32.xlu0 %v2825_v37, %s4082_s19  ;;  %v1784_v3 = vpop.permute.xlu2 %1783 }
 0x435   :  { %v1504_v27 = vpop.permute.xlu1 %1503  ;;  %v2527_v29 = vld [vmem:[#allocation2 + $0xd8] sm:$0xff] }
 0x436   :  { %v1210_v20 = vpop.permute.xlu0 %1209  ;;  %1607 = vst.msk [vmem:[#allocation2 + $0x160] sm:$0xff] %vm1562_vm5, %v1504_v27  ;;  %v2526_v34 = vld [vmem:[#allocation2 + $0xd0] sm:$0xff]  ;;  %v2831_v27 = vmax.f32 %v2738_v47, 0.0 }
 0x437   :  { %1312 = vst.msk [vmem:[#allocation2 + $0x168] sm:$0xff] %vm1266_vm4, %v1210_v20  ;;  %v2562_v17 = vpack.c.bf16 %v2527_v29, %v2526_v34 }
 0x438   :  { %1608 = vst.msk [vmem:[#allocation2 + $0x168] sm:$0xff] %vm1562_vm5, %v1506_v6  ;;  %v2744_v6 = vpop.f32.mrf.mxu1 }
 0x439   :  { %3990 = vmatmul.msk.bf16.gmra.mxu1 %vm2598_vm10, %v2562_v17  ;;  %v6423_v9 = vadd.f32 %v6357_v7, %v2744_v6  ;;  %v4035_v6 = vld [vmem:[%s6749_s3 + $0x8] sm:$0xff] }
 0x43b   :  { %3177 = vrot.lane.b32.xlu1 %v6248_v11, %s4083_s2  ;;  %v2834_v30 = vmax.f32 %v6423_v9, 0.0 }
 0x43c   :  { %3141 = vrot.lane.b32.xlu0 %v2828_v33, %s4081_s18  ;;  %v2082_v37 = vpop.permute.xlu2 %2081 }
 0x43d   :  { %v1802_v41 = vpop.permute.xlu1 %1801  ;;  %v2732_v50 = vpop.f32.mrf.mxu0 }
 0x43e   :  { %v1800_v35 = vpop.permute.xlu0 %1799  ;;  %1904 = vst.msk [vmem:[#allocation2 + $0x168] sm:$0xff] %vm1858_vm7, %v1802_v41  ;;  %v2733_v49 = vadd.f32 %v6357_v7, %v2732_v50 }
 0x43f   :  { %1903 = vst.msk [vmem:[#allocation2 + $0x160] sm:$0xff] %vm1858_vm7, %v1800_v35 }
 0x440   :  { %2199 = vst.msk [vmem:[#allocation2 + $0x160] sm:$0xff] %vm2154_vm8, %v2096_v48  ;;  %v6391_v54 = vmax.f32 %v2733_v49, 0.0 }
 0x442   :  { %2866 = vst.msk [vmem:[#allocation3 + $0x28] sm:$0xff] %vm2860_vm11, %v6391_v54  ;;  %3179 = vrot.lane.b32.xlu2 %v6391_v54, %s4083_s2 }
 0x443   :  { %2885 = vrot.lane.b32.xlu1 %v2826_v16, %s4073_s30 }
 0x444   :  { %2883 = vrot.lane.b32.xlu0 %v2816_v53, %s4073_s30  ;;  %v1212_v12 = vpop.permute.xlu2 %1211 }
 0x445   :  { %1313 = vst.msk [vmem:[#allocation2 + $0x170] sm:$0xff] %vm1266_vm4, %v1212_v12  ;;  %v1488_v60 = vpop.permute.xlu1 %1487  ;;  %v2734_v25 = vpop.f32.mrf.mxu0 }
 0x446   :  { %v2098_v19 = vpop.permute.xlu0 %2097  ;;  %1599 = vst.msk [vmem:[#allocation2 + $0x120] sm:$0xff] %vm1562_vm5, %v1488_v60  ;;  %v2735_v48 = vadd.f32 %v6357_v7, %v2734_v25  ;;  %v3236_v60 = vld [vmem:[%s6749_s3 + $0x20] sm:$0xf] }
 0x447   :  { %1895 = vst.msk [vmem:[#allocation2 + $0x120] sm:$0xff] %vm1858_vm7, %v1784_v3 }
 0x448   :  { %2200 = vst.msk [vmem:[#allocation2 + $0x168] sm:$0xff] %vm2154_vm8, %v2098_v19  ;;  %v3258_v19 = vunpack.c.l.b16 %v3236_v60 }
 0x44a   :  { %2929 = vrot.lane.b32.xlu2 %v2817_v61, %s4075_s22  ;;  %v3263_v61 = vpack.c.b16 %v3258_v19, %v3258_v19 }
 0x44b   :  { %2975 = vrot.lane.b32.xlu1 %v2822_v18, %s4077_s21  ;;  %v2830_v18 = vmax.f32 %v2735_v48, 0.0 }
 0x44c   :  { %2931 = vrot.lane.b32.xlu0 %v6248_v11, %s4075_s22  ;;  %v1510_v0 = vpop.permute.xlu2 %1509  ;;  %v2832_v11 = vmax.f32 %v2740_v63, 0.0  ;;  %v3286_v55 = vsel %vm3284_vm13, %v3263_v61, 0  ;;  %v4037_v63 = vld [vmem:[%s6749_s3 + $0x18] sm:$0xff] }
 0x44d   :  { %v2394_v1 = vpop.permute.xlu1 %2393  ;;  %3291 = vmatpush.bf16.msrb.mxu1 %v3286_v55 }
 0x44e   :  { %v2392_v2 = vpop.permute.xlu0 %2391  ;;  %2496 = vst.msk [vmem:[#allocation2 + $0x168] sm:$0xff] %vm2450_vm9, %v2394_v1 }
 0x44f   :  { %2495 = vst.msk [vmem:[#allocation2 + $0x160] sm:$0xff] %vm2450_vm9, %v2392_v2 }
 0x451   :  { %3292 = vmatpush.bf16.msrb.mxu1 %v4037_v63 }
 0x452   :  { %2977 = vrot.lane.b32.xlu2 %v2832_v11, %s4077_s21  ;;  %v4036_v11 = vld [vmem:[%s6749_s3 + $0x10] sm:$0xff] }
 0x453   :  { %3023 = vrot.lane.b32.xlu1 %v2833_v43, %s4078_s27 }
 0x454   :  { %3021 = vrot.lane.b32.xlu0 %v2823_v5, %s4078_s27  ;;  %v2100_v15 = vpop.permute.xlu2 %2099 }
 0x455   :  { %v2080_v10 = vpop.permute.xlu1 %2079  ;;  %v2545_v51 = vld [vmem:[#allocation2 + $0x168] sm:$0xff]  ;;  %3293 = vmatpush.bf16.msrb.mxu1 %v4036_v11 }
 0x456   :  { %v1786_v42 = vpop.permute.xlu0 %1785  ;;  %2191 = vst.msk [vmem:[#allocation2 + $0x120] sm:$0xff] %vm2154_vm8, %v2080_v10  ;;  %v2544_v62 = vld [vmem:[#allocation2 + $0x160] sm:$0xff] }
 0x457   :  { %1896 = vst.msk [vmem:[#allocation2 + $0x128] sm:$0xff] %vm1858_vm7, %v1786_v42  ;;  %v2571_v28 = vpack.c.bf16 %v2545_v51, %v2544_v62  ;;  %v4034_v42 = vld [vmem:[%s6749_s3] sm:$0xff]  ;;  %v6522_v62 = vadd.f32 %v6357_v7, %v6432_v57 }
 0x458   :  { %2192 = vst.msk [vmem:[#allocation2 + $0x128] sm:$0xff] %vm2154_vm8, %v2082_v37 }
 0x459   :  { %3999 = vmatmul.msk.bf16.gmra.mxu3 %vm2598_vm10, %v2571_v28  ;;  %3294 = vmatpush.bf16.msrb.mxu1 %v4035_v6 }
 0x45a   :  { %3061 = vrot.lane.b32.xlu2 %v2824_v31, %s4080_s0 }
 0x45b   :  { %3103 = vrot.lane.b32.xlu1 %v6391_v54, %s4082_s19 }
 0x45c   :  { %3063 = vrot.lane.b32.xlu0 %v2834_v30, %s4080_s0  ;;  %v2398_v26 = vpop.permute.xlu2 %2397 }
 0x45d   :  { %v2378_v14 = vpop.permute.xlu1 %2377  ;;  %3295 = vmatpush.bf16.msrb.mxu1 %v4034_v42 }
 0x45e   :  { %v2376_v46 = vpop.permute.xlu0 %2375  ;;  %2488 = vst.msk [vmem:[#allocation2 + $0x128] sm:$0xff] %vm2450_vm9, %v2378_v14 }
 0x45f   :  { %2487 = vst.msk [vmem:[#allocation2 + $0x120] sm:$0xff] %vm2450_vm9, %v2376_v46 }
 0x462   :  { %3105 = vrot.lane.b32.xlu2 %v2839_v13, %s4082_s19 }
 0x463   :  { %3145 = vrot.lane.b32.xlu1 %v2840_v21, %s4081_s18 }
 0x464   :  { %3143 = vrot.lane.b32.xlu0 %v2830_v18, %s4081_s18  ;;  %v1808_v59 = vpop.permute.xlu2 %1807 }
 0x465   :  { %v2767_v56 = vpop.f32.mrf.mxu2  ;;  %v1508_v22 = vpop.permute.xlu1 %1507  ;;  %v2537_v23 = vld [vmem:[#allocation2 + $0x128] sm:$0xff] }
 0x466   :  { %v2768_v16 = vadd.f32 %v6357_v7, %v2767_v56  ;;  %1609 = vst.msk [vmem:[#allocation2 + $0x170] sm:$0xff] %vm1562_vm5, %v1508_v22  ;;  %v1214_v44 = vpop.permute.xlu0 %1213  ;;  %v2536_v39 = vld [vmem:[#allocation2 + $0x120] sm:$0xff] }
 0x467   :  { %1314 = vst.msk [vmem:[#allocation2 + $0x178] sm:$0xff] %vm1266_vm4, %v1214_v44  ;;  %v2567_v13 = vpack.c.bf16 %v2537_v23, %v2536_v39 }
 0x468   :  { %v6456_v3 = vmax.f32 %v2768_v16, 0.0  ;;  %1610 = vst.msk [vmem:[#allocation2 + $0x178] sm:$0xff] %vm1562_vm5, %v1510_v0 }
 0x469   :  { %3995 = vmatmul.msk.bf16.gmra.mxu2 %vm2598_vm10, %v2567_v13 }
 0x46a   :  { %2869 = vst.msk [vmem:[#allocation3 + $0x40] sm:$0xff] %vm2860_vm11, %v6456_v3  ;;  %3181 = vrot.lane.b32.xlu2 %v2831_v27, %s4083_s2 }
 0x46b   :  { %2887 = vrot.lane.b32.xlu1 %v2828_v33, %s4073_s30 }
 0x46c   :  { %3183 = vrot.lane.b32.xlu0 %v6313_v4, %s4083_s2  ;;  %v2880_v20 = vpop.permute.xlu2 %2879 }
 0x46d   :  { %v1806_v29 = vpop.permute.xlu1 %1805  ;;  %2907 = vst.msk [vmem:[#allocation3] sm:$0xff] %vm2906_vm12, %v2880_v20  ;;  %v6518_v51 = vpop.f32.mrf.mxu2 }
 0x46e   :  { %1906 = vst.msk [vmem:[#allocation2 + $0x178] sm:$0xff] %vm1858_vm7, %v1806_v29  ;;  %v1804_v24 = vpop.permute.xlu0 %1803 }
 0x46f   :  { %1905 = vst.msk [vmem:[#allocation2 + $0x170] sm:$0xff] %vm1858_vm7, %v1804_v24 }
 0x470   :  { %2201 = vst.msk [vmem:[#allocation2 + $0x170] sm:$0xff] %vm2154_vm8, %v2100_v15  ;;  %v2782_v15 = vpop.f32.mrf.mxu3 }
 0x471   :  { %v2783_v39 = vadd.f32 %v6357_v7, %v2782_v15 }
 0x472   :  { %2889 = vrot.lane.b32.xlu2 %v2830_v18, %s4073_s30 }
 0x473   :  { %2935 = vrot.lane.b32.xlu1 %v2831_v27, %s4075_s22 }
 0x474   :  { %2933 = vrot.lane.b32.xlu0 %v6391_v54, %s4075_s22  ;;  %v2928_v37 = vpop.permute.xlu2 %2927 }
 0x475   :  { %v2396_v45 = vpop.permute.xlu1 %2395 }
 0x476   :  { %2497 = vst.msk [vmem:[#allocation2 + $0x170] sm:$0xff] %vm2450_vm9, %v2396_v45  ;;  %v2102_v34 = vpop.permute.xlu0 %2101  ;;  %v2747_v17 = vpop.f32.mrf.mxu1 }
 0x477   :  { %2202 = vst.msk [vmem:[#allocation2 + $0x178] sm:$0xff] %vm2154_vm8, %v2102_v34  ;;  %v2748_v33 = vadd.f32 %v6357_v7, %v2747_v17  ;;  %v2849_v34 = vmax.f32 %v2783_v39, 0.0 }
 0x478   :  { %2498 = vst.msk [vmem:[#allocation2 + $0x178] sm:$0xff] %vm2450_vm9, %v2398_v26  ;;  %v6525_v25 = vpop.f32.mrf.mxu3  ;;  %v2842_v26 = vmax.f32 %v6522_v62, 0.0 }
 0x479   :  { %v2835_v38 = vmax.f32 %v2748_v33, 0.0 }
 0x47a   :  { %2979 = vrot.lane.b32.xlu2 %v2834_v30, %s4077_s21 }
 0x47b   :  { %3025 = vrot.lane.b32.xlu1 %v2835_v38, %s4078_s27 }
 0x47c   :  { %v3018_v58 = vpop.permute.xlu2 %3017 }
 0x47d   :  { %v1512_v41 = vpop.permute.xlu1 %1511  ;;  %v2546_v35 = vld [vmem:[#allocation2 + $0x170] sm:$0xff] }
 0x47e   :  { %v1216_v50 = vpop.permute.xlu0 %1215  ;;  %v2749_v49 = vpop.f32.mrf.mxu1 }
 0x47f   :  { %1315 = vst.msk [vmem:[#allocation2 + $0x180] sm:$0xff] %vm1266_vm4, %v1216_v50  ;;  %v2750_v52 = vadd.f32 %v6357_v7, %v2749_v49  ;;  %v2547_v53 = vld [vmem:[#allocation2 + $0x178] sm:$0xff]  ;;  %vm3204_vm4 = vcmask 589312  }
 0x480   :  { %1611 = vst.msk [vmem:[#allocation2 + $0x180] sm:$0xff] %vm1562_vm5, %v1512_v41  ;;  %v2572_v54 = vpack.c.bf16 %v2547_v53, %v2546_v35  ;;  %v6535_v18 = vpop.f32.mrf.mxu3  ;;  %vm3268_vm5 = vcmask 588800  }
 0x481   :  { %1907 = vst.msk [vmem:[#allocation2 + $0x180] sm:$0xff] %vm1858_vm7, %v1808_v59  ;;  %v2836_v12 = vmax.f32 %v2750_v52, 0.0 }
 0x482   :  { %4000 = vmatmul.msk.bf16.gmra.mxu3 %vm2598_vm10, %v2572_v54 }
 0x483   :  { %2981 = vrot.lane.b32.xlu0 %v2836_v12, %s4077_s21 }
 0x484   :  { %v3060_v1 = vpop.permute.xlu2 %3059 }
 0x485   :  { %v2400_v32 = vpop.permute.xlu1 %2399 }
 0x486   :  { %v2104_v0 = vpop.permute.xlu0 %2103 }
 0x487   :  { %2203 = vst.msk [vmem:[#allocation2 + $0x180] sm:$0xff] %vm2154_vm8, %v2104_v0 }
 0x488   :  { %2499 = vst.msk [vmem:[#allocation2 + $0x180] sm:$0xff] %vm2450_vm9, %v2400_v32  ;;  %v6543_v44 = vpop.f32.mrf.mxu3 }
 0x48b   :  { %3065 = vrot.lane.b32.xlu0 %v2836_v12, %s4080_s0 }
 0x48c   :  { %v3140_v8 = vpop.permute.xlu2 %3139 }
 0x48d   :  { %v2926_v2 = vpop.permute.xlu1 %2925 }
 0x48e   :  { %v2882_v40 = vpop.permute.xlu0 %2881  ;;  %2953 = vst.msk [vmem:[#allocation3] sm:$0xff] %vm2952_vm14, %v2926_v2 }
 0x48f   :  { %2908 = vst.msk [vmem:[#allocation3 + $0x8] sm:$0xff] %vm2906_vm12, %v2882_v40  ;;  %v2548_v5 = vld [vmem:[#allocation2 + $0x180] sm:$0xff] }
 0x490   :  { %2954 = vst.msk [vmem:[#allocation3 + $0x8] sm:$0xff] %vm2952_vm14, %v2928_v37  ;;  %v2573_v43 = vpack.c.bf16 %v2548_v5, %v2548_v5 }
 0x492   :  { %4001 = vmatmul.msk.bf16.gmra.mxu3 %vm2598_vm10, %v2573_v43 }
 0x493   :  { %3109 = vrot.lane.b32.xlu0 %v6456_v3, %s4082_s19  ;;  %v2792_v33 = vpop.f32.mrf.mxu3 }
 0x494   :  { %v2793_v41 = vadd.f32 %v6357_v7, %v2792_v33 }
 0x495   :  { %v2974_v9 = vpop.permute.xlu1 %2973 }
 0x496   :  { %v2972_v10 = vpop.permute.xlu0 %2971  ;;  %3000 = vst.msk [vmem:[#allocation3 + $0x8] sm:$0xff] %vm2998_vm15, %v2974_v9  ;;  %v2853_v54 = vmax.f32 %v2793_v41, 0.0  ;;  %v3339_v41 = vld [vmem:[%s6751_s5] sm:$0xf] }
 0x497   :  { %2999 = vst.msk [vmem:[#allocation3] sm:$0xff] %vm2998_vm15, %v2972_v10 }
 0x498   :  { %3045 = vst.msk [vmem:[#allocation3] sm:$0xff] %vm3044_vm0, %v3018_v58  ;;  %v2770_v58 = vadd.f32 %v6357_v7, %v6518_v51 }
 0x49a   :  { %v2844_v61 = vmax.f32 %v2770_v58, 0.0 }
 0x49b   :  { %3185 = vrot.lane.b32.xlu0 %v6456_v3, %s4083_s2  ;;  %v2794_v40 = vpop.f32.mrf.mxu3 }
 0x49c   :  { %v3180_v28 = vpop.permute.xlu2 %3179 }
 0x49d   :  { %v3058_v31 = vpop.permute.xlu1 %3057 }
 0x49e   :  { %v3020_v30 = vpop.permute.xlu0 %3019  ;;  %3085 = vst.msk [vmem:[#allocation3] sm:$0xff] %vm3084_vm1, %v3058_v31 }
 0x49f   :  { %3046 = vst.msk [vmem:[#allocation3 + $0x8] sm:$0xff] %vm3044_vm0, %v3020_v30 }
 0x4a0   :  { %3086 = vst.msk [vmem:[#allocation3 + $0x8] sm:$0xff] %vm3084_vm1, %v3060_v1 }
 0x4a3   :  { %2893 = vrot.lane.b32.xlu0 %v2842_v26, %s4073_s30 }
 0x4a4   :  { %v2930_v48 = vpop.permute.xlu2 %2929 }
 0x4a5   :  { %v6533_v57 = vpop.f32.mrf.mxu2  ;;  %v3102_v46 = vpop.permute.xlu1 %3101 }
 0x4a6   :  { %v3100_v14 = vpop.permute.xlu0 %3099  ;;  %3128 = vst.msk [vmem:[#allocation3 + $0x8] sm:$0xff] %vm3126_vm2, %v3102_v46  ;;  %v6575_v0 = vadd.f32 %v6357_v7, %v6533_v57  ;;  %v2785_v57 = vadd.f32 %v6357_v7, %v6525_v25 }
 0x4a7   :  { %3127 = vst.msk [vmem:[#allocation3] sm:$0xff] %vm3126_vm2, %v3100_v14 }
 0x4a8   :  { %3167 = vst.msk [vmem:[#allocation3] sm:$0xff] %vm3166_vm3, %v3140_v8  ;;  %v2845_v2 = vmax.f32 %v6575_v0, 0.0 }
 0x4ac   :  { %v2978_v47 = vpop.permute.xlu2 %2977 }
 0x4ad   :  { %v2774_v59 = vpop.f32.mrf.mxu2  ;;  %v3178_v23 = vpop.permute.xlu1 %3177 }
 0x4ae   :  { %v2775_v56 = vadd.f32 %v6357_v7, %v2774_v59  ;;  %v3142_v22 = vpop.permute.xlu0 %3141  ;;  %3205 = vst.msk [vmem:[#allocation3] sm:$0xff] %vm3204_vm4, %v3178_v23 }
 0x4af   :  { %3168 = vst.msk [vmem:[#allocation3 + $0x8] sm:$0xff] %vm3166_vm3, %v3142_v22 }
 0x4b0   :  { %v2846_v16 = vmax.f32 %v2775_v56, 0.0  ;;  %3206 = vst.msk [vmem:[#allocation3 + $0x8] sm:$0xff] %vm3204_vm4, %v3180_v28  ;;  %v2850_v56 = vmax.f32 %v2785_v57, 0.0 }
 0x4b2   :  { %2983 = vrot.lane.b32.xlu0 %v2846_v16, %s4077_s21 }
 0x4b4   :  { %v3062_v13 = vpop.permute.xlu2 %3061 }
 0x4b5   :  { %v2886_v24 = vpop.permute.xlu1 %2885  ;;  %v3214_v17 = vld [vmem:[#allocation3] sm:$0xff] }
 0x4b6   :  { %v2752_v27 = vpop.f32.mrf.mxu1  ;;  %v2884_v20 = vpop.permute.xlu0 %2883  ;;  %2910 = vst.msk [vmem:[#allocation3 + $0x18] sm:$0xff] %vm2906_vm12, %v2886_v24 }
 0x4b7   :  { %v2753_v29 = vadd.f32 %v6357_v7, %v2752_v27  ;;  %2909 = vst.msk [vmem:[#allocation3 + $0x10] sm:$0xff] %vm2906_vm12, %v2884_v20  ;;  %v3215_v45 = vld [vmem:[#allocation3 + $0x8] sm:$0xff] }
 0x4b8   :  { %2955 = vst.msk [vmem:[#allocation3 + $0x10] sm:$0xff] %vm2952_vm14, %v2930_v48  ;;  %v3223_v38 = vpack.c.bf16 %v3215_v45, %v3214_v17 }
 0x4b9   :  { %v2837_v37 = vmax.f32 %v2753_v29, 0.0 }
 0x4ba   :  { %3031 = vrot.lane.b32.xlu0 %v2849_v34, %s4078_s27  ;;  %4018 = vmatmul.msk.bf16.vlgmr.msrb.gmra.mxu1 %vm3268_vm5, %v3223_v38  ;;  %v2790_v38 = vadd.f32 %v6357_v7, %v6543_v44  ;;  %v3340_v44 = vld [vmem:[%s6751_s5 + $0x4] sm:$0xf] }
 0x4bb   :  { %3027 = vrot.lane.b32.xlu2 %v2837_v37, %s4078_s27  ;;  %v3352_v58 = vsel %vm3284_vm13, %v3340_v44, 0 }
 0x4bc   :  { %v3106_v35 = vpop.permute.xlu2 %3105  ;;  %3361 = vmatpush.bf16.msrb.mxu2 %v3352_v58 }
 0x4bd   :  { %v2976_v53 = vpop.permute.xlu1 %2975 }
 0x4be   :  { %v2754_v50 = vpop.f32.mrf.mxu1  ;;  %v2932_v49 = vpop.permute.xlu0 %2931  ;;  %3001 = vst.msk [vmem:[#allocation3 + $0x10] sm:$0xff] %vm2998_vm15, %v2976_v53 }
 0x4bf   :  { %v2755_v52 = vadd.f32 %v6357_v7, %v2754_v50  ;;  %2956 = vst.msk [vmem:[#allocation3 + $0x18] sm:$0xff] %vm2952_vm14, %v2932_v49  ;;  %v3371_v50 = vsel %vm3284_vm13, %v3339_v41, 0 }
 0x4c0   :  { %3002 = vst.msk [vmem:[#allocation3 + $0x18] sm:$0xff] %vm2998_vm15, %v2978_v47  ;;  %3380 = vmatpush.bf16.msrb.mxu3 %v3371_v50 }
 0x4c1   :  { %v2838_v12 = vmax.f32 %v2755_v52, 0.0  ;;  %v2852_v52 = vmax.f32 %v2790_v38, 0.0 }
 0x4c2   :  { %3111 = vrot.lane.b32.xlu0 %v2853_v54, %s4082_s19 }
 0x4c3   :  { %3067 = vrot.lane.b32.xlu1 %v2838_v12, %s4080_s0  ;;  %3107 = vrot.lane.b32.xlu2 %v6313_v4, %s4082_s19 }
 0x4c4   :  { %v3182_v60 = vpop.permute.xlu2 %3181 }
 0x4c5   :  { %v3024_v32 = vpop.permute.xlu1 %3023 }
 0x4c6   :  { %v3022_v19 = vpop.permute.xlu0 %3021  ;;  %3048 = vst.msk [vmem:[#allocation3 + $0x18] sm:$0xff] %vm3044_vm0, %v3024_v32 }
 0x4c7   :  { %3047 = vst.msk [vmem:[#allocation3 + $0x10] sm:$0xff] %vm3044_vm0, %v3022_v19 }
 0x4c8   :  { %3087 = vst.msk [vmem:[#allocation3 + $0x10] sm:$0xff] %vm3084_vm1, %v3062_v13 }
 0x4cb   :  { %3147 = vrot.lane.b32.xlu1 %v2842_v26, %s4081_s18  ;;  %3149 = vrot.lane.b32.xlu2 %v2844_v61, %s4081_s18  ;;  %v2788_v26 = vadd.f32 %v6357_v7, %v6535_v18  ;;  %v2795_v18 = vadd.f32 %v6357_v7, %v2794_v40 }
 0x4cc   :  { %v2890_v55 = vpop.permute.xlu2 %2889 }
 0x4cd   :  { %2912 = vst.msk [vmem:[#allocation3 + $0x28] sm:$0xff] %vm2906_vm12, %v2890_v55  ;;  %v3104_v1 = vpop.permute.xlu1 %3103  ;;  %v2851_v59 = vmax.f32 %v2788_v26, 0.0  ;;  %v2854_v25 = vmax.f32 %v2795_v18, 0.0 }
 0x4ce   :  { %v3064_v63 = vpop.permute.xlu0 %3063  ;;  %3129 = vst.msk [vmem:[#allocation3 + $0x10] sm:$0xff] %vm3126_vm2, %v3104_v1 }
 0x4cf   :  { %3088 = vst.msk [vmem:[#allocation3 + $0x18] sm:$0xff] %vm3084_vm1, %v3064_v63 }
 0x4d0   :  { %3130 = vst.msk [vmem:[#allocation3 + $0x18] sm:$0xff] %vm3126_vm2, %v3106_v35 }
 0x4d3   :  { %3187 = vrot.lane.b32.xlu1 %v2845_v2, %s4083_s2  ;;  %2891 = vrot.lane.b32.xlu2 %v2840_v21, %s4073_s30 }
 0x4d4   :  { %v2980_v42 = vpop.permute.xlu2 %2979 }
 0x4d5   :  { %v3146_v11 = vpop.permute.xlu1 %3145 }
 0x4d6   :  { %v3144_v5 = vpop.permute.xlu0 %3143  ;;  %3170 = vst.msk [vmem:[#allocation3 + $0x18] sm:$0xff] %vm3166_vm3, %v3146_v11 }
 0x4d7   :  { %3169 = vst.msk [vmem:[#allocation3 + $0x10] sm:$0xff] %vm3166_vm3, %v3144_v5 }
 0x4d8   :  { %3207 = vst.msk [vmem:[#allocation3 + $0x10] sm:$0xff] %vm3204_vm4, %v3182_v60 }
 0x4db   :  { %2937 = vrot.lane.b32.xlu1 %v6313_v4, %s4075_s22  ;;  %2939 = vrot.lane.b32.xlu2 %v6456_v3, %s4075_s22 }
 0x4dc   :  { %v2797_v43 = vpop.f32.mrf.mxu3 }
 0x4dd   :  { %v2888_v36 = vpop.permute.xlu1 %2887  ;;  %v2798_v23 = vadd.f32 %v6357_v7, %v2797_v43 }
 0x4de   :  { %v3184_v6 = vpop.permute.xlu0 %3183  ;;  %2911 = vst.msk [vmem:[#allocation3 + $0x20] sm:$0xff] %vm2906_vm12, %v2888_v36 }
 0x4df   :  { %3208 = vst.msk [vmem:[#allocation3 + $0x18] sm:$0xff] %vm3204_vm4, %v3184_v6  ;;  %v3216_v9 = vld [vmem:[#allocation3 + $0x10] sm:$0xff]  ;;  %v2855_v27 = vmax.f32 %v2798_v23, 0.0 }
 0x4e4   :  { %v2799_v21 = vpop.f32.mrf.mxu3 }
 0x4e5   :  { %v2800_v15 = vadd.f32 %v6357_v7, %v2799_v21  ;;  %v2936_v4 = vpop.permute.xlu1 %2935  ;;  %v3341_v21 = vld [vmem:[%s6751_s5 + $0x8] sm:$0xf] }
 0x4e6   :  { %v2934_v8 = vpop.permute.xlu0 %2933  ;;  %v3217_v10 = vld [vmem:[#allocation3 + $0x18] sm:$0xff]  ;;  %2958 = vst.msk [vmem:[#allocation3 + $0x28] sm:$0xff] %vm2952_vm14, %v2936_v4 }
 0x4e7   :  { %v2856_v51 = vmax.f32 %v2800_v15, 0.0  ;;  %2957 = vst.msk [vmem:[#allocation3 + $0x20] sm:$0xff] %vm2952_vm14, %v2934_v8  ;;  %v3224_v62 = vpack.c.bf16 %v3217_v10, %v3216_v9  ;;  %v3390_v15 = vsel %vm3284_vm13, %v3341_v21, 0 }
 0x4e8   :  { %3003 = vst.msk [vmem:[#allocation3 + $0x20] sm:$0xff] %vm2998_vm15, %v2980_v42  ;;  %3399 = vmatpush.bf16.msra.mxu2 %v3390_v15 }
 0x4e9   :  { %3153 = vrot.lane.b32.xlu0 %v2856_v51, %s4081_s18  ;;  %4019 = vmatmul.msk.bf16.gmra.mxu1 %vm3268_vm5, %v3224_v62  ;;  %v3342_v62 = vld [vmem:[%s6751_s5 + $0xc] sm:$0xf] }
 0x4ec   :  { %v2777_v3 = vpop.f32.mrf.mxu2 }
 0x4ed   :  { %v2778_v28 = vadd.f32 %v6357_v7, %v2777_v3  ;;  %v3026_v30 = vpop.permute.xlu1 %3025  ;;  %v3410_v3 = vsel %vm3284_vm13, %v3342_v62, 0 }
 0x4ee   :  { %3049 = vst.msk [vmem:[#allocation3 + $0x20] sm:$0xff] %vm3044_vm0, %v3026_v30  ;;  %3419 = vmatpush.bf16.msra.mxu3 %v3410_v3 }
 0x4ef   :  { %v2847_v31 = vmax.f32 %v2778_v28, 0.0 }
 0x4f1   :  { %2895 = vrot.lane.b32.xlu0 %v2844_v61, %s4073_s30  ;;  %3029 = vrot.lane.b32.xlu2 %v2847_v31, %s4078_s27 }
 0x4f4   :  { %v2779_v48 = vpop.f32.mrf.mxu2 }
 0x4f5   :  { %v2780_v14 = vadd.f32 %v6357_v7, %v2779_v48  ;;  %v2982_v46 = vpop.permute.xlu0 %2981 }
 0x4f6   :  { %3004 = vst.msk [vmem:[#allocation3 + $0x28] sm:$0xff] %vm2998_vm15, %v2982_v46 }
 0x4f7   :  { %v2848_v47 = vmax.f32 %v2780_v14, 0.0 }
 0x4f9   :  { %3033 = vrot.lane.b32.xlu0 %v2851_v59, %s4078_s27  ;;  %2985 = vrot.lane.b32.xlu1 %v2848_v47, %s4077_s21 }
 0x4fa   :  { %3071 = vrot.lane.b32.xlu2 %v2850_v56, %s4080_s0 }
 0x4fd   :  { %v3066_v22 = vpop.permute.xlu0 %3065 }
 0x4fe   :  { %3089 = vst.msk [vmem:[#allocation3 + $0x20] sm:$0xff] %vm3084_vm1, %v3066_v22 }
 0x501   :  { %3069 = vrot.lane.b32.xlu1 %v2848_v47, %s4080_s0 }
 0x502   :  { %3151 = vrot.lane.b32.xlu2 %v2854_v25, %s4081_s18 }
 0x505   :  { %v2802_v16 = vpop.f32.mrf.mxu3  ;;  %v3110_v39 = vpop.permute.xlu0 %3109 }
 0x506   :  { %v2803_v13 = vadd.f32 %v6357_v7, %v2802_v16 }
 0x508   :  { %v2857_v20 = vmax.f32 %v2803_v13, 0.0 }
 0x509   :  { %3113 = vrot.lane.b32.xlu1 %v2855_v27, %s4082_s19 }
 0x50a   :  { %3191 = vrot.lane.b32.xlu2 %v2857_v20, %s4083_s2 }
 0x50d   :  { %v3186_v29 = vpop.permute.xlu0 %3185  ;;  %v2804_v24 = vpop.f32.mrf.mxu3 }
 0x50e   :  { %v2805_v45 = vadd.f32 %v6357_v7, %v2804_v24 }
 0x510   :  { %v2858_v34 = vmax.f32 %v2805_v45, 0.0 }
 0x511   :  { %3189 = vrot.lane.b32.xlu1 %v2855_v27, %s4083_s2 }
 0x512   :  { %2987 = vrot.lane.b32.xlu2 %v2850_v56, %s4077_s21  ;;  %3155 = vrot.lane.b32.xlu0 %v2858_v34, %s4081_s18 }
 0x515   :  { %v2894_v17 = vpop.permute.xlu0 %2893  ;;  %v3028_v33 = vpop.permute.xlu2 %3027 }
 0x516   :  { %2914 = vst.msk [vmem:[#allocation3 + $0x38] sm:$0xff] %vm2906_vm12, %v2894_v17  ;;  %v2807_v37 = vpop.f32.mrf.mxu3 }
 0x517   :  { %3050 = vst.msk [vmem:[#allocation3 + $0x28] sm:$0xff] %vm3044_vm0, %v3028_v33  ;;  %v2808_v53 = vadd.f32 %v6357_v7, %v2807_v37  ;;  %v6652_v7 = vld [vmem:[%s6750_s4] ss:$0 sm:$0xff] }
 0x519   :  { %2941 = vrot.lane.b32.xlu1 %v2845_v2, %s4075_s22  ;;  %v2859_v54 = vmax.f32 %v2808_v53, 0.0 }
 0x51a   :  { %3115 = vrot.lane.b32.xlu2 %v2857_v20, %s4082_s19 }
 0x51d   :  { %v3108_v35 = vpop.permute.xlu2 %3107 }
 0x51e   :  { %3131 = vst.msk [vmem:[#allocation3 + $0x20] sm:$0xff] %vm3126_vm2, %v3108_v35  ;;  %v2809_v49 = vpop.f32.mrf.mxu3  ;;  %v3343_v35 = vld [vmem:[%s6751_s5 + $0x10] sm:$0xf] }
 0x51f   :  { %v3430_v50 = vsel %vm3284_vm13, %v3343_v35, 0  ;;  %v3344_v49 = vld [vmem:[%s6751_s5 + $0x14] sm:$0xf] }
 0x521   :  { %3073 = vrot.lane.b32.xlu1 %v2852_v52, %s4080_s0  ;;  %v3450_v52 = vsel %vm3284_vm13, %v3344_v49, 0 }
 0x524   :  { %v2984_v2 = vpop.permute.xlu0 %2983 }
 0x525   :  { %v3150_v12 = vpop.permute.xlu2 %3149 }
 0x529   :  { %3193 = vrot.lane.b32.xlu1 %v2859_v54, %s4083_s2 }
 0x52c   :  { %v3032_v36 = vpop.permute.xlu0 %3031 }
 0x52d   :  { %v2892_v60 = vpop.permute.xlu2 %2891 }
 0x52e   :  { %2913 = vst.msk [vmem:[#allocation3 + $0x30] sm:$0xff] %vm2906_vm12, %v2892_v60 }
 0x534   :  { %v3112_v4 = vpop.permute.xlu0 %3111 }
 0x535   :  { %v3068_v19 = vpop.permute.xlu1 %3067  ;;  %v2940_v32 = vpop.permute.xlu2 %2939 }
 0x536   :  { %3090 = vst.msk [vmem:[#allocation3 + $0x28] sm:$0xff] %vm3084_vm1, %v3068_v19 }
 0x537   :  { %3132 = vst.msk [vmem:[#allocation3 + $0x28] sm:$0xff] %vm3126_vm2, %v3110_v39  ;;  %v3297_v61 = vpop.f32.mrf.mxu1 }
 0x538   :  { %3172 = vst.msk [vmem:[#allocation3 + $0x28] sm:$0xff] %vm3166_vm3, %v3150_v12  ;;  %v3298_v0 = vadd.f32 %v6652_v7, %v3297_v61 }
 0x539   :  { %2960 = vst.msk [vmem:[#allocation3 + $0x38] sm:$0xff] %vm2952_vm14, %v2940_v32 }
 0x53a   :  { %v3321_v55 = vmax.f32 %v3298_v0, 0.0 }
 0x53c   :  { %v3330_v63 = vpack.c.bf16 %v3321_v55, %v3321_v55 }
 0x53d   :  { %v3148_v1 = vpop.permute.xlu1 %3147 }
 0x53e   :  { %3171 = vst.msk [vmem:[#allocation3 + $0x20] sm:$0xff] %vm3166_vm3, %v3148_v1  ;;  %4024 = vmatmul.msk.bf16.vlgmr.msrb.gmra.mxu3 %vm2860_vm11, %v3330_v63 }
 0x53f   :  { %3209 = vst.msk [vmem:[#allocation3 + $0x20] sm:$0xff] %vm3204_vm4, %v3186_v29  ;;  %v3299_v40 = vpop.f32.mrf.mxu1  ;;  %3459 = vmatpush.bf16.msrb.mxu3 %v3450_v52 }
 0x540   :  { %v3300_v5 = vadd.f32 %v6652_v7, %v3299_v40 }
 0x542   :  { %v3322_v11 = vmax.f32 %v3300_v5, 0.0 }
 0x544   :  { %v3331_v43 = vpack.c.bf16 %v3322_v11, %v3322_v11 }
 0x545   :  { %v3188_v6 = vpop.permute.xlu1 %3187 }
 0x546   :  { %3210 = vst.msk [vmem:[#allocation3 + $0x28] sm:$0xff] %vm3204_vm4, %v3188_v6  ;;  %4023 = vmatmul.msk.bf16.vlgmr.msrb.gmra.mxu2 %vm2860_vm11, %v3331_v43  ;;  %v3218_v9 = vld [vmem:[#allocation3 + $0x20] sm:$0xff] }
 0x547   :  { %3439 = vmatpush.bf16.msrb.mxu2 %v3430_v50 }
 0x54b   :  { %v3030_v51 = vpop.permute.xlu2 %3029 }
 0x54d   :  { %v2938_v8 = vpop.permute.xlu1 %2937  ;;  %v3219_v10 = vld [vmem:[#allocation3 + $0x28] sm:$0xff] }
 0x54e   :  { %2959 = vst.msk [vmem:[#allocation3 + $0x30] sm:$0xff] %vm2952_vm14, %v2938_v8  ;;  %v3225_v42 = vpack.c.bf16 %v3219_v10, %v3218_v9  ;;  %v3347_v8 = vld [vmem:[%s6751_s5 + $0x20] sm:$0xf] }
 0x54f   :  { %3005 = vst.msk [vmem:[#allocation3 + $0x30] sm:$0xff] %vm2998_vm15, %v2984_v2  ;;  %v3345_v2 = vld [vmem:[%s6751_s5 + $0x18] sm:$0xf]  ;;  %v3510_v9 = vsel %vm3284_vm13, %v3347_v8, 0 }
 0x550   :  { %3051 = vst.msk [vmem:[#allocation3 + $0x30] sm:$0xff] %vm3044_vm0, %v3030_v51  ;;  %4020 = vmatmul.msk.bf16.gmra.mxu1 %vm3268_vm5, %v3225_v42  ;;  %v3470_v40 = vsel %vm3284_vm13, %v3345_v2, 0  ;;  %v4063_v2 = vld [vmem:[%s6753_s7] ss:$0 sm:$0xff] }
 0x554   :  { %v3072_v57 = vpop.permute.xlu2 %3071 }
 0x55b   :  { %v3154_v28 = vpop.permute.xlu0 %3153 }
 0x55c   :  { %v3152_v18 = vpop.permute.xlu2 %3151 }
 0x563   :  { %v2896_v31 = vpop.permute.xlu0 %2895 }
 0x564   :  { %2915 = vst.msk [vmem:[#allocation3 + $0x40] sm:$0xff] %vm2906_vm12, %v2896_v31  ;;  %v3192_v16 = vpop.permute.xlu2 %3191 }
 0x566   :  { %v3302_v30 = vpop.f32.mrf.mxu1 }
 0x567   :  { %v3303_v26 = vadd.f32 %v6652_v7, %v3302_v30 }
 0x569   :  { %v3323_v48 = vmax.f32 %v3303_v26, 0.0 }
 0x56b   :  { %v3332_v14 = vpack.c.bf16 %v3323_v48, %v3323_v48  ;;  %v2986_v46 = vpop.permute.xlu1 %2985  ;;  %v3034_v45 = vpop.permute.xlu0 %3033 }
 0x56c   :  { %3006 = vst.msk [vmem:[#allocation3 + $0x38] sm:$0xff] %vm2998_vm15, %v2986_v46  ;;  %v2988_v13 = vpop.permute.xlu2 %2987 }
 0x56d   :  { %3052 = vst.msk [vmem:[#allocation3 + $0x38] sm:$0xff] %vm3044_vm0, %v3032_v36  ;;  %4025 = vmatmul.msk.bf16.vlgmr.msra.gmra.mxu2 %vm2860_vm11, %v3332_v14  ;;  %v3346_v36 = vld [vmem:[%s6751_s5 + $0x1c] sm:$0xf] }
 0x56e   :  { %3092 = vst.msk [vmem:[#allocation3 + $0x38] sm:$0xff] %vm3084_vm1, %v3072_v57  ;;  %v3304_v59 = vpop.f32.mrf.mxu1  ;;  %3479 = vmatpush.bf16.msra.mxu2 %v3470_v40  ;;  %v3490_v15 = vsel %vm3284_vm13, %v3346_v36, 0 }
 0x56f   :  { %v3305_v47 = vadd.f32 %v6652_v7, %v3304_v59 }
 0x571   :  { %v3324_v56 = vmax.f32 %v3305_v47, 0.0 }
 0x573   :  { %v3333_v22 = vpack.c.bf16 %v3324_v56, %v3324_v56  ;;  %v3070_v25 = vpop.permute.xlu1 %3069 }
 0x574   :  { %3091 = vst.msk [vmem:[#allocation3 + $0x30] sm:$0xff] %vm3084_vm1, %v3070_v25  ;;  %v3116_v17 = vpop.permute.xlu2 %3115 }
 0x575   :  { %3133 = vst.msk [vmem:[#allocation3 + $0x30] sm:$0xff] %vm3126_vm2, %v3112_v4  ;;  %4026 = vmatmul.msk.bf16.vlgmr.msra.gmra.mxu3 %vm2860_vm11, %v3333_v22 }
 0x576   :  { %3173 = vst.msk [vmem:[#allocation3 + $0x30] sm:$0xff] %vm3166_vm3, %v3152_v18  ;;  %3499 = vmatpush.bf16.msra.mxu3 %v3490_v15 }
 0x57b   :  { %v3114_v23 = vpop.permute.xlu1 %3113 }
 0x57c   :  { %3134 = vst.msk [vmem:[#allocation3 + $0x38] sm:$0xff] %vm3126_vm2, %v3114_v23 }
 0x57d   :  { %3174 = vst.msk [vmem:[#allocation3 + $0x38] sm:$0xff] %vm3166_vm3, %v3154_v28 }
 0x57e   :  { %3212 = vst.msk [vmem:[#allocation3 + $0x38] sm:$0xff] %vm3204_vm4, %v3192_v16 }
 0x583   :  { %v3190_v39 = vpop.permute.xlu1 %3189 }
 0x584   :  { %3211 = vst.msk [vmem:[#allocation3 + $0x30] sm:$0xff] %vm3204_vm4, %v3190_v39  ;;  %v3156_v33 = vpop.permute.xlu0 %3155 }
 0x585   :  { %v3221_v29 = vld [vmem:[#allocation3 + $0x38] sm:$0xff] }
 0x58b   :  { %v2942_v27 = vpop.permute.xlu1 %2941  ;;  %v3220_v20 = vld [vmem:[#allocation3 + $0x30] sm:$0xff] }
 0x58c   :  { %2961 = vst.msk [vmem:[#allocation3 + $0x40] sm:$0xff] %vm2952_vm14, %v2942_v27  ;;  %v3226_v24 = vpack.c.bf16 %v3221_v29, %v3220_v20 }
 0x58d   :  { %3007 = vst.msk [vmem:[#allocation3 + $0x40] sm:$0xff] %vm2998_vm15, %v2988_v13 }
 0x58e   :  { %3053 = vst.msk [vmem:[#allocation3 + $0x40] sm:$0xff] %vm3044_vm0, %v3034_v45  ;;  %4021 = vmatmul.msk.bf16.gmra.mxu1 %vm3268_vm5, %v3226_v24 }
 0x593   :  { %v3074_v34 = vpop.permute.xlu1 %3073 }
 0x594   :  { %3093 = vst.msk [vmem:[#allocation3 + $0x40] sm:$0xff] %vm3084_vm1, %v3074_v34 }
 0x595   :  { %3135 = vst.msk [vmem:[#allocation3 + $0x40] sm:$0xff] %vm3126_vm2, %v3116_v17 }
 0x596   :  { %3175 = vst.msk [vmem:[#allocation3 + $0x40] sm:$0xff] %vm3166_vm3, %v3156_v33  ;;  %v4084_v33 = vmov 32.0  }
 0x597   :  { %4065 = vrcp.f32 %v4084_v33 }
 0x59b   :  { %v3194_v37 = vpop.permute.xlu1 %3193 }
 0x59c   :  { %3213 = vst.msk [vmem:[#allocation3 + $0x40] sm:$0xff] %vm3204_vm4, %v3194_v37 }
 0x59d   :  { %v4066_v37 = vpop.eup %4065 }
 0x59e   :  { %vm3540_vm7 = vweird.f32 %v4066_v37 }
 0x5a3   :  { %v3222_v38 = vld [vmem:[#allocation3 + $0x40] sm:$0xff] }
 0x5a4   :  { %v3227_v41 = vpack.c.bf16 %v3222_v38, %v3222_v38  ;;  %v3536_v38 = vmul.f32 32.0, %v4066_v37 }
 0x5a6   :  { %4022 = vmatmul.msk.bf16.gmra.mxu1 %vm3268_vm5, %v3227_v41  ;;  %v3537_v41 = vsub.f32 1.0, %v3536_v38 }
 0x5a8   :  { %v3538_v35 = vmul.f32 %v4066_v37, %v3537_v41 }
 0x5aa   :  { %v3539_v50 = vadd.f32 %v4066_v37, %v3538_v35 }
 0x5ac   :  { %v3541_v49 = vsel %vm3540_vm7, %v4066_v37, %v3539_v50 }
 0x5c1   :  { %v3382_v53 = vpop.f32.mrf.mxu3 }
 0x5c9   :  { %v3363_v44 = vpop.f32.mrf.mxu2  ;;  %v3384_v54 = vpop.f32.mrf.mxu3 }
 0x5ca   :  { %v3383_v12 = vadd.f32 %v3382_v53, %v3363_v44 }
 0x5cd   :  { %v3307_v58 = vpop.f32.mrf.mxu1 }
 0x5ce   :  { %v3308_v60 = vadd.f32 %v6652_v7, %v3307_v58 }
 0x5d0   :  { %v3325_v19 = vmax.f32 %v3308_v60, 0.0 }
 0x5d1   :  { %v3365_v61 = vpop.f32.mrf.mxu2 }
 0x5d2   :  { %v3334_v32 = vpack.c.bf16 %v3325_v19, %v3325_v19 }
 0x5d4   :  { %4027 = vmatmul.msk.bf16.vlgmr.msrb.gmra.mxu2 %vm2860_vm11, %v3334_v32 }
 0x5d5   :  { %v3309_v0 = vpop.f32.mrf.mxu1  ;;  %3519 = vmatpush.bf16.msrb.mxu2 %v3510_v9 }
 0x5d6   :  { %v3310_v55 = vadd.f32 %v6652_v7, %v3309_v0 }
 0x5d8   :  { %v3326_v63 = vmax.f32 %v3310_v55, 0.0 }
 0x5da   :  { %v3335_v1 = vpack.c.bf16 %v3326_v63, %v3326_v63 }
 0x5dc   :  { %4028 = vmatmul.msk.bf16.vlgmr.msrb.gmra.mxu3 %vm2860_vm11, %v3335_v1 }
 0x5f0   :  { %v3401_v5 = vpop.f32.mrf.mxu2 }
 0x5f1   :  { %v3405_v11 = vadd.f32 %v3401_v5, %v3383_v12  ;;  %v4064_v5 = vld [vmem:[%s6754_s8] ss:$0 sm:$0xff] }
 0x5f8   :  { %v3403_v43 = vpop.f32.mrf.mxu2  ;;  %v3421_v6 = vpop.f32.mrf.mxu3 }
 0x5f9   :  { %v3425_v21 = vadd.f32 %v3421_v6, %v3405_v11 }
 0x600   :  { %v3423_v10 = vpop.f32.mrf.mxu3 }
 0x60b   :  { %v3312_v42 = vpop.f32.mrf.mxu1 }
 0x60c   :  { %v3313_v51 = vadd.f32 %v6652_v7, %v3312_v42 }
 0x60e   :  { %v3327_v4 = vmax.f32 %v3313_v51, 0.0 }
 0x610   :  { %v3336_v62 = vpack.c.bf16 %v3327_v4, %v3327_v4 }
 0x612   :  { %4029 = vmatmul.msk.bf16.vlgmr.msra.gmra.mxu2 %vm2860_vm11, %v3336_v62 }
 0x613   :  { %v3314_v3 = vpop.f32.mrf.mxu1 }
 0x614   :  { %v3315_v28 = vadd.f32 %v6652_v7, %v3314_v3 }
 0x616   :  { %v3328_v31 = vmax.f32 %v3315_v28, 0.0 }
 0x618   :  { %v3337_v30 = vpack.c.bf16 %v3328_v31, %v3328_v31 }
 0x61a   :  { %4030 = vmatmul.msk.bf16.vlgmr.msra.gmra.mxu3 %vm2860_vm11, %v3337_v30 }
 0x623   :  { %v3317_v26 = vpop.f32.mrf.mxu1 }
 0x624   :  { %v3318_v57 = vadd.f32 %v6652_v7, %v3317_v26  ;;  %v4062_v7 = vld [vmem:[%s6752_s6] ss:$0 sm:$0xff] }
 0x626   :  { %v3329_v48 = vmax.f32 %v3318_v57, 0.0 }
 0x628   :  { %v3338_v14 = vpack.c.bf16 %v3329_v48, %v3329_v48 }
 0x62a   :  { %4031 = vmatmul.msk.bf16.vlgmr.msrb.gmra.mxu2 %vm2860_vm11, %v3338_v14 }
 0x62b   :  { %v3319_v46 = vpop.f32.mrf.mxu1 }
 0x657   :  { %v3441_v59 = vpop.f32.mrf.mxu2 }
 0x658   :  { %v3445_v47 = vadd.f32 %v3441_v59, %v3425_v21 }
 0x65f   :  { %v3443_v56 = vpop.f32.mrf.mxu2  ;;  %v3461_v18 = vpop.f32.mrf.mxu3 }
 0x660   :  { %v3465_v22 = vadd.f32 %v3461_v18, %v3445_v47 }
 0x667   :  { %v3463_v25 = vpop.f32.mrf.mxu3 }
 0x695   :  { %v3481_v23 = vpop.f32.mrf.mxu2 }
 0x696   :  { %v3485_v27 = vadd.f32 %v3481_v23, %v3465_v22 }
 0x69d   :  { %v3483_v16 = vpop.f32.mrf.mxu2  ;;  %v3501_v39 = vpop.f32.mrf.mxu3 }
 0x69e   :  { %v3505_v20 = vadd.f32 %v3501_v39, %v3485_v27 }
 0x6a5   :  { %v3503_v13 = vpop.f32.mrf.mxu3 }
 0x6ad   :  { %v3521_v29 = vpop.f32.mrf.mxu2 }
 0x6ae   :  { %v3525_v24 = vadd.f32 %v3521_v29, %v3505_v20 }
 0x6b0   :  { %v3530_v45 = vadd.f32 %v4062_v7, %v3525_v24 }
 0x6b2   :  { %v3532_v34 = vsel %vm3531_vm6, %v3530_v45, 0.0 }
 0x6b3   :  { %3533 = vadd.xlane.f32.xlu2 %v3532_v34 }
 0x6b5   :  { %v3523_v17 = vpop.f32.mrf.mxu2 }
 0x726   :  { %v3534_v52 = vpop.xlane.xlu2 %3533 }
 0x727   :  { %v3542_v53 = vmul.f32 %v3541_v49, %v3534_v52 }
 0x729   :  { %v3543_v44 = vsub.f32 %v3530_v45, %v3542_v53 }
 0x72b   :  { %v3544_v54 = vmul.f32 %v3543_v44, %v3543_v44 }
 0x72d   :  { %v3545_v12 = vsel %vm3531_vm6, %v3544_v54, 0.0 }
 0x72e   :  { %3546 = vadd.xlane.f32.xlu0 %v3545_v12 }
 0x7a1   :  { %v3547_v58 = vpop.xlane.xlu0 %3546 }
 0x7a2   :  { %v3548_v60 = vmul.f32 %v3547_v58, %v3541_v49 }
 0x7a4   :  { %v3549_v19 = vadd.f32 1e-05, %v3548_v60 }
 0x7a6   :  { %4067 = vrsqrt.f32 %v3549_v19  ;;  %vm3556_vm9 = vweird.f32 %v3549_v19 }
 0x7ac   :  { %v4068_v32 = vpop.eup %4067 }
 0x7ad   :  { %v3551_v61 = vmul.f32 %v4068_v32, %v3549_v19  ;;  %vm3557_vm8 = vweird.f32 %v4068_v32 }
 0x7ae   :  { %vm3558_vm10 = vmor %vm3556_vm9, %vm3557_vm8 }
 0x7af   :  { %v3552_v0 = vmul.f32 %v4068_v32, %v3551_v61 }
 0x7b1   :  { %v3553_v55 = vmul.f32 0.5, %v3552_v0 }
 0x7b3   :  { %v3554_v63 = vsub.f32 1.5, %v3553_v55 }
 0x7b5   :  { %v3555_v1 = vmul.f32 %v4068_v32, %v3554_v63 }
 0x7b7   :  { %v3559_v40 = vsel %vm3558_vm10, %v4068_v32, %v3555_v1 }
 0x7b8   :  { %v3560_v11 = vmul.f32 %v3559_v40, %v3543_v44 }
 0x7ba   :  { %v3565_v43 = vmul.f32 %v4063_v2, %v3560_v11 }
 0x7bc   :  { %v3570_v6 = vadd.f32 %v4064_v5, %v3565_v43 }
 0x7be   :  { %4069 = vtanh.f32 %v3570_v6 }
 0x7c4   :  { %v4070_v36 = vpop.eup %4069 }
 0x7c5   :  { %3572 = vst.msk [vmem:[%s6755_s9] sm:$0xff] %vm3531_vm6, %v4070_v36 }

</bundles_post_ra>
